<compile_context>
chip_gen: v5e
topology: v5e:2x2
jax: 0.10.0
libtpu: 0.0.40
codegen_flags: <defaults>
</compile_context>

<pallas_src>
import functools
import math

import jax
import jax.numpy as jnp
from jax import lax
from jax.experimental import pallas as pl
from jax.experimental.pallas import tpu as pltpu


# ----------------------------------------------------------------------------
# Pallas kernel: one bidirectional LSTM layer, full sequence, single invocation.
# ----------------------------------------------------------------------------
def _bilstm_layer_kernel(x_ref, wih_ref, whh_ref, b_ref,       # inputs
                         out_ref, hn_ref, cn_ref,              # outputs
                         gx_sc,                                # VMEM scratch
                         *, hid_dim, seq_len, batch, unroll):
    H, S, B = hid_dim, seq_len, batch
    H4 = 4 * H

    # ---- Hoisted input projection: ONE fused MXU matmul for both directions.
    # gx layout: [S*B, 8H] f32, columns = [fwd (i,f,o,g) | bwd (i,f,o,g)].
    gx_sc[...] = jnp.dot(x_ref[...], wih_ref[...],
                         preferred_element_type=jnp.float32) + b_ref[...]

    whh_f = whh_ref[0]                                          # [H, 4H] bf16
    whh_b = whh_ref[1]

    def cell(gates, c_prev):
        # Gate order (i, f, o, g): one contiguous sigmoid over 3H lanes,
        # one tanh over the last H lanes (EUP ops, off the VALU critical path).
        sig = jax.nn.sigmoid(gates[:, :3 * H])
        g = jnp.tanh(gates[:, 3 * H:])
        i = sig[:, 0 * H:1 * H]
        f = sig[:, 1 * H:2 * H]
        o = sig[:, 2 * H:3 * H]
        c = f * c_prev + i * g
        h = o * jnp.tanh(c)
        return h, c

    def step(t, carry):
        h_f, c_f, h_b, c_b = carry                   # [B, H] f32, in vregs
        rf = pl.multiple_of(t * B, B)                # fwd rows: time step t
        rb = pl.multiple_of((S - 1 - t) * B, B)      # bwd rows: time step S-1-t

        gates_f = gx_sc[pl.ds(rf, B), 0:H4] + jnp.dot(
            h_f.astype(jnp.bfloat16), whh_f,
            preferred_element_type=jnp.float32)
        gates_b = gx_sc[pl.ds(rb, B), H4:2 * H4] + jnp.dot(
            h_b.astype(jnp.bfloat16), whh_b,
            preferred_element_type=jnp.float32)

        h_f, c_f = cell(gates_f, c_f)
        h_b, c_b = cell(gates_b, c_b)

        # Fused bidirectional output: fwd half / bwd half of the 2H lanes.
        out_ref[pl.ds(rf, B), 0:H] = h_f.astype(out_ref.dtype)
        out_ref[pl.ds(rb, B), H:2 * H] = h_b.astype(out_ref.dtype)
        return h_f, c_f, h_b, c_b

    z = jnp.zeros((B, H), jnp.float32)
    h_f, c_f, h_b, c_b = lax.fori_loop(0, S, step, (z, z, z, z), unroll=unroll)

    hn_ref[0] = h_f                                             # [2, B, H]
    hn_ref[1] = h_b
    cn_ref[0] = c_f
    cn_ref[1] = c_b


def bilstm_layer(x2d, w_ih, w_hh, bias, *, seq_len, batch):
    """One bidirectional LSTM layer over a flattened time-major sequence.

    x2d  : [S*B, In] bf16 (row t*B + b = time step t, batch b)
    w_ih : [In, 8H] bf16  (cols: fwd (i,f,o,g) | bwd (i,f,o,g), pre-transposed)
    w_hh : [2, H, 4H] bf16 (dir 0 = fwd, dir 1 = bwd; gate order (i,f,o,g))
    bias : [1, 8H] f32
    Returns (out [S*B, 2H] bf16, h_n [2, B, H] f32, c_n [2, B, H] f32).
    """
    SB, _ = x2d.shape
    assert SB == seq_len * batch
    H = w_hh.shape[1]

    kernel = functools.partial(_bilstm_layer_kernel, hid_dim=H,
                               seq_len=seq_len, batch=batch,
                               unroll=seq_len <= 32)

    out, hn, cn = pl.pallas_call(
        kernel,
        out_shape=[
            jax.ShapeDtypeStruct((seq_len * batch, 2 * H), jnp.bfloat16),
            jax.ShapeDtypeStruct((2, batch, H), jnp.float32),
            jax.ShapeDtypeStruct((2, batch, H), jnp.float32),
        ],
        in_specs=[
            pl.BlockSpec(memory_space=pltpu.MemorySpace.VMEM),  # x slab
            pl.BlockSpec(memory_space=pltpu.MemorySpace.VMEM),  # W_ih (fused)
            pl.BlockSpec(memory_space=pltpu.MemorySpace.VMEM),  # W_hh (2 dirs)
            pl.BlockSpec(memory_space=pltpu.MemorySpace.VMEM),  # bias
        ],
        out_specs=[
            pl.BlockSpec(memory_space=pltpu.MemorySpace.VMEM),
            pl.BlockSpec(memory_space=pltpu.MemorySpace.VMEM),
            pl.BlockSpec(memory_space=pltpu.MemorySpace.VMEM),
        ],
        scratch_shapes=[
            pltpu.VMEM((seq_len * batch, 8 * H), jnp.float32),  # fused gx slab
        ],
    )(x2d, w_ih, w_hh, bias)
    return out, hn, cn


# ----------------------------------------------------------------------------
# Parameter init (deterministic, PyTorch-style U(-1/sqrt(H), 1/sqrt(H))),
# pre-transposed / pre-stacked / gate-reordered once.
# ----------------------------------------------------------------------------
def _reorder_gates(w):
    """PyTorch gate order (i, f, g, o) -> kernel order (i, f, o, g) (axis 0)."""
    i, f, g, o = jnp.split(w, 4, axis=0)
    return jnp.concatenate([i, f, o, g], axis=0)


def init_encoder_params(key, input_dim, emb_dim, hid_dim, n_layers):
    k_emb, key = jax.random.split(key)
    params = {
        "embedding": jax.random.normal(k_emb, (input_dim, emb_dim),
                                       jnp.float32) * 0.1,
        "layers": [],
    }
    bound = 1.0 / math.sqrt(hid_dim)
    for layer in range(n_layers):
        in_dim = emb_dim if layer == 0 else 2 * hid_dim
        wih_cols, whh_list, bias_cols = [], [], []
        for _ in range(2):                                # fwd, bwd
            key, k1, k2, k3, k4 = jax.random.split(key, 5)
            w_ih = jax.random.uniform(k1, (4 * hid_dim, in_dim), jnp.float32,
                                      -bound, bound)
            w_hh = jax.random.uniform(k2, (4 * hid_dim, hid_dim), jnp.float32,
                                      -bound, bound)
            b_ih = jax.random.uniform(k3, (4 * hid_dim,), jnp.float32,
                                      -bound, bound)
            b_hh = jax.random.uniform(k4, (4 * hid_dim,), jnp.float32,
                                      -bound, bound)
            wih_cols.append(_reorder_gates(w_ih).T)       # [In, 4H]
            whh_list.append(_reorder_gates(w_hh).T)       # [H, 4H]
            bias_cols.append(_reorder_gates(b_ih + b_hh))
        params["layers"].append({
            # Fused input weight: [In, 8H] = [fwd 4H | bwd 4H].
            "w_ih": jnp.concatenate(wih_cols, axis=1).astype(jnp.bfloat16),
            "w_hh": jnp.stack(whh_list).astype(jnp.bfloat16),   # [2, H, 4H]
            "bias": jnp.concatenate(bias_cols).reshape(
                1, 8 * hid_dim).astype(jnp.float32),            # [1, 8H]
        })
    return params


# ----------------------------------------------------------------------------
# Encoder forward (matches the PyTorch module in eval mode)
# ----------------------------------------------------------------------------
def encoder_forward(params, src):
    """src: [batch, seq] int32 token ids -> (hidden, cell),
    each [n_layers * 2, batch, hid_dim]."""
    B, S = src.shape
    # Time-major embedding gather (no separate [B,S,E]->[S,B,E] relayout).
    x = params["embedding"][src.T]                        # [S, B, E] f32
    # Pad batch to a full sublane group; padded rows are sliced off at the end.
    B_pad = max(8, -(-B // 8) * 8)
    if B_pad != B:
        x = jnp.pad(x, ((0, 0), (0, B_pad - B), (0, 0)))
    E = x.shape[-1]
    x = x.astype(jnp.bfloat16).reshape(S * B_pad, E)      # flattened time-major

    # TODO(synk): nn.LSTM inter-layer dropout only applies in training mode;
    # this is the eval-mode (identity-dropout) forward.
    h_list, c_list = [], []
    for layer in params["layers"]:
        x, hn, cn = bilstm_layer(x, layer["w_ih"], layer["w_hh"],
                                 layer["bias"], seq_len=S, batch=B_pad)
        h_list.extend([hn[0], hn[1]])                     # fwd, bwd
        c_list.extend([cn[0], cn[1]])
    hidden = jnp.stack(h_list, axis=0)[:, :B, :]          # [n_layers*2, B, H]
    cell = jnp.stack(c_list, axis=0)[:, :B, :]
    return hidden, cell


if __name__ == "__main__":
    INPUT_DIM = 50     # vocab size
    EMB_DIM = 16
    HID_DIM = 32
    N_LAYERS = 2
    BATCH = 2
    SEQ = 8

    key = jax.random.PRNGKey(0)
    k_params, k_src = jax.random.split(key)
    params = init_encoder_params(k_params, INPUT_DIM, EMB_DIM, HID_DIM, N_LAYERS)
    src = jax.random.randint(k_src, (BATCH, SEQ), 0, INPUT_DIM, dtype=jnp.int32)

    hidden, cell = jax.jit(encoder_forward)(params, src)
    jax.block_until_ready((hidden, cell))

    assert hidden.shape == (N_LAYERS * 2, BATCH, HID_DIM), hidden.shape
    assert cell.shape == (N_LAYERS * 2, BATCH, HID_DIM), cell.shape
    print("KERNEL_OK")
</pallas_src>

<mosaic_0001>
module attributes {stable_mosaic.version = 11 : i64} {
  func.func @_bilstm_layer_kernel(%arg0: memref<64x16xbf16, #tpu.memory_space<vmem>>, %arg1: memref<16x256xbf16, #tpu.memory_space<vmem>>, %arg2: memref<2x32x128xbf16, #tpu.memory_space<vmem>>, %arg3: memref<1x256xf32, #tpu.memory_space<vmem>>, %arg4: memref<64x64xbf16, #tpu.memory_space<vmem>>, %arg5: memref<2x8x32xf32, #tpu.memory_space<vmem>>, %arg6: memref<2x8x32xf32, #tpu.memory_space<vmem>>, %arg7: memref<64x256xf32, #tpu.memory_space<vmem>>) attributes {dimension_semantics = [], scalar_prefetch = 0 : i64, scratch_operands = 1 : i64, tpu.core_type = #tpu.core_type<tc>} {
    %c0 = arith.constant 0 : index
    %c0_0 = arith.constant 0 : index
    %0 = vector.load %arg0[%c0, %c0_0] : memref<64x16xbf16, #tpu.memory_space<vmem>>, vector<64x16xbf16>
    %c0_1 = arith.constant 0 : index
    %c0_2 = arith.constant 0 : index
    %1 = vector.load %arg1[%c0_1, %c0_2] : memref<16x256xbf16, #tpu.memory_space<vmem>>, vector<16x256xbf16>
    %cst = arith.constant dense<0.000000e+00> : vector<64x256xf32>
    %2 = tpu.matmul %0, %1, %cst {dimension_numbers = #tpu.dot_dimension_numbers<[1], [0], [0], [1], [0, 0, 1, 1], [], []>} : vector<64x16xbf16>, vector<16x256xbf16>, vector<64x256xf32> -> vector<64x256xf32>
    %c0_3 = arith.constant 0 : index
    %c0_4 = arith.constant 0 : index
    %3 = vector.load %arg3[%c0_3, %c0_4] : memref<1x256xf32, #tpu.memory_space<vmem>>, vector<1x256xf32>
    %4 = vector.broadcast %3 : vector<1x256xf32> to vector<64x256xf32>
    %5 = arith.addf %2, %4 : vector<64x256xf32>
    %c0_5 = arith.constant 0 : index
    %c0_6 = arith.constant 0 : index
    %6 = vector.load %arg7[%c0_5, %c0_6] : memref<64x256xf32, #tpu.memory_space<vmem>>, vector<64x256xf32>
    tpu.vector_store %arg7[%c0_5, %c0_6], %5 {strides = array<i32>} : memref<64x256xf32, #tpu.memory_space<vmem>>, vector<64x256xf32>,
    %c0_7 = arith.constant 0 : index
    %c0_8 = arith.constant 0 : index
    %c0_9 = arith.constant 0 : index
    %7 = vector.load %arg2[%c0_7, %c0_8, %c0_9] : memref<2x32x128xbf16, #tpu.memory_space<vmem>>, vector<1x32x128xbf16>
    %8 = vector.shape_cast %7 : vector<1x32x128xbf16> to vector<32x128xbf16>
    %c1 = arith.constant 1 : index
    %c0_10 = arith.constant 0 : index
    %c0_11 = arith.constant 0 : index
    %9 = vector.load %arg2[%c1, %c0_10, %c0_11] : memref<2x32x128xbf16, #tpu.memory_space<vmem>>, vector<1x32x128xbf16>
    %10 = vector.shape_cast %9 : vector<1x32x128xbf16> to vector<32x128xbf16>
    %cst_12 = arith.constant 0.000000e+00 : f32
    %11 = vector.broadcast %cst_12 : f32 to vector<8x32xf32>
    %c0_i32 = arith.constant 0 : i32
    %c8_i32 = arith.constant 8 : i32
    %12 = arith.muli %c0_i32, %c8_i32 : i32
    %13 = tpu.assume_multiple %12, 8 : i32
    %c7_i32 = arith.constant 7 : i32
    %14 = arith.subi %c7_i32, %c0_i32 : i32
    %c8_i32_13 = arith.constant 8 : i32
    %15 = arith.muli %14, %c8_i32_13 : i32
    %16 = tpu.assume_multiple %15, 8 : i32
    %17 = arith.index_cast %13 : i32 to index
    %c0_14 = arith.constant 0 : index
    %18 = vector.load %arg7[%17, %c0_14] : memref<64x256xf32, #tpu.memory_space<vmem>>, vector<8x128xf32>
    %19 = arith.truncf %11 : vector<8x32xf32> to vector<8x32xbf16>
    %cst_15 = arith.constant dense<0.000000e+00> : vector<8x128xf32>
    %20 = tpu.matmul %19, %8, %cst_15 {dimension_numbers = #tpu.dot_dimension_numbers<[1], [0], [0], [1], [0, 0, 1, 1], [], []>} : vector<8x32xbf16>, vector<32x128xbf16>, vector<8x128xf32> -> vector<8x128xf32>
    %21 = arith.addf %18, %20 : vector<8x128xf32>
    %22 = arith.index_cast %16 : i32 to index
    %c128 = arith.constant 128 : index
    %23 = vector.load %arg7[%22, %c128] : memref<64x256xf32, #tpu.memory_space<vmem>>, vector<8x128xf32>
    %24 = arith.truncf %11 : vector<8x32xf32> to vector<8x32xbf16>
    %cst_16 = arith.constant dense<0.000000e+00> : vector<8x128xf32>
    %25 = tpu.matmul %24, %10, %cst_16 {dimension_numbers = #tpu.dot_dimension_numbers<[1], [0], [0], [1], [0, 0, 1, 1], [], []>} : vector<8x32xbf16>, vector<32x128xbf16>, vector<8x128xf32> -> vector<8x128xf32>
    %26 = arith.addf %23, %25 : vector<8x128xf32>
    %27 = vector.extract_strided_slice %21 {offsets = [0, 0], sizes = [8, 96], strides = [1, 1]} : vector<8x128xf32> to vector<8x96xf32>
    %28 = arith.negf %27 : vector<8x96xf32>
    %29 = math.exp %28 : vector<8x96xf32>
    %cst_17 = arith.constant 1.000000e+00 : f32
    %30 = vector.broadcast %cst_17 : f32 to vector<8x96xf32>
    %31 = arith.addf %30, %29 : vector<8x96xf32>
    %32 = arith.divf %30, %31 : vector<8x96xf32>
    %33 = vector.extract_strided_slice %21 {offsets = [0, 96], sizes = [8, 32], strides = [1, 1]} : vector<8x128xf32> to vector<8x32xf32>
    %34 = math.tanh %33 : vector<8x32xf32>
    %35 = vector.extract_strided_slice %32 {offsets = [0, 0], sizes = [8, 32], strides = [1, 1]} : vector<8x96xf32> to vector<8x32xf32>
    %36 = vector.extract_strided_slice %32 {offsets = [0, 32], sizes = [8, 32], strides = [1, 1]} : vector<8x96xf32> to vector<8x32xf32>
    %37 = vector.extract_strided_slice %32 {offsets = [0, 64], sizes = [8, 32], strides = [1, 1]} : vector<8x96xf32> to vector<8x32xf32>
    %38 = arith.mulf %36, %11 : vector<8x32xf32>
    %39 = arith.mulf %35, %34 : vector<8x32xf32>
    %40 = arith.addf %38, %39 : vector<8x32xf32>
    %41 = math.tanh %40 : vector<8x32xf32>
    %42 = arith.mulf %37, %41 : vector<8x32xf32>
    %43 = vector.extract_strided_slice %26 {offsets = [0, 0], sizes = [8, 96], strides = [1, 1]} : vector<8x128xf32> to vector<8x96xf32>
    %44 = arith.negf %43 : vector<8x96xf32>
    %45 = math.exp %44 : vector<8x96xf32>
    %cst_18 = arith.constant 1.000000e+00 : f32
    %46 = vector.broadcast %cst_18 : f32 to vector<8x96xf32>
    %47 = arith.addf %46, %45 : vector<8x96xf32>
    %48 = arith.divf %46, %47 : vector<8x96xf32>
    %49 = vector.extract_strided_slice %26 {offsets = [0, 96], sizes = [8, 32], strides = [1, 1]} : vector<8x128xf32> to vector<8x32xf32>
    %50 = math.tanh %49 : vector<8x32xf32>
    %51 = vector.extract_strided_slice %48 {offsets = [0, 0], sizes = [8, 32], strides = [1, 1]} : vector<8x96xf32> to vector<8x32xf32>
    %52 = vector.extract_strided_slice %48 {offsets = [0, 32], sizes = [8, 32], strides = [1, 1]} : vector<8x96xf32> to vector<8x32xf32>
    %53 = vector.extract_strided_slice %48 {offsets = [0, 64], sizes = [8, 32], strides = [1, 1]} : vector<8x96xf32> to vector<8x32xf32>
    %54 = arith.mulf %52, %11 : vector<8x32xf32>
    %55 = arith.mulf %51, %50 : vector<8x32xf32>
    %56 = arith.addf %54, %55 : vector<8x32xf32>
    %57 = math.tanh %56 : vector<8x32xf32>
    %58 = arith.mulf %53, %57 : vector<8x32xf32>
    %59 = arith.truncf %42 : vector<8x32xf32> to vector<8x32xbf16>
    %60 = arith.index_cast %13 : i32 to index
    %c0_19 = arith.constant 0 : index
    %61 = vector.load %arg4[%60, %c0_19] : memref<64x64xbf16, #tpu.memory_space<vmem>>, vector<8x32xbf16>
    tpu.vector_store %arg4[%60, %c0_19], %59 {strides = array<i32>} : memref<64x64xbf16, #tpu.memory_space<vmem>>, vector<8x32xbf16>,
    %62 = arith.truncf %58 : vector<8x32xf32> to vector<8x32xbf16>
    %63 = arith.index_cast %16 : i32 to index
    %c32 = arith.constant 32 : index
    %64 = vector.load %arg4[%63, %c32] : memref<64x64xbf16, #tpu.memory_space<vmem>>, vector<8x32xbf16>
    tpu.vector_store %arg4[%63, %c32], %62 {strides = array<i32>} : memref<64x64xbf16, #tpu.memory_space<vmem>>, vector<8x32xbf16>,
    %c1_i32 = arith.constant 1 : i32
    %c8_i32_20 = arith.constant 8 : i32
    %65 = arith.muli %c1_i32, %c8_i32_20 : i32
    %66 = tpu.assume_multiple %65, 8 : i32
    %c7_i32_21 = arith.constant 7 : i32
    %67 = arith.subi %c7_i32_21, %c1_i32 : i32
    %c8_i32_22 = arith.constant 8 : i32
    %68 = arith.muli %67, %c8_i32_22 : i32
    %69 = tpu.assume_multiple %68, 8 : i32
    %70 = arith.index_cast %66 : i32 to index
    %c0_23 = arith.constant 0 : index
    %71 = vector.load %arg7[%70, %c0_23] : memref<64x256xf32, #tpu.memory_space<vmem>>, vector<8x128xf32>
    %72 = arith.truncf %42 : vector<8x32xf32> to vector<8x32xbf16>
    %cst_24 = arith.constant dense<0.000000e+00> : vector<8x128xf32>
    %73 = tpu.matmul %72, %8, %cst_24 {dimension_numbers = #tpu.dot_dimension_numbers<[1], [0], [0], [1], [0, 0, 1, 1], [], []>} : vector<8x32xbf16>, vector<32x128xbf16>, vector<8x128xf32> -> vector<8x128xf32>
    %74 = arith.addf %71, %73 : vector<8x128xf32>
    %75 = arith.index_cast %69 : i32 to index
    %c128_25 = arith.constant 128 : index
    %76 = vector.load %arg7[%75, %c128_25] : memref<64x256xf32, #tpu.memory_space<vmem>>, vector<8x128xf32>
    %77 = arith.truncf %58 : vector<8x32xf32> to vector<8x32xbf16>
    %cst_26 = arith.constant dense<0.000000e+00> : vector<8x128xf32>
    %78 = tpu.matmul %77, %10, %cst_26 {dimension_numbers = #tpu.dot_dimension_numbers<[1], [0], [0], [1], [0, 0, 1, 1], [], []>} : vector<8x32xbf16>, vector<32x128xbf16>, vector<8x128xf32> -> vector<8x128xf32>
    %79 = arith.addf %76, %78 : vector<8x128xf32>
    %80 = vector.extract_strided_slice %74 {offsets = [0, 0], sizes = [8, 96], strides = [1, 1]} : vector<8x128xf32> to vector<8x96xf32>
    %81 = arith.negf %80 : vector<8x96xf32>
    %82 = math.exp %81 : vector<8x96xf32>
    %cst_27 = arith.constant 1.000000e+00 : f32
    %83 = vector.broadcast %cst_27 : f32 to vector<8x96xf32>
    %84 = arith.addf %83, %82 : vector<8x96xf32>
    %85 = arith.divf %83, %84 : vector<8x96xf32>
    %86 = vector.extract_strided_slice %74 {offsets = [0, 96], sizes = [8, 32], strides = [1, 1]} : vector<8x128xf32> to vector<8x32xf32>
    %87 = math.tanh %86 : vector<8x32xf32>
    %88 = vector.extract_strided_slice %85 {offsets = [0, 0], sizes = [8, 32], strides = [1, 1]} : vector<8x96xf32> to vector<8x32xf32>
    %89 = vector.extract_strided_slice %85 {offsets = [0, 32], sizes = [8, 32], strides = [1, 1]} : vector<8x96xf32> to vector<8x32xf32>
    %90 = vector.extract_strided_slice %85 {offsets = [0, 64], sizes = [8, 32], strides = [1, 1]} : vector<8x96xf32> to vector<8x32xf32>
    %91 = arith.mulf %89, %40 : vector<8x32xf32>
    %92 = arith.mulf %88, %87 : vector<8x32xf32>
    %93 = arith.addf %91, %92 : vector<8x32xf32>
    %94 = math.tanh %93 : vector<8x32xf32>
    %95 = arith.mulf %90, %94 : vector<8x32xf32>
    %96 = vector.extract_strided_slice %79 {offsets = [0, 0], sizes = [8, 96], strides = [1, 1]} : vector<8x128xf32> to vector<8x96xf32>
    %97 = arith.negf %96 : vector<8x96xf32>
    %98 = math.exp %97 : vector<8x96xf32>
    %cst_28 = arith.constant 1.000000e+00 : f32
    %99 = vector.broadcast %cst_28 : f32 to vector<8x96xf32>
    %100 = arith.addf %99, %98 : vector<8x96xf32>
    %101 = arith.divf %99, %100 : vector<8x96xf32>
    %102 = vector.extract_strided_slice %79 {offsets = [0, 96], sizes = [8, 32], strides = [1, 1]} : vector<8x128xf32> to vector<8x32xf32>
    %103 = math.tanh %102 : vector<8x32xf32>
    %104 = vector.extract_strided_slice %101 {offsets = [0, 0], sizes = [8, 32], strides = [1, 1]} : vector<8x96xf32> to vector<8x32xf32>
    %105 = vector.extract_strided_slice %101 {offsets = [0, 32], sizes = [8, 32], strides = [1, 1]} : vector<8x96xf32> to vector<8x32xf32>
    %106 = vector.extract_strided_slice %101 {offsets = [0, 64], sizes = [8, 32], strides = [1, 1]} : vector<8x96xf32> to vector<8x32xf32>
    %107 = arith.mulf %105, %56 : vector<8x32xf32>
    %108 = arith.mulf %104, %103 : vector<8x32xf32>
    %109 = arith.addf %107, %108 : vector<8x32xf32>
    %110 = math.tanh %109 : vector<8x32xf32>
    %111 = arith.mulf %106, %110 : vector<8x32xf32>
    %112 = arith.truncf %95 : vector<8x32xf32> to vector<8x32xbf16>
    %113 = arith.index_cast %66 : i32 to index
    %c0_29 = arith.constant 0 : index
    %114 = vector.load %arg4[%113, %c0_29] : memref<64x64xbf16, #tpu.memory_space<vmem>>, vector<8x32xbf16>
    tpu.vector_store %arg4[%113, %c0_29], %112 {strides = array<i32>} : memref<64x64xbf16, #tpu.memory_space<vmem>>, vector<8x32xbf16>,
    %115 = arith.truncf %111 : vector<8x32xf32> to vector<8x32xbf16>
    %116 = arith.index_cast %69 : i32 to index
    %c32_30 = arith.constant 32 : index
    %117 = vector.load %arg4[%116, %c32_30] : memref<64x64xbf16, #tpu.memory_space<vmem>>, vector<8x32xbf16>
    tpu.vector_store %arg4[%116, %c32_30], %115 {strides = array<i32>} : memref<64x64xbf16, #tpu.memory_space<vmem>>, vector<8x32xbf16>,
    %c2_i32 = arith.constant 2 : i32
    %c8_i32_31 = arith.constant 8 : i32
    %118 = arith.muli %c2_i32, %c8_i32_31 : i32
    %119 = tpu.assume_multiple %118, 8 : i32
    %c7_i32_32 = arith.constant 7 : i32
    %120 = arith.subi %c7_i32_32, %c2_i32 : i32
    %c8_i32_33 = arith.constant 8 : i32
    %121 = arith.muli %120, %c8_i32_33 : i32
    %122 = tpu.assume_multiple %121, 8 : i32
    %123 = arith.index_cast %119 : i32 to index
    %c0_34 = arith.constant 0 : index
    %124 = vector.load %arg7[%123, %c0_34] : memref<64x256xf32, #tpu.memory_space<vmem>>, vector<8x128xf32>
    %125 = arith.truncf %95 : vector<8x32xf32> to vector<8x32xbf16>
    %cst_35 = arith.constant dense<0.000000e+00> : vector<8x128xf32>
    %126 = tpu.matmul %125, %8, %cst_35 {dimension_numbers = #tpu.dot_dimension_numbers<[1], [0], [0], [1], [0, 0, 1, 1], [], []>} : vector<8x32xbf16>, vector<32x128xbf16>, vector<8x128xf32> -> vector<8x128xf32>
    %127 = arith.addf %124, %126 : vector<8x128xf32>
    %128 = arith.index_cast %122 : i32 to index
    %c128_36 = arith.constant 128 : index
    %129 = vector.load %arg7[%128, %c128_36] : memref<64x256xf32, #tpu.memory_space<vmem>>, vector<8x128xf32>
    %130 = arith.truncf %111 : vector<8x32xf32> to vector<8x32xbf16>
    %cst_37 = arith.constant dense<0.000000e+00> : vector<8x128xf32>
    %131 = tpu.matmul %130, %10, %cst_37 {dimension_numbers = #tpu.dot_dimension_numbers<[1], [0], [0], [1], [0, 0, 1, 1], [], []>} : vector<8x32xbf16>, vector<32x128xbf16>, vector<8x128xf32> -> vector<8x128xf32>
    %132 = arith.addf %129, %131 : vector<8x128xf32>
    %133 = vector.extract_strided_slice %127 {offsets = [0, 0], sizes = [8, 96], strides = [1, 1]} : vector<8x128xf32> to vector<8x96xf32>
    %134 = arith.negf %133 : vector<8x96xf32>
    %135 = math.exp %134 : vector<8x96xf32>
    %cst_38 = arith.constant 1.000000e+00 : f32
    %136 = vector.broadcast %cst_38 : f32 to vector<8x96xf32>
    %137 = arith.addf %136, %135 : vector<8x96xf32>
    %138 = arith.divf %136, %137 : vector<8x96xf32>
    %139 = vector.extract_strided_slice %127 {offsets = [0, 96], sizes = [8, 32], strides = [1, 1]} : vector<8x128xf32> to vector<8x32xf32>
    %140 = math.tanh %139 : vector<8x32xf32>
    %141 = vector.extract_strided_slice %138 {offsets = [0, 0], sizes = [8, 32], strides = [1, 1]} : vector<8x96xf32> to vector<8x32xf32>
    %142 = vector.extract_strided_slice %138 {offsets = [0, 32], sizes = [8, 32], strides = [1, 1]} : vector<8x96xf32> to vector<8x32xf32>
    %143 = vector.extract_strided_slice %138 {offsets = [0, 64], sizes = [8, 32], strides = [1, 1]} : vector<8x96xf32> to vector<8x32xf32>
    %144 = arith.mulf %142, %93 : vector<8x32xf32>
    %145 = arith.mulf %141, %140 : vector<8x32xf32>
    %146 = arith.addf %144, %145 : vector<8x32xf32>
    %147 = math.tanh %146 : vector<8x32xf32>
    %148 = arith.mulf %143, %147 : vector<8x32xf32>
    %149 = vector.extract_strided_slice %132 {offsets = [0, 0], sizes = [8, 96], strides = [1, 1]} : vector<8x128xf32> to vector<8x96xf32>
    %150 = arith.negf %149 : vector<8x96xf32>
    %151 = math.exp %150 : vector<8x96xf32>
    %cst_39 = arith.constant 1.000000e+00 : f32
    %152 = vector.broadcast %cst_39 : f32 to vector<8x96xf32>
    %153 = arith.addf %152, %151 : vector<8x96xf32>
    %154 = arith.divf %152, %153 : vector<8x96xf32>
    %155 = vector.extract_strided_slice %132 {offsets = [0, 96], sizes = [8, 32], strides = [1, 1]} : vector<8x128xf32> to vector<8x32xf32>
    %156 = math.tanh %155 : vector<8x32xf32>
    %157 = vector.extract_strided_slice %154 {offsets = [0, 0], sizes = [8, 32], strides = [1, 1]} : vector<8x96xf32> to vector<8x32xf32>
    %158 = vector.extract_strided_slice %154 {offsets = [0, 32], sizes = [8, 32], strides = [1, 1]} : vector<8x96xf32> to vector<8x32xf32>
    %159 = vector.extract_strided_slice %154 {offsets = [0, 64], sizes = [8, 32], strides = [1, 1]} : vector<8x96xf32> to vector<8x32xf32>
    %160 = arith.mulf %158, %109 : vector<8x32xf32>
    %161 = arith.mulf %157, %156 : vector<8x32xf32>
    %162 = arith.addf %160, %161 : vector<8x32xf32>
    %163 = math.tanh %162 : vector<8x32xf32>
    %164 = arith.mulf %159, %163 : vector<8x32xf32>
    %165 = arith.truncf %148 : vector<8x32xf32> to vector<8x32xbf16>
    %166 = arith.index_cast %119 : i32 to index
    %c0_40 = arith.constant 0 : index
    %167 = vector.load %arg4[%166, %c0_40] : memref<64x64xbf16, #tpu.memory_space<vmem>>, vector<8x32xbf16>
    tpu.vector_store %arg4[%166, %c0_40], %165 {strides = array<i32>} : memref<64x64xbf16, #tpu.memory_space<vmem>>, vector<8x32xbf16>,
    %168 = arith.truncf %164 : vector<8x32xf32> to vector<8x32xbf16>
    %169 = arith.index_cast %122 : i32 to index
    %c32_41 = arith.constant 32 : index
    %170 = vector.load %arg4[%169, %c32_41] : memref<64x64xbf16, #tpu.memory_space<vmem>>, vector<8x32xbf16>
    tpu.vector_store %arg4[%169, %c32_41], %168 {strides = array<i32>} : memref<64x64xbf16, #tpu.memory_space<vmem>>, vector<8x32xbf16>,
    %c3_i32 = arith.constant 3 : i32
    %c8_i32_42 = arith.constant 8 : i32
    %171 = arith.muli %c3_i32, %c8_i32_42 : i32
    %172 = tpu.assume_multiple %171, 8 : i32
    %c7_i32_43 = arith.constant 7 : i32
    %173 = arith.subi %c7_i32_43, %c3_i32 : i32
    %c8_i32_44 = arith.constant 8 : i32
    %174 = arith.muli %173, %c8_i32_44 : i32
    %175 = tpu.assume_multiple %174, 8 : i32
    %176 = arith.index_cast %172 : i32 to index
    %c0_45 = arith.constant 0 : index
    %177 = vector.load %arg7[%176, %c0_45] : memref<64x256xf32, #tpu.memory_space<vmem>>, vector<8x128xf32>
    %178 = arith.truncf %148 : vector<8x32xf32> to vector<8x32xbf16>
    %cst_46 = arith.constant dense<0.000000e+00> : vector<8x128xf32>
    %179 = tpu.matmul %178, %8, %cst_46 {dimension_numbers = #tpu.dot_dimension_numbers<[1], [0], [0], [1], [0, 0, 1, 1], [], []>} : vector<8x32xbf16>, vector<32x128xbf16>, vector<8x128xf32> -> vector<8x128xf32>
    %180 = arith.addf %177, %179 : vector<8x128xf32>
    %181 = arith.index_cast %175 : i32 to index
    %c128_47 = arith.constant 128 : index
    %182 = vector.load %arg7[%181, %c128_47] : memref<64x256xf32, #tpu.memory_space<vmem>>, vector<8x128xf32>
    %183 = arith.truncf %164 : vector<8x32xf32> to vector<8x32xbf16>
    %cst_48 = arith.constant dense<0.000000e+00> : vector<8x128xf32>
    %184 = tpu.matmul %183, %10, %cst_48 {dimension_numbers = #tpu.dot_dimension_numbers<[1], [0], [0], [1], [0, 0, 1, 1], [], []>} : vector<8x32xbf16>, vector<32x128xbf16>, vector<8x128xf32> -> vector<8x128xf32>
    %185 = arith.addf %182, %184 : vector<8x128xf32>
    %186 = vector.extract_strided_slice %180 {offsets = [0, 0], sizes = [8, 96], strides = [1, 1]} : vector<8x128xf32> to vector<8x96xf32>
    %187 = arith.negf %186 : vector<8x96xf32>
    %188 = math.exp %187 : vector<8x96xf32>
    %cst_49 = arith.constant 1.000000e+00 : f32
    %189 = vector.broadcast %cst_49 : f32 to vector<8x96xf32>
    %190 = arith.addf %189, %188 : vector<8x96xf32>
    %191 = arith.divf %189, %190 : vector<8x96xf32>
    %192 = vector.extract_strided_slice %180 {offsets = [0, 96], sizes = [8, 32], strides = [1, 1]} : vector<8x128xf32> to vector<8x32xf32>
    %193 = math.tanh %192 : vector<8x32xf32>
    %194 = vector.extract_strided_slice %191 {offsets = [0, 0], sizes = [8, 32], strides = [1, 1]} : vector<8x96xf32> to vector<8x32xf32>
    %195 = vector.extract_strided_slice %191 {offsets = [0, 32], sizes = [8, 32], strides = [1, 1]} : vector<8x96xf32> to vector<8x32xf32>
    %196 = vector.extract_strided_slice %191 {offsets = [0, 64], sizes = [8, 32], strides = [1, 1]} : vector<8x96xf32> to vector<8x32xf32>
    %197 = arith.mulf %195, %146 : vector<8x32xf32>
    %198 = arith.mulf %194, %193 : vector<8x32xf32>
    %199 = arith.addf %197, %198 : vector<8x32xf32>
    %200 = math.tanh %199 : vector<8x32xf32>
    %201 = arith.mulf %196, %200 : vector<8x32xf32>
    %202 = vector.extract_strided_slice %185 {offsets = [0, 0], sizes = [8, 96], strides = [1, 1]} : vector<8x128xf32> to vector<8x96xf32>
    %203 = arith.negf %202 : vector<8x96xf32>
    %204 = math.exp %203 : vector<8x96xf32>
    %cst_50 = arith.constant 1.000000e+00 : f32
    %205 = vector.broadcast %cst_50 : f32 to vector<8x96xf32>
    %206 = arith.addf %205, %204 : vector<8x96xf32>
    %207 = arith.divf %205, %206 : vector<8x96xf32>
    %208 = vector.extract_strided_slice %185 {offsets = [0, 96], sizes = [8, 32], strides = [1, 1]} : vector<8x128xf32> to vector<8x32xf32>
    %209 = math.tanh %208 : vector<8x32xf32>
    %210 = vector.extract_strided_slice %207 {offsets = [0, 0], sizes = [8, 32], strides = [1, 1]} : vector<8x96xf32> to vector<8x32xf32>
    %211 = vector.extract_strided_slice %207 {offsets = [0, 32], sizes = [8, 32], strides = [1, 1]} : vector<8x96xf32> to vector<8x32xf32>
    %212 = vector.extract_strided_slice %207 {offsets = [0, 64], sizes = [8, 32], strides = [1, 1]} : vector<8x96xf32> to vector<8x32xf32>
    %213 = arith.mulf %211, %162 : vector<8x32xf32>
    %214 = arith.mulf %210, %209 : vector<8x32xf32>
    %215 = arith.addf %213, %214 : vector<8x32xf32>
    %216 = math.tanh %215 : vector<8x32xf32>
    %217 = arith.mulf %212, %216 : vector<8x32xf32>
    %218 = arith.truncf %201 : vector<8x32xf32> to vector<8x32xbf16>
    %219 = arith.index_cast %172 : i32 to index
    %c0_51 = arith.constant 0 : index
    %220 = vector.load %arg4[%219, %c0_51] : memref<64x64xbf16, #tpu.memory_space<vmem>>, vector<8x32xbf16>
    tpu.vector_store %arg4[%219, %c0_51], %218 {strides = array<i32>} : memref<64x64xbf16, #tpu.memory_space<vmem>>, vector<8x32xbf16>,
    %221 = arith.truncf %217 : vector<8x32xf32> to vector<8x32xbf16>
    %222 = arith.index_cast %175 : i32 to index
    %c32_52 = arith.constant 32 : index
    %223 = vector.load %arg4[%222, %c32_52] : memref<64x64xbf16, #tpu.memory_space<vmem>>, vector<8x32xbf16>
    tpu.vector_store %arg4[%222, %c32_52], %221 {strides = array<i32>} : memref<64x64xbf16, #tpu.memory_space<vmem>>, vector<8x32xbf16>,
    %c4_i32 = arith.constant 4 : i32
    %c8_i32_53 = arith.constant 8 : i32
    %224 = arith.muli %c4_i32, %c8_i32_53 : i32
    %225 = tpu.assume_multiple %224, 8 : i32
    %c7_i32_54 = arith.constant 7 : i32
    %226 = arith.subi %c7_i32_54, %c4_i32 : i32
    %c8_i32_55 = arith.constant 8 : i32
    %227 = arith.muli %226, %c8_i32_55 : i32
    %228 = tpu.assume_multiple %227, 8 : i32
    %229 = arith.index_cast %225 : i32 to index
    %c0_56 = arith.constant 0 : index
    %230 = vector.load %arg7[%229, %c0_56] : memref<64x256xf32, #tpu.memory_space<vmem>>, vector<8x128xf32>
    %231 = arith.truncf %201 : vector<8x32xf32> to vector<8x32xbf16>
    %cst_57 = arith.constant dense<0.000000e+00> : vector<8x128xf32>
    %232 = tpu.matmul %231, %8, %cst_57 {dimension_numbers = #tpu.dot_dimension_numbers<[1], [0], [0], [1], [0, 0, 1, 1], [], []>} : vector<8x32xbf16>, vector<32x128xbf16>, vector<8x128xf32> -> vector<8x128xf32>
    %233 = arith.addf %230, %232 : vector<8x128xf32>
    %234 = arith.index_cast %228 : i32 to index
    %c128_58 = arith.constant 128 : index
    %235 = vector.load %arg7[%234, %c128_58] : memref<64x256xf32, #tpu.memory_space<vmem>>, vector<8x128xf32>
    %236 = arith.truncf %217 : vector<8x32xf32> to vector<8x32xbf16>
    %cst_59 = arith.constant dense<0.000000e+00> : vector<8x128xf32>
    %237 = tpu.matmul %236, %10, %cst_59 {dimension_numbers = #tpu.dot_dimension_numbers<[1], [0], [0], [1], [0, 0, 1, 1], [], []>} : vector<8x32xbf16>, vector<32x128xbf16>, vector<8x128xf32> -> vector<8x128xf32>
    %238 = arith.addf %235, %237 : vector<8x128xf32>
    %239 = vector.extract_strided_slice %233 {offsets = [0, 0], sizes = [8, 96], strides = [1, 1]} : vector<8x128xf32> to vector<8x96xf32>
    %240 = arith.negf %239 : vector<8x96xf32>
    %241 = math.exp %240 : vector<8x96xf32>
    %cst_60 = arith.constant 1.000000e+00 : f32
    %242 = vector.broadcast %cst_60 : f32 to vector<8x96xf32>
    %243 = arith.addf %242, %241 : vector<8x96xf32>
    %244 = arith.divf %242, %243 : vector<8x96xf32>
    %245 = vector.extract_strided_slice %233 {offsets = [0, 96], sizes = [8, 32], strides = [1, 1]} : vector<8x128xf32> to vector<8x32xf32>
    %246 = math.tanh %245 : vector<8x32xf32>
    %247 = vector.extract_strided_slice %244 {offsets = [0, 0], sizes = [8, 32], strides = [1, 1]} : vector<8x96xf32> to vector<8x32xf32>
    %248 = vector.extract_strided_slice %244 {offsets = [0, 32], sizes = [8, 32], strides = [1, 1]} : vector<8x96xf32> to vector<8x32xf32>
    %249 = vector.extract_strided_slice %244 {offsets = [0, 64], sizes = [8, 32], strides = [1, 1]} : vector<8x96xf32> to vector<8x32xf32>
    %250 = arith.mulf %248, %199 : vector<8x32xf32>
    %251 = arith.mulf %247, %246 : vector<8x32xf32>
    %252 = arith.addf %250, %251 : vector<8x32xf32>
    %253 = math.tanh %252 : vector<8x32xf32>
    %254 = arith.mulf %249, %253 : vector<8x32xf32>
    %255 = vector.extract_strided_slice %238 {offsets = [0, 0], sizes = [8, 96], strides = [1, 1]} : vector<8x128xf32> to vector<8x96xf32>
    %256 = arith.negf %255 : vector<8x96xf32>
    %257 = math.exp %256 : vector<8x96xf32>
    %cst_61 = arith.constant 1.000000e+00 : f32
    %258 = vector.broadcast %cst_61 : f32 to vector<8x96xf32>
    %259 = arith.addf %258, %257 : vector<8x96xf32>
    %260 = arith.divf %258, %259 : vector<8x96xf32>
    %261 = vector.extract_strided_slice %238 {offsets = [0, 96], sizes = [8, 32], strides = [1, 1]} : vector<8x128xf32> to vector<8x32xf32>
    %262 = math.tanh %261 : vector<8x32xf32>
    %263 = vector.extract_strided_slice %260 {offsets = [0, 0], sizes = [8, 32], strides = [1, 1]} : vector<8x96xf32> to vector<8x32xf32>
    %264 = vector.extract_strided_slice %260 {offsets = [0, 32], sizes = [8, 32], strides = [1, 1]} : vector<8x96xf32> to vector<8x32xf32>
    %265 = vector.extract_strided_slice %260 {offsets = [0, 64], sizes = [8, 32], strides = [1, 1]} : vector<8x96xf32> to vector<8x32xf32>
    %266 = arith.mulf %264, %215 : vector<8x32xf32>
    %267 = arith.mulf %263, %262 : vector<8x32xf32>
    %268 = arith.addf %266, %267 : vector<8x32xf32>
    %269 = math.tanh %268 : vector<8x32xf32>
    %270 = arith.mulf %265, %269 : vector<8x32xf32>
    %271 = arith.truncf %254 : vector<8x32xf32> to vector<8x32xbf16>
    %272 = arith.index_cast %225 : i32 to index
    %c0_62 = arith.constant 0 : index
    %273 = vector.load %arg4[%272, %c0_62] : memref<64x64xbf16, #tpu.memory_space<vmem>>, vector<8x32xbf16>
    tpu.vector_store %arg4[%272, %c0_62], %271 {strides = array<i32>} : memref<64x64xbf16, #tpu.memory_space<vmem>>, vector<8x32xbf16>,
    %274 = arith.truncf %270 : vector<8x32xf32> to vector<8x32xbf16>
    %275 = arith.index_cast %228 : i32 to index
    %c32_63 = arith.constant 32 : index
    %276 = vector.load %arg4[%275, %c32_63] : memref<64x64xbf16, #tpu.memory_space<vmem>>, vector<8x32xbf16>
    tpu.vector_store %arg4[%275, %c32_63], %274 {strides = array<i32>} : memref<64x64xbf16, #tpu.memory_space<vmem>>, vector<8x32xbf16>,
    %c5_i32 = arith.constant 5 : i32
    %c8_i32_64 = arith.constant 8 : i32
    %277 = arith.muli %c5_i32, %c8_i32_64 : i32
    %278 = tpu.assume_multiple %277, 8 : i32
    %c7_i32_65 = arith.constant 7 : i32
    %279 = arith.subi %c7_i32_65, %c5_i32 : i32
    %c8_i32_66 = arith.constant 8 : i32
    %280 = arith.muli %279, %c8_i32_66 : i32
    %281 = tpu.assume_multiple %280, 8 : i32
    %282 = arith.index_cast %278 : i32 to index
    %c0_67 = arith.constant 0 : index
    %283 = vector.load %arg7[%282, %c0_67] : memref<64x256xf32, #tpu.memory_space<vmem>>, vector<8x128xf32>
    %284 = arith.truncf %254 : vector<8x32xf32> to vector<8x32xbf16>
    %cst_68 = arith.constant dense<0.000000e+00> : vector<8x128xf32>
    %285 = tpu.matmul %284, %8, %cst_68 {dimension_numbers = #tpu.dot_dimension_numbers<[1], [0], [0], [1], [0, 0, 1, 1], [], []>} : vector<8x32xbf16>, vector<32x128xbf16>, vector<8x128xf32> -> vector<8x128xf32>
    %286 = arith.addf %283, %285 : vector<8x128xf32>
    %287 = arith.index_cast %281 : i32 to index
    %c128_69 = arith.constant 128 : index
    %288 = vector.load %arg7[%287, %c128_69] : memref<64x256xf32, #tpu.memory_space<vmem>>, vector<8x128xf32>
    %289 = arith.truncf %270 : vector<8x32xf32> to vector<8x32xbf16>
    %cst_70 = arith.constant dense<0.000000e+00> : vector<8x128xf32>
    %290 = tpu.matmul %289, %10, %cst_70 {dimension_numbers = #tpu.dot_dimension_numbers<[1], [0], [0], [1], [0, 0, 1, 1], [], []>} : vector<8x32xbf16>, vector<32x128xbf16>, vector<8x128xf32> -> vector<8x128xf32>
    %291 = arith.addf %288, %290 : vector<8x128xf32>
    %292 = vector.extract_strided_slice %286 {offsets = [0, 0], sizes = [8, 96], strides = [1, 1]} : vector<8x128xf32> to vector<8x96xf32>
    %293 = arith.negf %292 : vector<8x96xf32>
    %294 = math.exp %293 : vector<8x96xf32>
    %cst_71 = arith.constant 1.000000e+00 : f32
    %295 = vector.broadcast %cst_71 : f32 to vector<8x96xf32>
    %296 = arith.addf %295, %294 : vector<8x96xf32>
    %297 = arith.divf %295, %296 : vector<8x96xf32>
    %298 = vector.extract_strided_slice %286 {offsets = [0, 96], sizes = [8, 32], strides = [1, 1]} : vector<8x128xf32> to vector<8x32xf32>
    %299 = math.tanh %298 : vector<8x32xf32>
    %300 = vector.extract_strided_slice %297 {offsets = [0, 0], sizes = [8, 32], strides = [1, 1]} : vector<8x96xf32> to vector<8x32xf32>
    %301 = vector.extract_strided_slice %297 {offsets = [0, 32], sizes = [8, 32], strides = [1, 1]} : vector<8x96xf32> to vector<8x32xf32>
    %302 = vector.extract_strided_slice %297 {offsets = [0, 64], sizes = [8, 32], strides = [1, 1]} : vector<8x96xf32> to vector<8x32xf32>
    %303 = arith.mulf %301, %252 : vector<8x32xf32>
    %304 = arith.mulf %300, %299 : vector<8x32xf32>
    %305 = arith.addf %303, %304 : vector<8x32xf32>
    %306 = math.tanh %305 : vector<8x32xf32>
    %307 = arith.mulf %302, %306 : vector<8x32xf32>
    %308 = vector.extract_strided_slice %291 {offsets = [0, 0], sizes = [8, 96], strides = [1, 1]} : vector<8x128xf32> to vector<8x96xf32>
    %309 = arith.negf %308 : vector<8x96xf32>
    %310 = math.exp %309 : vector<8x96xf32>
    %cst_72 = arith.constant 1.000000e+00 : f32
    %311 = vector.broadcast %cst_72 : f32 to vector<8x96xf32>
    %312 = arith.addf %311, %310 : vector<8x96xf32>
    %313 = arith.divf %311, %312 : vector<8x96xf32>
    %314 = vector.extract_strided_slice %291 {offsets = [0, 96], sizes = [8, 32], strides = [1, 1]} : vector<8x128xf32> to vector<8x32xf32>
    %315 = math.tanh %314 : vector<8x32xf32>
    %316 = vector.extract_strided_slice %313 {offsets = [0, 0], sizes = [8, 32], strides = [1, 1]} : vector<8x96xf32> to vector<8x32xf32>
    %317 = vector.extract_strided_slice %313 {offsets = [0, 32], sizes = [8, 32], strides = [1, 1]} : vector<8x96xf32> to vector<8x32xf32>
    %318 = vector.extract_strided_slice %313 {offsets = [0, 64], sizes = [8, 32], strides = [1, 1]} : vector<8x96xf32> to vector<8x32xf32>
    %319 = arith.mulf %317, %268 : vector<8x32xf32>
    %320 = arith.mulf %316, %315 : vector<8x32xf32>
    %321 = arith.addf %319, %320 : vector<8x32xf32>
    %322 = math.tanh %321 : vector<8x32xf32>
    %323 = arith.mulf %318, %322 : vector<8x32xf32>
    %324 = arith.truncf %307 : vector<8x32xf32> to vector<8x32xbf16>
    %325 = arith.index_cast %278 : i32 to index
    %c0_73 = arith.constant 0 : index
    %326 = vector.load %arg4[%325, %c0_73] : memref<64x64xbf16, #tpu.memory_space<vmem>>, vector<8x32xbf16>
    tpu.vector_store %arg4[%325, %c0_73], %324 {strides = array<i32>} : memref<64x64xbf16, #tpu.memory_space<vmem>>, vector<8x32xbf16>,
    %327 = arith.truncf %323 : vector<8x32xf32> to vector<8x32xbf16>
    %328 = arith.index_cast %281 : i32 to index
    %c32_74 = arith.constant 32 : index
    %329 = vector.load %arg4[%328, %c32_74] : memref<64x64xbf16, #tpu.memory_space<vmem>>, vector<8x32xbf16>
    tpu.vector_store %arg4[%328, %c32_74], %327 {strides = array<i32>} : memref<64x64xbf16, #tpu.memory_space<vmem>>, vector<8x32xbf16>,
    %c6_i32 = arith.constant 6 : i32
    %c8_i32_75 = arith.constant 8 : i32
    %330 = arith.muli %c6_i32, %c8_i32_75 : i32
    %331 = tpu.assume_multiple %330, 8 : i32
    %c7_i32_76 = arith.constant 7 : i32
    %332 = arith.subi %c7_i32_76, %c6_i32 : i32
    %c8_i32_77 = arith.constant 8 : i32
    %333 = arith.muli %332, %c8_i32_77 : i32
    %334 = tpu.assume_multiple %333, 8 : i32
    %335 = arith.index_cast %331 : i32 to index
    %c0_78 = arith.constant 0 : index
    %336 = vector.load %arg7[%335, %c0_78] : memref<64x256xf32, #tpu.memory_space<vmem>>, vector<8x128xf32>
    %337 = arith.truncf %307 : vector<8x32xf32> to vector<8x32xbf16>
    %cst_79 = arith.constant dense<0.000000e+00> : vector<8x128xf32>
    %338 = tpu.matmul %337, %8, %cst_79 {dimension_numbers = #tpu.dot_dimension_numbers<[1], [0], [0], [1], [0, 0, 1, 1], [], []>} : vector<8x32xbf16>, vector<32x128xbf16>, vector<8x128xf32> -> vector<8x128xf32>
    %339 = arith.addf %336, %338 : vector<8x128xf32>
    %340 = arith.index_cast %334 : i32 to index
    %c128_80 = arith.constant 128 : index
    %341 = vector.load %arg7[%340, %c128_80] : memref<64x256xf32, #tpu.memory_space<vmem>>, vector<8x128xf32>
    %342 = arith.truncf %323 : vector<8x32xf32> to vector<8x32xbf16>
    %cst_81 = arith.constant dense<0.000000e+00> : vector<8x128xf32>
    %343 = tpu.matmul %342, %10, %cst_81 {dimension_numbers = #tpu.dot_dimension_numbers<[1], [0], [0], [1], [0, 0, 1, 1], [], []>} : vector<8x32xbf16>, vector<32x128xbf16>, vector<8x128xf32> -> vector<8x128xf32>
    %344 = arith.addf %341, %343 : vector<8x128xf32>
    %345 = vector.extract_strided_slice %339 {offsets = [0, 0], sizes = [8, 96], strides = [1, 1]} : vector<8x128xf32> to vector<8x96xf32>
    %346 = arith.negf %345 : vector<8x96xf32>
    %347 = math.exp %346 : vector<8x96xf32>
    %cst_82 = arith.constant 1.000000e+00 : f32
    %348 = vector.broadcast %cst_82 : f32 to vector<8x96xf32>
    %349 = arith.addf %348, %347 : vector<8x96xf32>
    %350 = arith.divf %348, %349 : vector<8x96xf32>
    %351 = vector.extract_strided_slice %339 {offsets = [0, 96], sizes = [8, 32], strides = [1, 1]} : vector<8x128xf32> to vector<8x32xf32>
    %352 = math.tanh %351 : vector<8x32xf32>
    %353 = vector.extract_strided_slice %350 {offsets = [0, 0], sizes = [8, 32], strides = [1, 1]} : vector<8x96xf32> to vector<8x32xf32>
    %354 = vector.extract_strided_slice %350 {offsets = [0, 32], sizes = [8, 32], strides = [1, 1]} : vector<8x96xf32> to vector<8x32xf32>
    %355 = vector.extract_strided_slice %350 {offsets = [0, 64], sizes = [8, 32], strides = [1, 1]} : vector<8x96xf32> to vector<8x32xf32>
    %356 = arith.mulf %354, %305 : vector<8x32xf32>
    %357 = arith.mulf %353, %352 : vector<8x32xf32>
    %358 = arith.addf %356, %357 : vector<8x32xf32>
    %359 = math.tanh %358 : vector<8x32xf32>
    %360 = arith.mulf %355, %359 : vector<8x32xf32>
    %361 = vector.extract_strided_slice %344 {offsets = [0, 0], sizes = [8, 96], strides = [1, 1]} : vector<8x128xf32> to vector<8x96xf32>
    %362 = arith.negf %361 : vector<8x96xf32>
    %363 = math.exp %362 : vector<8x96xf32>
    %cst_83 = arith.constant 1.000000e+00 : f32
    %364 = vector.broadcast %cst_83 : f32 to vector<8x96xf32>
    %365 = arith.addf %364, %363 : vector<8x96xf32>
    %366 = arith.divf %364, %365 : vector<8x96xf32>
    %367 = vector.extract_strided_slice %344 {offsets = [0, 96], sizes = [8, 32], strides = [1, 1]} : vector<8x128xf32> to vector<8x32xf32>
    %368 = math.tanh %367 : vector<8x32xf32>
    %369 = vector.extract_strided_slice %366 {offsets = [0, 0], sizes = [8, 32], strides = [1, 1]} : vector<8x96xf32> to vector<8x32xf32>
    %370 = vector.extract_strided_slice %366 {offsets = [0, 32], sizes = [8, 32], strides = [1, 1]} : vector<8x96xf32> to vector<8x32xf32>
    %371 = vector.extract_strided_slice %366 {offsets = [0, 64], sizes = [8, 32], strides = [1, 1]} : vector<8x96xf32> to vector<8x32xf32>
    %372 = arith.mulf %370, %321 : vector<8x32xf32>
    %373 = arith.mulf %369, %368 : vector<8x32xf32>
    %374 = arith.addf %372, %373 : vector<8x32xf32>
    %375 = math.tanh %374 : vector<8x32xf32>
    %376 = arith.mulf %371, %375 : vector<8x32xf32>
    %377 = arith.truncf %360 : vector<8x32xf32> to vector<8x32xbf16>
    %378 = arith.index_cast %331 : i32 to index
    %c0_84 = arith.constant 0 : index
    %379 = vector.load %arg4[%378, %c0_84] : memref<64x64xbf16, #tpu.memory_space<vmem>>, vector<8x32xbf16>
    tpu.vector_store %arg4[%378, %c0_84], %377 {strides = array<i32>} : memref<64x64xbf16, #tpu.memory_space<vmem>>, vector<8x32xbf16>,
    %380 = arith.truncf %376 : vector<8x32xf32> to vector<8x32xbf16>
    %381 = arith.index_cast %334 : i32 to index
    %c32_85 = arith.constant 32 : index
    %382 = vector.load %arg4[%381, %c32_85] : memref<64x64xbf16, #tpu.memory_space<vmem>>, vector<8x32xbf16>
    tpu.vector_store %arg4[%381, %c32_85], %380 {strides = array<i32>} : memref<64x64xbf16, #tpu.memory_space<vmem>>, vector<8x32xbf16>,
    %c7_i32_86 = arith.constant 7 : i32
    %c8_i32_87 = arith.constant 8 : i32
    %383 = arith.muli %c7_i32_86, %c8_i32_87 : i32
    %384 = tpu.assume_multiple %383, 8 : i32
    %c7_i32_88 = arith.constant 7 : i32
    %385 = arith.subi %c7_i32_88, %c7_i32_86 : i32
    %c8_i32_89 = arith.constant 8 : i32
    %386 = arith.muli %385, %c8_i32_89 : i32
    %387 = tpu.assume_multiple %386, 8 : i32
    %388 = arith.index_cast %384 : i32 to index
    %c0_90 = arith.constant 0 : index
    %389 = vector.load %arg7[%388, %c0_90] : memref<64x256xf32, #tpu.memory_space<vmem>>, vector<8x128xf32>
    %390 = arith.truncf %360 : vector<8x32xf32> to vector<8x32xbf16>
    %cst_91 = arith.constant dense<0.000000e+00> : vector<8x128xf32>
    %391 = tpu.matmul %390, %8, %cst_91 {dimension_numbers = #tpu.dot_dimension_numbers<[1], [0], [0], [1], [0, 0, 1, 1], [], []>} : vector<8x32xbf16>, vector<32x128xbf16>, vector<8x128xf32> -> vector<8x128xf32>
    %392 = arith.addf %389, %391 : vector<8x128xf32>
    %393 = arith.index_cast %387 : i32 to index
    %c128_92 = arith.constant 128 : index
    %394 = vector.load %arg7[%393, %c128_92] : memref<64x256xf32, #tpu.memory_space<vmem>>, vector<8x128xf32>
    %395 = arith.truncf %376 : vector<8x32xf32> to vector<8x32xbf16>
    %cst_93 = arith.constant dense<0.000000e+00> : vector<8x128xf32>
    %396 = tpu.matmul %395, %10, %cst_93 {dimension_numbers = #tpu.dot_dimension_numbers<[1], [0], [0], [1], [0, 0, 1, 1], [], []>} : vector<8x32xbf16>, vector<32x128xbf16>, vector<8x128xf32> -> vector<8x128xf32>
    %397 = arith.addf %394, %396 : vector<8x128xf32>
    %398 = vector.extract_strided_slice %392 {offsets = [0, 0], sizes = [8, 96], strides = [1, 1]} : vector<8x128xf32> to vector<8x96xf32>
    %399 = arith.negf %398 : vector<8x96xf32>
    %400 = math.exp %399 : vector<8x96xf32>
    %cst_94 = arith.constant 1.000000e+00 : f32
    %401 = vector.broadcast %cst_94 : f32 to vector<8x96xf32>
    %402 = arith.addf %401, %400 : vector<8x96xf32>
    %403 = arith.divf %401, %402 : vector<8x96xf32>
    %404 = vector.extract_strided_slice %392 {offsets = [0, 96], sizes = [8, 32], strides = [1, 1]} : vector<8x128xf32> to vector<8x32xf32>
    %405 = math.tanh %404 : vector<8x32xf32>
    %406 = vector.extract_strided_slice %403 {offsets = [0, 0], sizes = [8, 32], strides = [1, 1]} : vector<8x96xf32> to vector<8x32xf32>
    %407 = vector.extract_strided_slice %403 {offsets = [0, 32], sizes = [8, 32], strides = [1, 1]} : vector<8x96xf32> to vector<8x32xf32>
    %408 = vector.extract_strided_slice %403 {offsets = [0, 64], sizes = [8, 32], strides = [1, 1]} : vector<8x96xf32> to vector<8x32xf32>
    %409 = arith.mulf %407, %358 : vector<8x32xf32>
    %410 = arith.mulf %406, %405 : vector<8x32xf32>
    %411 = arith.addf %409, %410 : vector<8x32xf32>
    %412 = math.tanh %411 : vector<8x32xf32>
    %413 = arith.mulf %408, %412 : vector<8x32xf32>
    %414 = vector.extract_strided_slice %397 {offsets = [0, 0], sizes = [8, 96], strides = [1, 1]} : vector<8x128xf32> to vector<8x96xf32>
    %415 = arith.negf %414 : vector<8x96xf32>
    %416 = math.exp %415 : vector<8x96xf32>
    %cst_95 = arith.constant 1.000000e+00 : f32
    %417 = vector.broadcast %cst_95 : f32 to vector<8x96xf32>
    %418 = arith.addf %417, %416 : vector<8x96xf32>
    %419 = arith.divf %417, %418 : vector<8x96xf32>
    %420 = vector.extract_strided_slice %397 {offsets = [0, 96], sizes = [8, 32], strides = [1, 1]} : vector<8x128xf32> to vector<8x32xf32>
    %421 = math.tanh %420 : vector<8x32xf32>
    %422 = vector.extract_strided_slice %419 {offsets = [0, 0], sizes = [8, 32], strides = [1, 1]} : vector<8x96xf32> to vector<8x32xf32>
    %423 = vector.extract_strided_slice %419 {offsets = [0, 32], sizes = [8, 32], strides = [1, 1]} : vector<8x96xf32> to vector<8x32xf32>
    %424 = vector.extract_strided_slice %419 {offsets = [0, 64], sizes = [8, 32], strides = [1, 1]} : vector<8x96xf32> to vector<8x32xf32>
    %425 = arith.mulf %423, %374 : vector<8x32xf32>
    %426 = arith.mulf %422, %421 : vector<8x32xf32>
    %427 = arith.addf %425, %426 : vector<8x32xf32>
    %428 = math.tanh %427 : vector<8x32xf32>
    %429 = arith.mulf %424, %428 : vector<8x32xf32>
    %430 = arith.truncf %413 : vector<8x32xf32> to vector<8x32xbf16>
    %431 = arith.index_cast %384 : i32 to index
    %c0_96 = arith.constant 0 : index
    %432 = vector.load %arg4[%431, %c0_96] : memref<64x64xbf16, #tpu.memory_space<vmem>>, vector<8x32xbf16>
    tpu.vector_store %arg4[%431, %c0_96], %430 {strides = array<i32>} : memref<64x64xbf16, #tpu.memory_space<vmem>>, vector<8x32xbf16>,
    %433 = arith.truncf %429 : vector<8x32xf32> to vector<8x32xbf16>
    %434 = arith.index_cast %387 : i32 to index
    %c32_97 = arith.constant 32 : index
    %435 = vector.load %arg4[%434, %c32_97] : memref<64x64xbf16, #tpu.memory_space<vmem>>, vector<8x32xbf16>
    tpu.vector_store %arg4[%434, %c32_97], %433 {strides = array<i32>} : memref<64x64xbf16, #tpu.memory_space<vmem>>, vector<8x32xbf16>,
    %c8_i32_98 = arith.constant 8 : i32
    %c0_99 = arith.constant 0 : index
    %c0_100 = arith.constant 0 : index
    %c0_101 = arith.constant 0 : index
    %436 = vector.load %arg5[%c0_99, %c0_100, %c0_101] : memref<2x8x32xf32, #tpu.memory_space<vmem>>, vector<1x8x32xf32>
    %437 = vector.shape_cast %436 : vector<1x8x32xf32> to vector<8x32xf32>
    %438 = vector.shape_cast %413 : vector<8x32xf32> to vector<1x8x32xf32>
    tpu.vector_store %arg5[%c0_99, %c0_100, %c0_101], %438 {strides = array<i32>} : memref<2x8x32xf32, #tpu.memory_space<vmem>>, vector<1x8x32xf32>,
    %c1_102 = arith.constant 1 : index
    %c0_103 = arith.constant 0 : index
    %c0_104 = arith.constant 0 : index
    %439 = vector.load %arg5[%c1_102, %c0_103, %c0_104] : memref<2x8x32xf32, #tpu.memory_space<vmem>>, vector<1x8x32xf32>
    %440 = vector.shape_cast %439 : vector<1x8x32xf32> to vector<8x32xf32>
    %441 = vector.shape_cast %429 : vector<8x32xf32> to vector<1x8x32xf32>
    tpu.vector_store %arg5[%c1_102, %c0_103, %c0_104], %441 {strides = array<i32>} : memref<2x8x32xf32, #tpu.memory_space<vmem>>, vector<1x8x32xf32>,
    %c0_105 = arith.constant 0 : index
    %c0_106 = arith.constant 0 : index
    %c0_107 = arith.constant 0 : index
    %442 = vector.load %arg6[%c0_105, %c0_106, %c0_107] : memref<2x8x32xf32, #tpu.memory_space<vmem>>, vector<1x8x32xf32>
    %443 = vector.shape_cast %442 : vector<1x8x32xf32> to vector<8x32xf32>
    %444 = vector.shape_cast %411 : vector<8x32xf32> to vector<1x8x32xf32>
    tpu.vector_store %arg6[%c0_105, %c0_106, %c0_107], %444 {strides = array<i32>} : memref<2x8x32xf32, #tpu.memory_space<vmem>>, vector<1x8x32xf32>,
    %c1_108 = arith.constant 1 : index
    %c0_109 = arith.constant 0 : index
    %c0_110 = arith.constant 0 : index
    %445 = vector.load %arg6[%c1_108, %c0_109, %c0_110] : memref<2x8x32xf32, #tpu.memory_space<vmem>>, vector<1x8x32xf32>
    %446 = vector.shape_cast %445 : vector<1x8x32xf32> to vector<8x32xf32>
    %447 = vector.shape_cast %427 : vector<8x32xf32> to vector<1x8x32xf32>
    tpu.vector_store %arg6[%c1_108, %c0_109, %c0_110], %447 {strides = array<i32>} : memref<2x8x32xf32, #tpu.memory_space<vmem>>, vector<1x8x32xf32>,
    return
  }
}

module attributes {stable_mosaic.version = 11 : i64} {
  func.func @_bilstm_layer_kernel(%arg0: memref<64x64xbf16, #tpu.memory_space<vmem>>, %arg1: memref<64x256xbf16, #tpu.memory_space<vmem>>, %arg2: memref<2x32x128xbf16, #tpu.memory_space<vmem>>, %arg3: memref<1x256xf32, #tpu.memory_space<vmem>>, %arg4: memref<64x64xbf16, #tpu.memory_space<vmem>>, %arg5: memref<2x8x32xf32, #tpu.memory_space<vmem>>, %arg6: memref<2x8x32xf32, #tpu.memory_space<vmem>>, %arg7: memref<64x256xf32, #tpu.memory_space<vmem>>) attributes {dimension_semantics = [], scalar_prefetch = 0 : i64, scratch_operands = 1 : i64, tpu.core_type = #tpu.core_type<tc>} {
    %c0 = arith.constant 0 : index
    %c0_0 = arith.constant 0 : index
    %0 = vector.load %arg0[%c0, %c0_0] : memref<64x64xbf16, #tpu.memory_space<vmem>>, vector<64x64xbf16>
    %c0_1 = arith.constant 0 : index
    %c0_2 = arith.constant 0 : index
    %1 = vector.load %arg1[%c0_1, %c0_2] : memref<64x256xbf16, #tpu.memory_space<vmem>>, vector<64x256xbf16>
    %cst = arith.constant dense<0.000000e+00> : vector<64x256xf32>
    %2 = tpu.matmul %0, %1, %cst {dimension_numbers = #tpu.dot_dimension_numbers<[1], [0], [0], [1], [0, 0, 1, 1], [], []>} : vector<64x64xbf16>, vector<64x256xbf16>, vector<64x256xf32> -> vector<64x256xf32>
    %c0_3 = arith.constant 0 : index
    %c0_4 = arith.constant 0 : index
    %3 = vector.load %arg3[%c0_3, %c0_4] : memref<1x256xf32, #tpu.memory_space<vmem>>, vector<1x256xf32>
    %4 = vector.broadcast %3 : vector<1x256xf32> to vector<64x256xf32>
    %5 = arith.addf %2, %4 : vector<64x256xf32>
    %c0_5 = arith.constant 0 : index
    %c0_6 = arith.constant 0 : index
    %6 = vector.load %arg7[%c0_5, %c0_6] : memref<64x256xf32, #tpu.memory_space<vmem>>, vector<64x256xf32>
    tpu.vector_store %arg7[%c0_5, %c0_6], %5 {strides = array<i32>} : memref<64x256xf32, #tpu.memory_space<vmem>>, vector<64x256xf32>,
    %c0_7 = arith.constant 0 : index
    %c0_8 = arith.constant 0 : index
    %c0_9 = arith.constant 0 : index
    %7 = vector.load %arg2[%c0_7, %c0_8, %c0_9] : memref<2x32x128xbf16, #tpu.memory_space<vmem>>, vector<1x32x128xbf16>
    %8 = vector.shape_cast %7 : vector<1x32x128xbf16> to vector<32x128xbf16>
    %c1 = arith.constant 1 : index
    %c0_10 = arith.constant 0 : index
    %c0_11 = arith.constant 0 : index
    %9 = vector.load %arg2[%c1, %c0_10, %c0_11] : memref<2x32x128xbf16, #tpu.memory_space<vmem>>, vector<1x32x128xbf16>
    %10 = vector.shape_cast %9 : vector<1x32x128xbf16> to vector<32x128xbf16>
    %cst_12 = arith.constant 0.000000e+00 : f32
    %11 = vector.broadcast %cst_12 : f32 to vector<8x32xf32>
    %c0_i32 = arith.constant 0 : i32
    %c8_i32 = arith.constant 8 : i32
    %12 = arith.muli %c0_i32, %c8_i32 : i32
    %13 = tpu.assume_multiple %12, 8 : i32
    %c7_i32 = arith.constant 7 : i32
    %14 = arith.subi %c7_i32, %c0_i32 : i32
    %c8_i32_13 = arith.constant 8 : i32
    %15 = arith.muli %14, %c8_i32_13 : i32
    %16 = tpu.assume_multiple %15, 8 : i32
    %17 = arith.index_cast %13 : i32 to index
    %c0_14 = arith.constant 0 : index
    %18 = vector.load %arg7[%17, %c0_14] : memref<64x256xf32, #tpu.memory_space<vmem>>, vector<8x128xf32>
    %19 = arith.truncf %11 : vector<8x32xf32> to vector<8x32xbf16>
    %cst_15 = arith.constant dense<0.000000e+00> : vector<8x128xf32>
    %20 = tpu.matmul %19, %8, %cst_15 {dimension_numbers = #tpu.dot_dimension_numbers<[1], [0], [0], [1], [0, 0, 1, 1], [], []>} : vector<8x32xbf16>, vector<32x128xbf16>, vector<8x128xf32> -> vector<8x128xf32>
    %21 = arith.addf %18, %20 : vector<8x128xf32>
    %22 = arith.index_cast %16 : i32 to index
    %c128 = arith.constant 128 : index
    %23 = vector.load %arg7[%22, %c128] : memref<64x256xf32, #tpu.memory_space<vmem>>, vector<8x128xf32>
    %24 = arith.truncf %11 : vector<8x32xf32> to vector<8x32xbf16>
    %cst_16 = arith.constant dense<0.000000e+00> : vector<8x128xf32>
    %25 = tpu.matmul %24, %10, %cst_16 {dimension_numbers = #tpu.dot_dimension_numbers<[1], [0], [0], [1], [0, 0, 1, 1], [], []>} : vector<8x32xbf16>, vector<32x128xbf16>, vector<8x128xf32> -> vector<8x128xf32>
    %26 = arith.addf %23, %25 : vector<8x128xf32>
    %27 = vector.extract_strided_slice %21 {offsets = [0, 0], sizes = [8, 96], strides = [1, 1]} : vector<8x128xf32> to vector<8x96xf32>
    %28 = arith.negf %27 : vector<8x96xf32>
    %29 = math.exp %28 : vector<8x96xf32>
    %cst_17 = arith.constant 1.000000e+00 : f32
    %30 = vector.broadcast %cst_17 : f32 to vector<8x96xf32>
    %31 = arith.addf %30, %29 : vector<8x96xf32>
    %32 = arith.divf %30, %31 : vector<8x96xf32>
    %33 = vector.extract_strided_slice %21 {offsets = [0, 96], sizes = [8, 32], strides = [1, 1]} : vector<8x128xf32> to vector<8x32xf32>
    %34 = math.tanh %33 : vector<8x32xf32>
    %35 = vector.extract_strided_slice %32 {offsets = [0, 0], sizes = [8, 32], strides = [1, 1]} : vector<8x96xf32> to vector<8x32xf32>
    %36 = vector.extract_strided_slice %32 {offsets = [0, 32], sizes = [8, 32], strides = [1, 1]} : vector<8x96xf32> to vector<8x32xf32>
    %37 = vector.extract_strided_slice %32 {offsets = [0, 64], sizes = [8, 32], strides = [1, 1]} : vector<8x96xf32> to vector<8x32xf32>
    %38 = arith.mulf %36, %11 : vector<8x32xf32>
    %39 = arith.mulf %35, %34 : vector<8x32xf32>
    %40 = arith.addf %38, %39 : vector<8x32xf32>
    %41 = math.tanh %40 : vector<8x32xf32>
    %42 = arith.mulf %37, %41 : vector<8x32xf32>
    %43 = vector.extract_strided_slice %26 {offsets = [0, 0], sizes = [8, 96], strides = [1, 1]} : vector<8x128xf32> to vector<8x96xf32>
    %44 = arith.negf %43 : vector<8x96xf32>
    %45 = math.exp %44 : vector<8x96xf32>
    %cst_18 = arith.constant 1.000000e+00 : f32
    %46 = vector.broadcast %cst_18 : f32 to vector<8x96xf32>
    %47 = arith.addf %46, %45 : vector<8x96xf32>
    %48 = arith.divf %46, %47 : vector<8x96xf32>
    %49 = vector.extract_strided_slice %26 {offsets = [0, 96], sizes = [8, 32], strides = [1, 1]} : vector<8x128xf32> to vector<8x32xf32>
    %50 = math.tanh %49 : vector<8x32xf32>
    %51 = vector.extract_strided_slice %48 {offsets = [0, 0], sizes = [8, 32], strides = [1, 1]} : vector<8x96xf32> to vector<8x32xf32>
    %52 = vector.extract_strided_slice %48 {offsets = [0, 32], sizes = [8, 32], strides = [1, 1]} : vector<8x96xf32> to vector<8x32xf32>
    %53 = vector.extract_strided_slice %48 {offsets = [0, 64], sizes = [8, 32], strides = [1, 1]} : vector<8x96xf32> to vector<8x32xf32>
    %54 = arith.mulf %52, %11 : vector<8x32xf32>
    %55 = arith.mulf %51, %50 : vector<8x32xf32>
    %56 = arith.addf %54, %55 : vector<8x32xf32>
    %57 = math.tanh %56 : vector<8x32xf32>
    %58 = arith.mulf %53, %57 : vector<8x32xf32>
    %59 = arith.truncf %42 : vector<8x32xf32> to vector<8x32xbf16>
    %60 = arith.index_cast %13 : i32 to index
    %c0_19 = arith.constant 0 : index
    %61 = vector.load %arg4[%60, %c0_19] : memref<64x64xbf16, #tpu.memory_space<vmem>>, vector<8x32xbf16>
    tpu.vector_store %arg4[%60, %c0_19], %59 {strides = array<i32>} : memref<64x64xbf16, #tpu.memory_space<vmem>>, vector<8x32xbf16>,
    %62 = arith.truncf %58 : vector<8x32xf32> to vector<8x32xbf16>
    %63 = arith.index_cast %16 : i32 to index
    %c32 = arith.constant 32 : index
    %64 = vector.load %arg4[%63, %c32] : memref<64x64xbf16, #tpu.memory_space<vmem>>, vector<8x32xbf16>
    tpu.vector_store %arg4[%63, %c32], %62 {strides = array<i32>} : memref<64x64xbf16, #tpu.memory_space<vmem>>, vector<8x32xbf16>,
    %c1_i32 = arith.constant 1 : i32
    %c8_i32_20 = arith.constant 8 : i32
    %65 = arith.muli %c1_i32, %c8_i32_20 : i32
    %66 = tpu.assume_multiple %65, 8 : i32
    %c7_i32_21 = arith.constant 7 : i32
    %67 = arith.subi %c7_i32_21, %c1_i32 : i32
    %c8_i32_22 = arith.constant 8 : i32
    %68 = arith.muli %67, %c8_i32_22 : i32
    %69 = tpu.assume_multiple %68, 8 : i32
    %70 = arith.index_cast %66 : i32 to index
    %c0_23 = arith.constant 0 : index
    %71 = vector.load %arg7[%70, %c0_23] : memref<64x256xf32, #tpu.memory_space<vmem>>, vector<8x128xf32>
    %72 = arith.truncf %42 : vector<8x32xf32> to vector<8x32xbf16>
    %cst_24 = arith.constant dense<0.000000e+00> : vector<8x128xf32>
    %73 = tpu.matmul %72, %8, %cst_24 {dimension_numbers = #tpu.dot_dimension_numbers<[1], [0], [0], [1], [0, 0, 1, 1], [], []>} : vector<8x32xbf16>, vector<32x128xbf16>, vector<8x128xf32> -> vector<8x128xf32>
    %74 = arith.addf %71, %73 : vector<8x128xf32>
    %75 = arith.index_cast %69 : i32 to index
    %c128_25 = arith.constant 128 : index
    %76 = vector.load %arg7[%75, %c128_25] : memref<64x256xf32, #tpu.memory_space<vmem>>, vector<8x128xf32>
    %77 = arith.truncf %58 : vector<8x32xf32> to vector<8x32xbf16>
    %cst_26 = arith.constant dense<0.000000e+00> : vector<8x128xf32>
    %78 = tpu.matmul %77, %10, %cst_26 {dimension_numbers = #tpu.dot_dimension_numbers<[1], [0], [0], [1], [0, 0, 1, 1], [], []>} : vector<8x32xbf16>, vector<32x128xbf16>, vector<8x128xf32> -> vector<8x128xf32>
    %79 = arith.addf %76, %78 : vector<8x128xf32>
    %80 = vector.extract_strided_slice %74 {offsets = [0, 0], sizes = [8, 96], strides = [1, 1]} : vector<8x128xf32> to vector<8x96xf32>
    %81 = arith.negf %80 : vector<8x96xf32>
    %82 = math.exp %81 : vector<8x96xf32>
    %cst_27 = arith.constant 1.000000e+00 : f32
    %83 = vector.broadcast %cst_27 : f32 to vector<8x96xf32>
    %84 = arith.addf %83, %82 : vector<8x96xf32>
    %85 = arith.divf %83, %84 : vector<8x96xf32>
    %86 = vector.extract_strided_slice %74 {offsets = [0, 96], sizes = [8, 32], strides = [1, 1]} : vector<8x128xf32> to vector<8x32xf32>
    %87 = math.tanh %86 : vector<8x32xf32>
    %88 = vector.extract_strided_slice %85 {offsets = [0, 0], sizes = [8, 32], strides = [1, 1]} : vector<8x96xf32> to vector<8x32xf32>
    %89 = vector.extract_strided_slice %85 {offsets = [0, 32], sizes = [8, 32], strides = [1, 1]} : vector<8x96xf32> to vector<8x32xf32>
    %90 = vector.extract_strided_slice %85 {offsets = [0, 64], sizes = [8, 32], strides = [1, 1]} : vector<8x96xf32> to vector<8x32xf32>
    %91 = arith.mulf %89, %40 : vector<8x32xf32>
    %92 = arith.mulf %88, %87 : vector<8x32xf32>
    %93 = arith.addf %91, %92 : vector<8x32xf32>
    %94 = math.tanh %93 : vector<8x32xf32>
    %95 = arith.mulf %90, %94 : vector<8x32xf32>
    %96 = vector.extract_strided_slice %79 {offsets = [0, 0], sizes = [8, 96], strides = [1, 1]} : vector<8x128xf32> to vector<8x96xf32>
    %97 = arith.negf %96 : vector<8x96xf32>
    %98 = math.exp %97 : vector<8x96xf32>
    %cst_28 = arith.constant 1.000000e+00 : f32
    %99 = vector.broadcast %cst_28 : f32 to vector<8x96xf32>
    %100 = arith.addf %99, %98 : vector<8x96xf32>
    %101 = arith.divf %99, %100 : vector<8x96xf32>
    %102 = vector.extract_strided_slice %79 {offsets = [0, 96], sizes = [8, 32], strides = [1, 1]} : vector<8x128xf32> to vector<8x32xf32>
    %103 = math.tanh %102 : vector<8x32xf32>
    %104 = vector.extract_strided_slice %101 {offsets = [0, 0], sizes = [8, 32], strides = [1, 1]} : vector<8x96xf32> to vector<8x32xf32>
    %105 = vector.extract_strided_slice %101 {offsets = [0, 32], sizes = [8, 32], strides = [1, 1]} : vector<8x96xf32> to vector<8x32xf32>
    %106 = vector.extract_strided_slice %101 {offsets = [0, 64], sizes = [8, 32], strides = [1, 1]} : vector<8x96xf32> to vector<8x32xf32>
    %107 = arith.mulf %105, %56 : vector<8x32xf32>
    %108 = arith.mulf %104, %103 : vector<8x32xf32>
    %109 = arith.addf %107, %108 : vector<8x32xf32>
    %110 = math.tanh %109 : vector<8x32xf32>
    %111 = arith.mulf %106, %110 : vector<8x32xf32>
    %112 = arith.truncf %95 : vector<8x32xf32> to vector<8x32xbf16>
    %113 = arith.index_cast %66 : i32 to index
    %c0_29 = arith.constant 0 : index
    %114 = vector.load %arg4[%113, %c0_29] : memref<64x64xbf16, #tpu.memory_space<vmem>>, vector<8x32xbf16>
    tpu.vector_store %arg4[%113, %c0_29], %112 {strides = array<i32>} : memref<64x64xbf16, #tpu.memory_space<vmem>>, vector<8x32xbf16>,
    %115 = arith.truncf %111 : vector<8x32xf32> to vector<8x32xbf16>
    %116 = arith.index_cast %69 : i32 to index
    %c32_30 = arith.constant 32 : index
    %117 = vector.load %arg4[%116, %c32_30] : memref<64x64xbf16, #tpu.memory_space<vmem>>, vector<8x32xbf16>
    tpu.vector_store %arg4[%116, %c32_30], %115 {strides = array<i32>} : memref<64x64xbf16, #tpu.memory_space<vmem>>, vector<8x32xbf16>,
    %c2_i32 = arith.constant 2 : i32
    %c8_i32_31 = arith.constant 8 : i32
    %118 = arith.muli %c2_i32, %c8_i32_31 : i32
    %119 = tpu.assume_multiple %118, 8 : i32
    %c7_i32_32 = arith.constant 7 : i32
    %120 = arith.subi %c7_i32_32, %c2_i32 : i32
    %c8_i32_33 = arith.constant 8 : i32
    %121 = arith.muli %120, %c8_i32_33 : i32
    %122 = tpu.assume_multiple %121, 8 : i32
    %123 = arith.index_cast %119 : i32 to index
    %c0_34 = arith.constant 0 : index
    %124 = vector.load %arg7[%123, %c0_34] : memref<64x256xf32, #tpu.memory_space<vmem>>, vector<8x128xf32>
    %125 = arith.truncf %95 : vector<8x32xf32> to vector<8x32xbf16>
    %cst_35 = arith.constant dense<0.000000e+00> : vector<8x128xf32>
    %126 = tpu.matmul %125, %8, %cst_35 {dimension_numbers = #tpu.dot_dimension_numbers<[1], [0], [0], [1], [0, 0, 1, 1], [], []>} : vector<8x32xbf16>, vector<32x128xbf16>, vector<8x128xf32> -> vector<8x128xf32>
    %127 = arith.addf %124, %126 : vector<8x128xf32>
    %128 = arith.index_cast %122 : i32 to index
    %c128_36 = arith.constant 128 : index
    %129 = vector.load %arg7[%128, %c128_36] : memref<64x256xf32, #tpu.memory_space<vmem>>, vector<8x128xf32>
    %130 = arith.truncf %111 : vector<8x32xf32> to vector<8x32xbf16>
    %cst_37 = arith.constant dense<0.000000e+00> : vector<8x128xf32>
    %131 = tpu.matmul %130, %10, %cst_37 {dimension_numbers = #tpu.dot_dimension_numbers<[1], [0], [0], [1], [0, 0, 1, 1], [], []>} : vector<8x32xbf16>, vector<32x128xbf16>, vector<8x128xf32> -> vector<8x128xf32>
    %132 = arith.addf %129, %131 : vector<8x128xf32>
    %133 = vector.extract_strided_slice %127 {offsets = [0, 0], sizes = [8, 96], strides = [1, 1]} : vector<8x128xf32> to vector<8x96xf32>
    %134 = arith.negf %133 : vector<8x96xf32>
    %135 = math.exp %134 : vector<8x96xf32>
    %cst_38 = arith.constant 1.000000e+00 : f32
    %136 = vector.broadcast %cst_38 : f32 to vector<8x96xf32>
    %137 = arith.addf %136, %135 : vector<8x96xf32>
    %138 = arith.divf %136, %137 : vector<8x96xf32>
    %139 = vector.extract_strided_slice %127 {offsets = [0, 96], sizes = [8, 32], strides = [1, 1]} : vector<8x128xf32> to vector<8x32xf32>
    %140 = math.tanh %139 : vector<8x32xf32>
    %141 = vector.extract_strided_slice %138 {offsets = [0, 0], sizes = [8, 32], strides = [1, 1]} : vector<8x96xf32> to vector<8x32xf32>
    %142 = vector.extract_strided_slice %138 {offsets = [0, 32], sizes = [8, 32], strides = [1, 1]} : vector<8x96xf32> to vector<8x32xf32>
    %143 = vector.extract_strided_slice %138 {offsets = [0, 64], sizes = [8, 32], strides = [1, 1]} : vector<8x96xf32> to vector<8x32xf32>
    %144 = arith.mulf %142, %93 : vector<8x32xf32>
    %145 = arith.mulf %141, %140 : vector<8x32xf32>
    %146 = arith.addf %144, %145 : vector<8x32xf32>
    %147 = math.tanh %146 : vector<8x32xf32>
    %148 = arith.mulf %143, %147 : vector<8x32xf32>
    %149 = vector.extract_strided_slice %132 {offsets = [0, 0], sizes = [8, 96], strides = [1, 1]} : vector<8x128xf32> to vector<8x96xf32>
    %150 = arith.negf %149 : vector<8x96xf32>
    %151 = math.exp %150 : vector<8x96xf32>
    %cst_39 = arith.constant 1.000000e+00 : f32
    %152 = vector.broadcast %cst_39 : f32 to vector<8x96xf32>
    %153 = arith.addf %152, %151 : vector<8x96xf32>
    %154 = arith.divf %152, %153 : vector<8x96xf32>
    %155 = vector.extract_strided_slice %132 {offsets = [0, 96], sizes = [8, 32], strides = [1, 1]} : vector<8x128xf32> to vector<8x32xf32>
    %156 = math.tanh %155 : vector<8x32xf32>
    %157 = vector.extract_strided_slice %154 {offsets = [0, 0], sizes = [8, 32], strides = [1, 1]} : vector<8x96xf32> to vector<8x32xf32>
    %158 = vector.extract_strided_slice %154 {offsets = [0, 32], sizes = [8, 32], strides = [1, 1]} : vector<8x96xf32> to vector<8x32xf32>
    %159 = vector.extract_strided_slice %154 {offsets = [0, 64], sizes = [8, 32], strides = [1, 1]} : vector<8x96xf32> to vector<8x32xf32>
    %160 = arith.mulf %158, %109 : vector<8x32xf32>
    %161 = arith.mulf %157, %156 : vector<8x32xf32>
    %162 = arith.addf %160, %161 : vector<8x32xf32>
    %163 = math.tanh %162 : vector<8x32xf32>
    %164 = arith.mulf %159, %163 : vector<8x32xf32>
    %165 = arith.truncf %148 : vector<8x32xf32> to vector<8x32xbf16>
    %166 = arith.index_cast %119 : i32 to index
    %c0_40 = arith.constant 0 : index
    %167 = vector.load %arg4[%166, %c0_40] : memref<64x64xbf16, #tpu.memory_space<vmem>>, vector<8x32xbf16>
    tpu.vector_store %arg4[%166, %c0_40], %165 {strides = array<i32>} : memref<64x64xbf16, #tpu.memory_space<vmem>>, vector<8x32xbf16>,
    %168 = arith.truncf %164 : vector<8x32xf32> to vector<8x32xbf16>
    %169 = arith.index_cast %122 : i32 to index
    %c32_41 = arith.constant 32 : index
    %170 = vector.load %arg4[%169, %c32_41] : memref<64x64xbf16, #tpu.memory_space<vmem>>, vector<8x32xbf16>
    tpu.vector_store %arg4[%169, %c32_41], %168 {strides = array<i32>} : memref<64x64xbf16, #tpu.memory_space<vmem>>, vector<8x32xbf16>,
    %c3_i32 = arith.constant 3 : i32
    %c8_i32_42 = arith.constant 8 : i32
    %171 = arith.muli %c3_i32, %c8_i32_42 : i32
    %172 = tpu.assume_multiple %171, 8 : i32
    %c7_i32_43 = arith.constant 7 : i32
    %173 = arith.subi %c7_i32_43, %c3_i32 : i32
    %c8_i32_44 = arith.constant 8 : i32
    %174 = arith.muli %173, %c8_i32_44 : i32
    %175 = tpu.assume_multiple %174, 8 : i32
    %176 = arith.index_cast %172 : i32 to index
    %c0_45 = arith.constant 0 : index
    %177 = vector.load %arg7[%176, %c0_45] : memref<64x256xf32, #tpu.memory_space<vmem>>, vector<8x128xf32>
    %178 = arith.truncf %148 : vector<8x32xf32> to vector<8x32xbf16>
    %cst_46 = arith.constant dense<0.000000e+00> : vector<8x128xf32>
    %179 = tpu.matmul %178, %8, %cst_46 {dimension_numbers = #tpu.dot_dimension_numbers<[1], [0], [0], [1], [0, 0, 1, 1], [], []>} : vector<8x32xbf16>, vector<32x128xbf16>, vector<8x128xf32> -> vector<8x128xf32>
    %180 = arith.addf %177, %179 : vector<8x128xf32>
    %181 = arith.index_cast %175 : i32 to index
    %c128_47 = arith.constant 128 : index
    %182 = vector.load %arg7[%181, %c128_47] : memref<64x256xf32, #tpu.memory_space<vmem>>, vector<8x128xf32>
    %183 = arith.truncf %164 : vector<8x32xf32> to vector<8x32xbf16>
    %cst_48 = arith.constant dense<0.000000e+00> : vector<8x128xf32>
    %184 = tpu.matmul %183, %10, %cst_48 {dimension_numbers = #tpu.dot_dimension_numbers<[1], [0], [0], [1], [0, 0, 1, 1], [], []>} : vector<8x32xbf16>, vector<32x128xbf16>, vector<8x128xf32> -> vector<8x128xf32>
    %185 = arith.addf %182, %184 : vector<8x128xf32>
    %186 = vector.extract_strided_slice %180 {offsets = [0, 0], sizes = [8, 96], strides = [1, 1]} : vector<8x128xf32> to vector<8x96xf32>
    %187 = arith.negf %186 : vector<8x96xf32>
    %188 = math.exp %187 : vector<8x96xf32>
    %cst_49 = arith.constant 1.000000e+00 : f32
    %189 = vector.broadcast %cst_49 : f32 to vector<8x96xf32>
    %190 = arith.addf %189, %188 : vector<8x96xf32>
    %191 = arith.divf %189, %190 : vector<8x96xf32>
    %192 = vector.extract_strided_slice %180 {offsets = [0, 96], sizes = [8, 32], strides = [1, 1]} : vector<8x128xf32> to vector<8x32xf32>
    %193 = math.tanh %192 : vector<8x32xf32>
    %194 = vector.extract_strided_slice %191 {offsets = [0, 0], sizes = [8, 32], strides = [1, 1]} : vector<8x96xf32> to vector<8x32xf32>
    %195 = vector.extract_strided_slice %191 {offsets = [0, 32], sizes = [8, 32], strides = [1, 1]} : vector<8x96xf32> to vector<8x32xf32>
    %196 = vector.extract_strided_slice %191 {offsets = [0, 64], sizes = [8, 32], strides = [1, 1]} : vector<8x96xf32> to vector<8x32xf32>
    %197 = arith.mulf %195, %146 : vector<8x32xf32>
    %198 = arith.mulf %194, %193 : vector<8x32xf32>
    %199 = arith.addf %197, %198 : vector<8x32xf32>
    %200 = math.tanh %199 : vector<8x32xf32>
    %201 = arith.mulf %196, %200 : vector<8x32xf32>
    %202 = vector.extract_strided_slice %185 {offsets = [0, 0], sizes = [8, 96], strides = [1, 1]} : vector<8x128xf32> to vector<8x96xf32>
    %203 = arith.negf %202 : vector<8x96xf32>
    %204 = math.exp %203 : vector<8x96xf32>
    %cst_50 = arith.constant 1.000000e+00 : f32
    %205 = vector.broadcast %cst_50 : f32 to vector<8x96xf32>
    %206 = arith.addf %205, %204 : vector<8x96xf32>
    %207 = arith.divf %205, %206 : vector<8x96xf32>
    %208 = vector.extract_strided_slice %185 {offsets = [0, 96], sizes = [8, 32], strides = [1, 1]} : vector<8x128xf32> to vector<8x32xf32>
    %209 = math.tanh %208 : vector<8x32xf32>
    %210 = vector.extract_strided_slice %207 {offsets = [0, 0], sizes = [8, 32], strides = [1, 1]} : vector<8x96xf32> to vector<8x32xf32>
    %211 = vector.extract_strided_slice %207 {offsets = [0, 32], sizes = [8, 32], strides = [1, 1]} : vector<8x96xf32> to vector<8x32xf32>
    %212 = vector.extract_strided_slice %207 {offsets = [0, 64], sizes = [8, 32], strides = [1, 1]} : vector<8x96xf32> to vector<8x32xf32>
    %213 = arith.mulf %211, %162 : vector<8x32xf32>
    %214 = arith.mulf %210, %209 : vector<8x32xf32>
    %215 = arith.addf %213, %214 : vector<8x32xf32>
    %216 = math.tanh %215 : vector<8x32xf32>
    %217 = arith.mulf %212, %216 : vector<8x32xf32>
    %218 = arith.truncf %201 : vector<8x32xf32> to vector<8x32xbf16>
    %219 = arith.index_cast %172 : i32 to index
    %c0_51 = arith.constant 0 : index
    %220 = vector.load %arg4[%219, %c0_51] : memref<64x64xbf16, #tpu.memory_space<vmem>>, vector<8x32xbf16>
    tpu.vector_store %arg4[%219, %c0_51], %218 {strides = array<i32>} : memref<64x64xbf16, #tpu.memory_space<vmem>>, vector<8x32xbf16>,
    %221 = arith.truncf %217 : vector<8x32xf32> to vector<8x32xbf16>
    %222 = arith.index_cast %175 : i32 to index
    %c32_52 = arith.constant 32 : index
    %223 = vector.load %arg4[%222, %c32_52] : memref<64x64xbf16, #tpu.memory_space<vmem>>, vector<8x32xbf16>
    tpu.vector_store %arg4[%222, %c32_52], %221 {strides = array<i32>} : memref<64x64xbf16, #tpu.memory_space<vmem>>, vector<8x32xbf16>,
    %c4_i32 = arith.constant 4 : i32
    %c8_i32_53 = arith.constant 8 : i32
    %224 = arith.muli %c4_i32, %c8_i32_53 : i32
    %225 = tpu.assume_multiple %224, 8 : i32
    %c7_i32_54 = arith.constant 7 : i32
    %226 = arith.subi %c7_i32_54, %c4_i32 : i32
    %c8_i32_55 = arith.constant 8 : i32
    %227 = arith.muli %226, %c8_i32_55 : i32
    %228 = tpu.assume_multiple %227, 8 : i32
    %229 = arith.index_cast %225 : i32 to index
    %c0_56 = arith.constant 0 : index
    %230 = vector.load %arg7[%229, %c0_56] : memref<64x256xf32, #tpu.memory_space<vmem>>, vector<8x128xf32>
    %231 = arith.truncf %201 : vector<8x32xf32> to vector<8x32xbf16>
    %cst_57 = arith.constant dense<0.000000e+00> : vector<8x128xf32>
    %232 = tpu.matmul %231, %8, %cst_57 {dimension_numbers = #tpu.dot_dimension_numbers<[1], [0], [0], [1], [0, 0, 1, 1], [], []>} : vector<8x32xbf16>, vector<32x128xbf16>, vector<8x128xf32> -> vector<8x128xf32>
    %233 = arith.addf %230, %232 : vector<8x128xf32>
    %234 = arith.index_cast %228 : i32 to index
    %c128_58 = arith.constant 128 : index
    %235 = vector.load %arg7[%234, %c128_58] : memref<64x256xf32, #tpu.memory_space<vmem>>, vector<8x128xf32>
    %236 = arith.truncf %217 : vector<8x32xf32> to vector<8x32xbf16>
    %cst_59 = arith.constant dense<0.000000e+00> : vector<8x128xf32>
    %237 = tpu.matmul %236, %10, %cst_59 {dimension_numbers = #tpu.dot_dimension_numbers<[1], [0], [0], [1], [0, 0, 1, 1], [], []>} : vector<8x32xbf16>, vector<32x128xbf16>, vector<8x128xf32> -> vector<8x128xf32>
    %238 = arith.addf %235, %237 : vector<8x128xf32>
    %239 = vector.extract_strided_slice %233 {offsets = [0, 0], sizes = [8, 96], strides = [1, 1]} : vector<8x128xf32> to vector<8x96xf32>
    %240 = arith.negf %239 : vector<8x96xf32>
    %241 = math.exp %240 : vector<8x96xf32>
    %cst_60 = arith.constant 1.000000e+00 : f32
    %242 = vector.broadcast %cst_60 : f32 to vector<8x96xf32>
    %243 = arith.addf %242, %241 : vector<8x96xf32>
    %244 = arith.divf %242, %243 : vector<8x96xf32>
    %245 = vector.extract_strided_slice %233 {offsets = [0, 96], sizes = [8, 32], strides = [1, 1]} : vector<8x128xf32> to vector<8x32xf32>
    %246 = math.tanh %245 : vector<8x32xf32>
    %247 = vector.extract_strided_slice %244 {offsets = [0, 0], sizes = [8, 32], strides = [1, 1]} : vector<8x96xf32> to vector<8x32xf32>
    %248 = vector.extract_strided_slice %244 {offsets = [0, 32], sizes = [8, 32], strides = [1, 1]} : vector<8x96xf32> to vector<8x32xf32>
    %249 = vector.extract_strided_slice %244 {offsets = [0, 64], sizes = [8, 32], strides = [1, 1]} : vector<8x96xf32> to vector<8x32xf32>
    %250 = arith.mulf %248, %199 : vector<8x32xf32>
    %251 = arith.mulf %247, %246 : vector<8x32xf32>
    %252 = arith.addf %250, %251 : vector<8x32xf32>
    %253 = math.tanh %252 : vector<8x32xf32>
    %254 = arith.mulf %249, %253 : vector<8x32xf32>
    %255 = vector.extract_strided_slice %238 {offsets = [0, 0], sizes = [8, 96], strides = [1, 1]} : vector<8x128xf32> to vector<8x96xf32>
    %256 = arith.negf %255 : vector<8x96xf32>
    %257 = math.exp %256 : vector<8x96xf32>
    %cst_61 = arith.constant 1.000000e+00 : f32
    %258 = vector.broadcast %cst_61 : f32 to vector<8x96xf32>
    %259 = arith.addf %258, %257 : vector<8x96xf32>
    %260 = arith.divf %258, %259 : vector<8x96xf32>
    %261 = vector.extract_strided_slice %238 {offsets = [0, 96], sizes = [8, 32], strides = [1, 1]} : vector<8x128xf32> to vector<8x32xf32>
    %262 = math.tanh %261 : vector<8x32xf32>
    %263 = vector.extract_strided_slice %260 {offsets = [0, 0], sizes = [8, 32], strides = [1, 1]} : vector<8x96xf32> to vector<8x32xf32>
    %264 = vector.extract_strided_slice %260 {offsets = [0, 32], sizes = [8, 32], strides = [1, 1]} : vector<8x96xf32> to vector<8x32xf32>
    %265 = vector.extract_strided_slice %260 {offsets = [0, 64], sizes = [8, 32], strides = [1, 1]} : vector<8x96xf32> to vector<8x32xf32>
    %266 = arith.mulf %264, %215 : vector<8x32xf32>
    %267 = arith.mulf %263, %262 : vector<8x32xf32>
    %268 = arith.addf %266, %267 : vector<8x32xf32>
    %269 = math.tanh %268 : vector<8x32xf32>
    %270 = arith.mulf %265, %269 : vector<8x32xf32>
    %271 = arith.truncf %254 : vector<8x32xf32> to vector<8x32xbf16>
    %272 = arith.index_cast %225 : i32 to index
    %c0_62 = arith.constant 0 : index
    %273 = vector.load %arg4[%272, %c0_62] : memref<64x64xbf16, #tpu.memory_space<vmem>>, vector<8x32xbf16>
    tpu.vector_store %arg4[%272, %c0_62], %271 {strides = array<i32>} : memref<64x64xbf16, #tpu.memory_space<vmem>>, vector<8x32xbf16>,
    %274 = arith.truncf %270 : vector<8x32xf32> to vector<8x32xbf16>
    %275 = arith.index_cast %228 : i32 to index
    %c32_63 = arith.constant 32 : index
    %276 = vector.load %arg4[%275, %c32_63] : memref<64x64xbf16, #tpu.memory_space<vmem>>, vector<8x32xbf16>
    tpu.vector_store %arg4[%275, %c32_63], %274 {strides = array<i32>} : memref<64x64xbf16, #tpu.memory_space<vmem>>, vector<8x32xbf16>,
    %c5_i32 = arith.constant 5 : i32
    %c8_i32_64 = arith.constant 8 : i32
    %277 = arith.muli %c5_i32, %c8_i32_64 : i32
    %278 = tpu.assume_multiple %277, 8 : i32
    %c7_i32_65 = arith.constant 7 : i32
    %279 = arith.subi %c7_i32_65, %c5_i32 : i32
    %c8_i32_66 = arith.constant 8 : i32
    %280 = arith.muli %279, %c8_i32_66 : i32
    %281 = tpu.assume_multiple %280, 8 : i32
    %282 = arith.index_cast %278 : i32 to index
    %c0_67 = arith.constant 0 : index
    %283 = vector.load %arg7[%282, %c0_67] : memref<64x256xf32, #tpu.memory_space<vmem>>, vector<8x128xf32>
    %284 = arith.truncf %254 : vector<8x32xf32> to vector<8x32xbf16>
    %cst_68 = arith.constant dense<0.000000e+00> : vector<8x128xf32>
    %285 = tpu.matmul %284, %8, %cst_68 {dimension_numbers = #tpu.dot_dimension_numbers<[1], [0], [0], [1], [0, 0, 1, 1], [], []>} : vector<8x32xbf16>, vector<32x128xbf16>, vector<8x128xf32> -> vector<8x128xf32>
    %286 = arith.addf %283, %285 : vector<8x128xf32>
    %287 = arith.index_cast %281 : i32 to index
    %c128_69 = arith.constant 128 : index
    %288 = vector.load %arg7[%287, %c128_69] : memref<64x256xf32, #tpu.memory_space<vmem>>, vector<8x128xf32>
    %289 = arith.truncf %270 : vector<8x32xf32> to vector<8x32xbf16>
    %cst_70 = arith.constant dense<0.000000e+00> : vector<8x128xf32>
    %290 = tpu.matmul %289, %10, %cst_70 {dimension_numbers = #tpu.dot_dimension_numbers<[1], [0], [0], [1], [0, 0, 1, 1], [], []>} : vector<8x32xbf16>, vector<32x128xbf16>, vector<8x128xf32> -> vector<8x128xf32>
    %291 = arith.addf %288, %290 : vector<8x128xf32>
    %292 = vector.extract_strided_slice %286 {offsets = [0, 0], sizes = [8, 96], strides = [1, 1]} : vector<8x128xf32> to vector<8x96xf32>
    %293 = arith.negf %292 : vector<8x96xf32>
    %294 = math.exp %293 : vector<8x96xf32>
    %cst_71 = arith.constant 1.000000e+00 : f32
    %295 = vector.broadcast %cst_71 : f32 to vector<8x96xf32>
    %296 = arith.addf %295, %294 : vector<8x96xf32>
    %297 = arith.divf %295, %296 : vector<8x96xf32>
    %298 = vector.extract_strided_slice %286 {offsets = [0, 96], sizes = [8, 32], strides = [1, 1]} : vector<8x128xf32> to vector<8x32xf32>
    %299 = math.tanh %298 : vector<8x32xf32>
    %300 = vector.extract_strided_slice %297 {offsets = [0, 0], sizes = [8, 32], strides = [1, 1]} : vector<8x96xf32> to vector<8x32xf32>
    %301 = vector.extract_strided_slice %297 {offsets = [0, 32], sizes = [8, 32], strides = [1, 1]} : vector<8x96xf32> to vector<8x32xf32>
    %302 = vector.extract_strided_slice %297 {offsets = [0, 64], sizes = [8, 32], strides = [1, 1]} : vector<8x96xf32> to vector<8x32xf32>
    %303 = arith.mulf %301, %252 : vector<8x32xf32>
    %304 = arith.mulf %300, %299 : vector<8x32xf32>
    %305 = arith.addf %303, %304 : vector<8x32xf32>
    %306 = math.tanh %305 : vector<8x32xf32>
    %307 = arith.mulf %302, %306 : vector<8x32xf32>
    %308 = vector.extract_strided_slice %291 {offsets = [0, 0], sizes = [8, 96], strides = [1, 1]} : vector<8x128xf32> to vector<8x96xf32>
    %309 = arith.negf %308 : vector<8x96xf32>
    %310 = math.exp %309 : vector<8x96xf32>
    %cst_72 = arith.constant 1.000000e+00 : f32
    %311 = vector.broadcast %cst_72 : f32 to vector<8x96xf32>
    %312 = arith.addf %311, %310 : vector<8x96xf32>
    %313 = arith.divf %311, %312 : vector<8x96xf32>
    %314 = vector.extract_strided_slice %291 {offsets = [0, 96], sizes = [8, 32], strides = [1, 1]} : vector<8x128xf32> to vector<8x32xf32>
    %315 = math.tanh %314 : vector<8x32xf32>
    %316 = vector.extract_strided_slice %313 {offsets = [0, 0], sizes = [8, 32], strides = [1, 1]} : vector<8x96xf32> to vector<8x32xf32>
    %317 = vector.extract_strided_slice %313 {offsets = [0, 32], sizes = [8, 32], strides = [1, 1]} : vector<8x96xf32> to vector<8x32xf32>
    %318 = vector.extract_strided_slice %313 {offsets = [0, 64], sizes = [8, 32], strides = [1, 1]} : vector<8x96xf32> to vector<8x32xf32>
    %319 = arith.mulf %317, %268 : vector<8x32xf32>
    %320 = arith.mulf %316, %315 : vector<8x32xf32>
    %321 = arith.addf %319, %320 : vector<8x32xf32>
    %322 = math.tanh %321 : vector<8x32xf32>
    %323 = arith.mulf %318, %322 : vector<8x32xf32>
    %324 = arith.truncf %307 : vector<8x32xf32> to vector<8x32xbf16>
    %325 = arith.index_cast %278 : i32 to index
    %c0_73 = arith.constant 0 : index
    %326 = vector.load %arg4[%325, %c0_73] : memref<64x64xbf16, #tpu.memory_space<vmem>>, vector<8x32xbf16>
    tpu.vector_store %arg4[%325, %c0_73], %324 {strides = array<i32>} : memref<64x64xbf16, #tpu.memory_space<vmem>>, vector<8x32xbf16>,
    %327 = arith.truncf %323 : vector<8x32xf32> to vector<8x32xbf16>
    %328 = arith.index_cast %281 : i32 to index
    %c32_74 = arith.constant 32 : index
    %329 = vector.load %arg4[%328, %c32_74] : memref<64x64xbf16, #tpu.memory_space<vmem>>, vector<8x32xbf16>
    tpu.vector_store %arg4[%328, %c32_74], %327 {strides = array<i32>} : memref<64x64xbf16, #tpu.memory_space<vmem>>, vector<8x32xbf16>,
    %c6_i32 = arith.constant 6 : i32
    %c8_i32_75 = arith.constant 8 : i32
    %330 = arith.muli %c6_i32, %c8_i32_75 : i32
    %331 = tpu.assume_multiple %330, 8 : i32
    %c7_i32_76 = arith.constant 7 : i32
    %332 = arith.subi %c7_i32_76, %c6_i32 : i32
    %c8_i32_77 = arith.constant 8 : i32
    %333 = arith.muli %332, %c8_i32_77 : i32
    %334 = tpu.assume_multiple %333, 8 : i32
    %335 = arith.index_cast %331 : i32 to index
    %c0_78 = arith.constant 0 : index
    %336 = vector.load %arg7[%335, %c0_78] : memref<64x256xf32, #tpu.memory_space<vmem>>, vector<8x128xf32>
    %337 = arith.truncf %307 : vector<8x32xf32> to vector<8x32xbf16>
    %cst_79 = arith.constant dense<0.000000e+00> : vector<8x128xf32>
    %338 = tpu.matmul %337, %8, %cst_79 {dimension_numbers = #tpu.dot_dimension_numbers<[1], [0], [0], [1], [0, 0, 1, 1], [], []>} : vector<8x32xbf16>, vector<32x128xbf16>, vector<8x128xf32> -> vector<8x128xf32>
    %339 = arith.addf %336, %338 : vector<8x128xf32>
    %340 = arith.index_cast %334 : i32 to index
    %c128_80 = arith.constant 128 : index
    %341 = vector.load %arg7[%340, %c128_80] : memref<64x256xf32, #tpu.memory_space<vmem>>, vector<8x128xf32>
    %342 = arith.truncf %323 : vector<8x32xf32> to vector<8x32xbf16>
    %cst_81 = arith.constant dense<0.000000e+00> : vector<8x128xf32>
    %343 = tpu.matmul %342, %10, %cst_81 {dimension_numbers = #tpu.dot_dimension_numbers<[1], [0], [0], [1], [0, 0, 1, 1], [], []>} : vector<8x32xbf16>, vector<32x128xbf16>, vector<8x128xf32> -> vector<8x128xf32>
    %344 = arith.addf %341, %343 : vector<8x128xf32>
    %345 = vector.extract_strided_slice %339 {offsets = [0, 0], sizes = [8, 96], strides = [1, 1]} : vector<8x128xf32> to vector<8x96xf32>
    %346 = arith.negf %345 : vector<8x96xf32>
    %347 = math.exp %346 : vector<8x96xf32>
    %cst_82 = arith.constant 1.000000e+00 : f32
    %348 = vector.broadcast %cst_82 : f32 to vector<8x96xf32>
    %349 = arith.addf %348, %347 : vector<8x96xf32>
    %350 = arith.divf %348, %349 : vector<8x96xf32>
    %351 = vector.extract_strided_slice %339 {offsets = [0, 96], sizes = [8, 32], strides = [1, 1]} : vector<8x128xf32> to vector<8x32xf32>
    %352 = math.tanh %351 : vector<8x32xf32>
    %353 = vector.extract_strided_slice %350 {offsets = [0, 0], sizes = [8, 32], strides = [1, 1]} : vector<8x96xf32> to vector<8x32xf32>
    %354 = vector.extract_strided_slice %350 {offsets = [0, 32], sizes = [8, 32], strides = [1, 1]} : vector<8x96xf32> to vector<8x32xf32>
    %355 = vector.extract_strided_slice %350 {offsets = [0, 64], sizes = [8, 32], strides = [1, 1]} : vector<8x96xf32> to vector<8x32xf32>
    %356 = arith.mulf %354, %305 : vector<8x32xf32>
    %357 = arith.mulf %353, %352 : vector<8x32xf32>
    %358 = arith.addf %356, %357 : vector<8x32xf32>
    %359 = math.tanh %358 : vector<8x32xf32>
    %360 = arith.mulf %355, %359 : vector<8x32xf32>
    %361 = vector.extract_strided_slice %344 {offsets = [0, 0], sizes = [8, 96], strides = [1, 1]} : vector<8x128xf32> to vector<8x96xf32>
    %362 = arith.negf %361 : vector<8x96xf32>
    %363 = math.exp %362 : vector<8x96xf32>
    %cst_83 = arith.constant 1.000000e+00 : f32
    %364 = vector.broadcast %cst_83 : f32 to vector<8x96xf32>
    %365 = arith.addf %364, %363 : vector<8x96xf32>
    %366 = arith.divf %364, %365 : vector<8x96xf32>
    %367 = vector.extract_strided_slice %344 {offsets = [0, 96], sizes = [8, 32], strides = [1, 1]} : vector<8x128xf32> to vector<8x32xf32>
    %368 = math.tanh %367 : vector<8x32xf32>
    %369 = vector.extract_strided_slice %366 {offsets = [0, 0], sizes = [8, 32], strides = [1, 1]} : vector<8x96xf32> to vector<8x32xf32>
    %370 = vector.extract_strided_slice %366 {offsets = [0, 32], sizes = [8, 32], strides = [1, 1]} : vector<8x96xf32> to vector<8x32xf32>
    %371 = vector.extract_strided_slice %366 {offsets = [0, 64], sizes = [8, 32], strides = [1, 1]} : vector<8x96xf32> to vector<8x32xf32>
    %372 = arith.mulf %370, %321 : vector<8x32xf32>
    %373 = arith.mulf %369, %368 : vector<8x32xf32>
    %374 = arith.addf %372, %373 : vector<8x32xf32>
    %375 = math.tanh %374 : vector<8x32xf32>
    %376 = arith.mulf %371, %375 : vector<8x32xf32>
    %377 = arith.truncf %360 : vector<8x32xf32> to vector<8x32xbf16>
    %378 = arith.index_cast %331 : i32 to index
    %c0_84 = arith.constant 0 : index
    %379 = vector.load %arg4[%378, %c0_84] : memref<64x64xbf16, #tpu.memory_space<vmem>>, vector<8x32xbf16>
    tpu.vector_store %arg4[%378, %c0_84], %377 {strides = array<i32>} : memref<64x64xbf16, #tpu.memory_space<vmem>>, vector<8x32xbf16>,
    %380 = arith.truncf %376 : vector<8x32xf32> to vector<8x32xbf16>
    %381 = arith.index_cast %334 : i32 to index
    %c32_85 = arith.constant 32 : index
    %382 = vector.load %arg4[%381, %c32_85] : memref<64x64xbf16, #tpu.memory_space<vmem>>, vector<8x32xbf16>
    tpu.vector_store %arg4[%381, %c32_85], %380 {strides = array<i32>} : memref<64x64xbf16, #tpu.memory_space<vmem>>, vector<8x32xbf16>,
    %c7_i32_86 = arith.constant 7 : i32
    %c8_i32_87 = arith.constant 8 : i32
    %383 = arith.muli %c7_i32_86, %c8_i32_87 : i32
    %384 = tpu.assume_multiple %383, 8 : i32
    %c7_i32_88 = arith.constant 7 : i32
    %385 = arith.subi %c7_i32_88, %c7_i32_86 : i32
    %c8_i32_89 = arith.constant 8 : i32
    %386 = arith.muli %385, %c8_i32_89 : i32
    %387 = tpu.assume_multiple %386, 8 : i32
    %388 = arith.index_cast %384 : i32 to index
    %c0_90 = arith.constant 0 : index
    %389 = vector.load %arg7[%388, %c0_90] : memref<64x256xf32, #tpu.memory_space<vmem>>, vector<8x128xf32>
    %390 = arith.truncf %360 : vector<8x32xf32> to vector<8x32xbf16>
    %cst_91 = arith.constant dense<0.000000e+00> : vector<8x128xf32>
    %391 = tpu.matmul %390, %8, %cst_91 {dimension_numbers = #tpu.dot_dimension_numbers<[1], [0], [0], [1], [0, 0, 1, 1], [], []>} : vector<8x32xbf16>, vector<32x128xbf16>, vector<8x128xf32> -> vector<8x128xf32>
    %392 = arith.addf %389, %391 : vector<8x128xf32>
    %393 = arith.index_cast %387 : i32 to index
    %c128_92 = arith.constant 128 : index
    %394 = vector.load %arg7[%393, %c128_92] : memref<64x256xf32, #tpu.memory_space<vmem>>, vector<8x128xf32>
    %395 = arith.truncf %376 : vector<8x32xf32> to vector<8x32xbf16>
    %cst_93 = arith.constant dense<0.000000e+00> : vector<8x128xf32>
    %396 = tpu.matmul %395, %10, %cst_93 {dimension_numbers = #tpu.dot_dimension_numbers<[1], [0], [0], [1], [0, 0, 1, 1], [], []>} : vector<8x32xbf16>, vector<32x128xbf16>, vector<8x128xf32> -> vector<8x128xf32>
    %397 = arith.addf %394, %396 : vector<8x128xf32>
    %398 = vector.extract_strided_slice %392 {offsets = [0, 0], sizes = [8, 96], strides = [1, 1]} : vector<8x128xf32> to vector<8x96xf32>
    %399 = arith.negf %398 : vector<8x96xf32>
    %400 = math.exp %399 : vector<8x96xf32>
    %cst_94 = arith.constant 1.000000e+00 : f32
    %401 = vector.broadcast %cst_94 : f32 to vector<8x96xf32>
    %402 = arith.addf %401, %400 : vector<8x96xf32>
    %403 = arith.divf %401, %402 : vector<8x96xf32>
    %404 = vector.extract_strided_slice %392 {offsets = [0, 96], sizes = [8, 32], strides = [1, 1]} : vector<8x128xf32> to vector<8x32xf32>
    %405 = math.tanh %404 : vector<8x32xf32>
    %406 = vector.extract_strided_slice %403 {offsets = [0, 0], sizes = [8, 32], strides = [1, 1]} : vector<8x96xf32> to vector<8x32xf32>
    %407 = vector.extract_strided_slice %403 {offsets = [0, 32], sizes = [8, 32], strides = [1, 1]} : vector<8x96xf32> to vector<8x32xf32>
    %408 = vector.extract_strided_slice %403 {offsets = [0, 64], sizes = [8, 32], strides = [1, 1]} : vector<8x96xf32> to vector<8x32xf32>
    %409 = arith.mulf %407, %358 : vector<8x32xf32>
    %410 = arith.mulf %406, %405 : vector<8x32xf32>
    %411 = arith.addf %409, %410 : vector<8x32xf32>
    %412 = math.tanh %411 : vector<8x32xf32>
    %413 = arith.mulf %408, %412 : vector<8x32xf32>
    %414 = vector.extract_strided_slice %397 {offsets = [0, 0], sizes = [8, 96], strides = [1, 1]} : vector<8x128xf32> to vector<8x96xf32>
    %415 = arith.negf %414 : vector<8x96xf32>
    %416 = math.exp %415 : vector<8x96xf32>
    %cst_95 = arith.constant 1.000000e+00 : f32
    %417 = vector.broadcast %cst_95 : f32 to vector<8x96xf32>
    %418 = arith.addf %417, %416 : vector<8x96xf32>
    %419 = arith.divf %417, %418 : vector<8x96xf32>
    %420 = vector.extract_strided_slice %397 {offsets = [0, 96], sizes = [8, 32], strides = [1, 1]} : vector<8x128xf32> to vector<8x32xf32>
    %421 = math.tanh %420 : vector<8x32xf32>
    %422 = vector.extract_strided_slice %419 {offsets = [0, 0], sizes = [8, 32], strides = [1, 1]} : vector<8x96xf32> to vector<8x32xf32>
    %423 = vector.extract_strided_slice %419 {offsets = [0, 32], sizes = [8, 32], strides = [1, 1]} : vector<8x96xf32> to vector<8x32xf32>
    %424 = vector.extract_strided_slice %419 {offsets = [0, 64], sizes = [8, 32], strides = [1, 1]} : vector<8x96xf32> to vector<8x32xf32>
    %425 = arith.mulf %423, %374 : vector<8x32xf32>
    %426 = arith.mulf %422, %421 : vector<8x32xf32>
    %427 = arith.addf %425, %426 : vector<8x32xf32>
    %428 = math.tanh %427 : vector<8x32xf32>
    %429 = arith.mulf %424, %428 : vector<8x32xf32>
    %430 = arith.truncf %413 : vector<8x32xf32> to vector<8x32xbf16>
    %431 = arith.index_cast %384 : i32 to index
    %c0_96 = arith.constant 0 : index
    %432 = vector.load %arg4[%431, %c0_96] : memref<64x64xbf16, #tpu.memory_space<vmem>>, vector<8x32xbf16>
    tpu.vector_store %arg4[%431, %c0_96], %430 {strides = array<i32>} : memref<64x64xbf16, #tpu.memory_space<vmem>>, vector<8x32xbf16>,
    %433 = arith.truncf %429 : vector<8x32xf32> to vector<8x32xbf16>
    %434 = arith.index_cast %387 : i32 to index
    %c32_97 = arith.constant 32 : index
    %435 = vector.load %arg4[%434, %c32_97] : memref<64x64xbf16, #tpu.memory_space<vmem>>, vector<8x32xbf16>
    tpu.vector_store %arg4[%434, %c32_97], %433 {strides = array<i32>} : memref<64x64xbf16, #tpu.memory_space<vmem>>, vector<8x32xbf16>,
    %c8_i32_98 = arith.constant 8 : i32
    %c0_99 = arith.constant 0 : index
    %c0_100 = arith.constant 0 : index
    %c0_101 = arith.constant 0 : index
    %436 = vector.load %arg5[%c0_99, %c0_100, %c0_101] : memref<2x8x32xf32, #tpu.memory_space<vmem>>, vector<1x8x32xf32>
    %437 = vector.shape_cast %436 : vector<1x8x32xf32> to vector<8x32xf32>
    %438 = vector.shape_cast %413 : vector<8x32xf32> to vector<1x8x32xf32>
    tpu.vector_store %arg5[%c0_99, %c0_100, %c0_101], %438 {strides = array<i32>} : memref<2x8x32xf32, #tpu.memory_space<vmem>>, vector<1x8x32xf32>,
    %c1_102 = arith.constant 1 : index
    %c0_103 = arith.constant 0 : index
    %c0_104 = arith.constant 0 : index
    %439 = vector.load %arg5[%c1_102, %c0_103, %c0_104] : memref<2x8x32xf32, #tpu.memory_space<vmem>>, vector<1x8x32xf32>
    %440 = vector.shape_cast %439 : vector<1x8x32xf32> to vector<8x32xf32>
    %441 = vector.shape_cast %429 : vector<8x32xf32> to vector<1x8x32xf32>
    tpu.vector_store %arg5[%c1_102, %c0_103, %c0_104], %441 {strides = array<i32>} : memref<2x8x32xf32, #tpu.memory_space<vmem>>, vector<1x8x32xf32>,
    %c0_105 = arith.constant 0 : index
    %c0_106 = arith.constant 0 : index
    %c0_107 = arith.constant 0 : index
    %442 = vector.load %arg6[%c0_105, %c0_106, %c0_107] : memref<2x8x32xf32, #tpu.memory_space<vmem>>, vector<1x8x32xf32>
    %443 = vector.shape_cast %442 : vector<1x8x32xf32> to vector<8x32xf32>
    %444 = vector.shape_cast %411 : vector<8x32xf32> to vector<1x8x32xf32>
    tpu.vector_store %arg6[%c0_105, %c0_106, %c0_107], %444 {strides = array<i32>} : memref<2x8x32xf32, #tpu.memory_space<vmem>>, vector<1x8x32xf32>,
    %c1_108 = arith.constant 1 : index
    %c0_109 = arith.constant 0 : index
    %c0_110 = arith.constant 0 : index
    %445 = vector.load %arg6[%c1_108, %c0_109, %c0_110] : memref<2x8x32xf32, #tpu.memory_space<vmem>>, vector<1x8x32xf32>
    %446 = vector.shape_cast %445 : vector<1x8x32xf32> to vector<8x32xf32>
    %447 = vector.shape_cast %427 : vector<8x32xf32> to vector<1x8x32xf32>
    tpu.vector_store %arg6[%c1_108, %c0_109, %c0_110], %447 {strides = array<i32>} : memref<2x8x32xf32, #tpu.memory_space<vmem>>, vector<1x8x32xf32>,
    return
  }
}

</mosaic_0001>

<bundles_post_ra>
// kernel: encoder_forward.2
= control target key start
LH: loop header
LB: loop body
LE: loop exit
PB: predicated region body
PF: predicated region fallthrough
CT: control target
= control target key end

     0   :  { %vm67_vm0 = vcmask 130048   ;;  %v1531_v11 = vmov 0   ;;  %vm179_vm9 = vcmask 261120   ;;  %s1534_s21 = smov 96   ;;  %s1990_s1 = inlined_call_operand.vmem [shape: bf16[16,256], index: 1, kind: input, shape index: {}]   ;;  %s1991_s2 = inlined_call_operand.vmem [shape: bf16[2,32,128], index: 2, kind: input, shape index: {}]   ;;  %s1992_s0 = inlined_call_operand.vmem [shape: bf16[64,16], index: 0, kind: input, shape index: {}]   ;;  %s1993_s3 = inlined_call_operand.vmem [shape: f32[1,256], index: 3, kind: input, shape index: {}]   ;;  %s1994_s4 = inlined_call_operand.vmem [shape: bf16[64,64], index: 4, kind: output, shape index: {0}]   ;;  %s1995_s5 = inlined_call_operand.vmem [shape: f32[2,8,32], index: 5, kind: output, shape index: {1}]   ;;  %s1996_s6 = inlined_call_operand.vmem [shape: f32[2,8,32], index: 6, kind: output, shape index: {2}]  }
   0x1   :  { %v1393_v0 = vld [vmem:[%s1990_s1 + $0x4] sm:$0xf]  ;;  %v1311_v1 = vld [vmem:[%s1990_s1 + $0x8] sm:$0xf0]  ;;  %v1309_v4 = vld [vmem:[%s1990_s1] sm:$0xf] }
   0x2   :  { %v1579_v2 = vld [vmem:[%s1991_s2 + $0x8] sm:$0xff]  ;;  %v1314_v3 = vor.u32 %v1393_v0, %v1311_v1  ;;  %v1389_v5 = vld [vmem:[%s1992_s0] sm:$0xff]  ;;  %v1601_v9 = vld [vmem:[%s1991_s2 + $0x18] sm:$0xff] }
   0x3   :  { %189 = vmatpush.bf16.msra.mxu2 %v1579_v2  ;;  %v1591_v6 = vld [vmem:[%s1991_s2] sm:$0xff]  ;;  %v1394_v7 = vld [vmem:[%s1990_s1 + $0x4] sm:$0xf0]  ;;  %219 = vmatpush.bf16.msra.mxu3 %v1601_v9  ;;  %v1610_v10 = vld [vmem:[%s1991_s2 + $0x10] sm:$0xff] }
   0x4   :  { %116 = vmatpush.bf16.msra.mxu1 %v1314_v3  ;;  %v1310_v8 = vor.u32 %v1394_v7, %v1309_v4  ;;  %v1390_v12 = vld [vmem:[%s1992_s0 + $0x8] sm:$0xff]  ;;  %v1391_v13 = vld [vmem:[%s1992_s0 + $0x10] sm:$0xff]  ;;  %v1392_v14 = vld [vmem:[%s1992_s0 + $0x18] sm:$0xff]  ;;  %s1532_s0 = smov 32  }
   0x5   :  { %v31_v15 = vld [vmem:[%s1993_s3] sm:$0x3]  ;;  %s1533_s3 = smov 64  }
   0x6   :  { %87 = vmatpush.bf16.msra.mxu0 %v1310_v8  ;;  %v34_v16 = vperm.slane %v31_v15, 1  ;;  %v1647_v19 = vperm.slane %v31_v15, 0 }
   0x7   :  { %1319 = vmatmul.msk.bf16.vlgmr.msra.gmra.mxu1 %vm67_vm0, %v1389_v5  ;;  %190 = vmatpush.bf16.msra.mxu2 %v1591_v6 }
   0x8   :  { %766 = vmatpush.bf16.msrb.mxu1 %v1601_v9  ;;  %220 = vmatpush.bf16.msra.mxu3 %v1610_v10 }
   0x9   :  { %1315 = vmatmul.msk.bf16.vlgmr.msra.gmra.mxu0 %vm67_vm0, %v1389_v5 }
   0xa   :  { %744 = vmatpush.bf16.msrb.mxu0 %v1579_v2  ;;  %191 = vmatmul.bf16.vlgmr.msra.gmra.mxu2 %v1531_v11 }
   0xb   :  { %333 = vmatpush.bf16.msrb.mxu2 %v1579_v2  ;;  %221 = vmatmul.bf16.vlgmr.msra.gmra.mxu3 %v1531_v11 }
   0xc   :  { %358 = vmatpush.bf16.msrb.mxu3 %v1601_v9  ;;  %767 = vmatpush.bf16.msrb.mxu1 %v1610_v10 }
   0xe   :  { %745 = vmatpush.bf16.msrb.mxu0 %v1591_v6 }
   0xf   :  { %334 = vmatpush.bf16.msrb.mxu2 %v1591_v6 }
  0x10   :  { %1026 = vmatpush.bf16.msra.mxu1 %v1601_v9  ;;  %359 = vmatpush.bf16.msrb.mxu3 %v1610_v10 }
  0x12   :  { %1004 = vmatpush.bf16.msra.mxu0 %v1579_v2 }
  0x13   :  { %471 = vmatpush.bf16.msra.mxu2 %v1579_v2 }
  0x14   :  { %496 = vmatpush.bf16.msra.mxu3 %v1601_v9  ;;  %1027 = vmatpush.bf16.msra.mxu1 %v1610_v10 }
  0x16   :  { %1005 = vmatpush.bf16.msra.mxu0 %v1591_v6 }
  0x17   :  { %472 = vmatpush.bf16.msra.mxu2 %v1591_v6  ;;  %1320 = vmatmul.msk.bf16.gmra.mxu1 %vm67_vm0, %v1390_v12 }
  0x18   :  { %497 = vmatpush.bf16.msra.mxu3 %v1610_v10 }
  0x19   :  { %1316 = vmatmul.msk.bf16.gmra.mxu0 %vm67_vm0, %v1390_v12 }
  0x27   :  { %1321 = vmatmul.msk.bf16.gmra.mxu1 %vm67_vm0, %v1391_v13 }
  0x29   :  { %1317 = vmatmul.msk.bf16.gmra.mxu0 %vm67_vm0, %v1391_v13 }
  0x37   :  { %1322 = vmatmul.msk.bf16.gmra.mxu1 %vm67_vm0, %v1392_v14 }
  0x39   :  { %1318 = vmatmul.msk.bf16.gmra.mxu0 %vm67_vm0, %v1392_v14 }
  0x84   :  { %v118_v17 = vpop.f32.mrf.mxu1 }
  0x85   :  { %v1645_v18 = vadd.f32 %v118_v17, %v34_v16 }
  0x86   :  { %v89_v20 = vpop.f32.mrf.mxu0 }
  0x87   :  { %v90_v21 = vadd.f32 %v89_v20, %v1647_v19 }
  0x8c   :  { %v120_v22 = vpop.f32.mrf.mxu1 }
  0x8d   :  { %v1650_v23 = vadd.f32 %v120_v22, %v34_v16  ;;  %v192_v24 = vpop.f32.mrf.mxu2 }
  0x8e   :  { %v196_v25 = vadd.f32 %v192_v24, %v90_v21  ;;  %v222_v29 = vpop.f32.mrf.mxu3 }
  0x90   :  { %1403 = vtanh.f32 %v196_v25  ;;  %v1343_v44 = vmul.f32 -1.442695, %v196_v25 }
  0x94   :  { %v123_v26 = vpop.f32.mrf.mxu1 }
  0x95   :  { %v1652_v27 = vadd.f32 %v123_v26, %v34_v16  ;;  %v194_v28 = vpop.f32.mrf.mxu2 }
  0x96   :  { %v1404_v30 = vpop.eup %1403  ;;  %v224_v33 = vpop.f32.mrf.mxu3 }
  0x97   :  { %249 = vrot.lane.b32.xlu0 %v1404_v30, %s1532_s0 }
  0x9c   :  { %v125_v31 = vpop.f32.mrf.mxu1 }
  0x9d   :  { %v1655_v32 = vadd.f32 %v125_v31, %v34_v16 }
  0xa4   :  { %v128_v34 = vpop.f32.mrf.mxu1 }
  0xa5   :  { %v1657_v35 = vadd.f32 %v128_v34, %v34_v16 }
  0xac   :  { %v130_v36 = vpop.f32.mrf.mxu1 }
  0xad   :  { %v1659_v37 = vadd.f32 %v130_v36, %v34_v16 }
  0xb4   :  { %v133_v38 = vpop.f32.mrf.mxu1 }
  0xb5   :  { %v1661_v39 = vadd.f32 %v133_v38, %v34_v16 }
  0xbc   :  { %v135_v40 = vpop.f32.mrf.mxu1 }
  0xbd   :  { %v136_v41 = vadd.f32 %v135_v40, %v34_v16 }
  0xbf   :  { %v226_v42 = vadd.f32 %v222_v29, %v136_v41 }
  0xc1   :  { %1405 = vtanh.f32 %v226_v42  ;;  %v1344_v59 = vmul.f32 -1.442695, %v226_v42  ;;  %v91_v42 = vpop.f32.mrf.mxu0 }
  0xc2   :  { %1407 = vpow2.f32 %v1343_v44 }
  0xc7   :  { %v1406_v43 = vpop.eup %1405 }
  0xc8   :  { %286 = vrot.lane.b32.xlu0 %v1406_v43, %s1532_s0  ;;  %v1408_v45 = vpop.eup %1407  ;;  %v92_v43 = vadd.f32 %v91_v42, %v1647_v19 }
  0xc9   :  { %v230_v46 = vadd.f32 1.0, %v1408_v45 }
  0xcb   :  { %1409 = vrcp.f32 %v230_v46  ;;  %vm236_vm1 = vweird.f32 %v230_v46  ;;  %v242_v51 = vand.u32 2147483648, %v230_v46  ;;  %v240_v53 = vand.u32 2147483647, %v230_v46 }
  0xcc   :  { %1411 = vpow2.f32 %v1344_v59 }
  0xcd   :  { %v243_v54 = vor.u32 1.1754944e-38, %v242_v51  ;;  %vm241_vm4 = vcmp.eq.f32.partialorder %v240_v53, 8.507059e+37 }
  0xd1   :  { %v1410_v47 = vpop.eup %1409 }
  0xd2   :  { %v232_v48 = vmul.f32 %v1410_v47, %v230_v46  ;;  %vm237_vm2 = vweird.f32 %v1410_v47  ;;  %v1412_v60 = vpop.eup %1411 }
  0xd3   :  { %vm238_vm3 = vmor %vm236_vm1, %vm237_vm2  ;;  %v267_v61 = vadd.f32 1.0, %v1412_v60 }
  0xd4   :  { %v233_v49 = vsub.f32 1.0, %v232_v48 }
  0xd5   :  { %1413 = vrcp.f32 %v267_v61  ;;  %v279_v4 = vand.u32 2147483648, %v267_v61  ;;  %vm273_vm6 = vweird.f32 %v267_v61  ;;  %v277_v5 = vand.u32 2147483647, %v267_v61 }
  0xd6   :  { %v234_v50 = vmul.f32 %v1410_v47, %v233_v49 }
  0xd7   :  { %v280_v8 = vor.u32 1.1754944e-38, %v279_v4  ;;  %vm278_vm8 = vcmp.eq.f32.partialorder %v277_v5, 8.507059e+37 }
  0xd8   :  { %v235_v52 = vadd.f32 %v1410_v47, %v234_v50 }
  0xda   :  { %v239_v55 = vsel %vm238_vm3, %v1410_v47, %v235_v52 }
  0xdb   :  { %v244_v57 = vsel %vm241_vm4, %v243_v54, %v239_v55  ;;  %v1414_v62 = vpop.eup %1413 }
  0xdc   :  { %v269_v63 = vmul.f32 %v1414_v62, %v267_v61  ;;  %vm274_vm5 = vweird.f32 %v1414_v62  ;;  %v247_v14 = vmul.f32 0.0, %v244_v57 }
  0xdd   :  { %vm275_vm7 = vmor %vm273_vm6, %vm274_vm5 }
  0xde   :  { %v270_v0 = vsub.f32 1.0, %v269_v63 }
  0xe0   :  { %v271_v1 = vmul.f32 %v1414_v62, %v270_v0 }
  0xe2   :  { %v272_v3 = vadd.f32 %v1414_v62, %v271_v1 }
  0xe4   :  { %v276_v7 = vsel %vm275_vm7, %v1414_v62, %v272_v3 }
  0xe5   :  { %v281_v11 = vsel %vm278_vm8, %v280_v8, %v276_v7 }
  0xe6   :  { %v284_v20 = vmul.f32 0.0, %v281_v11 }
 0x109   :  { %v250_v56 = vpop.permute.xlu0 %249 }
 0x10a   :  { %v252_v58 = vmul.f32 %v250_v56, %v244_v57 }
 0x10c   :  { %254 = vrot.lane.b32.xlu1 %v252_v58, %s1532_s0 }
 0x13a   :  { %v287_v12 = vpop.permute.xlu0 %286 }
 0x13b   :  { %v289_v13 = vmul.f32 %v287_v12, %v281_v11 }
 0x13d   :  { %291 = vrot.lane.b32.xlu1 %v289_v13, %s1532_s0 }
 0x17e   :  { %v255_v15 = vpop.permute.xlu1 %254 }
 0x17f   :  { %v1666_v16 = vadd.f32 %v255_v15, %v247_v14 }
 0x181   :  { %1415 = vtanh.f32 %v1666_v16 }
 0x187   :  { %v1416_v17 = vpop.eup %1415 }
 0x188   :  { %260 = vrot.lane.b32.xlu2 %v1416_v17, %s1532_s0 }
 0x1af   :  { %v292_v21 = vpop.permute.xlu1 %291 }
 0x1b0   :  { %v1670_v22 = vadd.f32 %v292_v21, %v284_v20 }
 0x1b2   :  { %1417 = vtanh.f32 %v1670_v22 }
 0x1b8   :  { %v1418_v24 = vpop.eup %1417 }
 0x1b9   :  { %297 = vrot.lane.b32.xlu2 %v1418_v24, %s1532_s0 }
 0x1e2   :  { %v261_v25 = vpop.permute.xlu2 %260 }
 0x1e3   :  { %v263_v26 = vmul.f32 %v261_v25, %v244_v57 }
 0x1e5   :  { %v1674_v28 = vpack.c.bf16 %v263_v26, %v263_v26 }
 0x1e7   :  { %v320_v29 = vunpack.c.l.b16 %v1674_v28 }
 0x1e9   :  { %v321_v30 = vpack.c.b16 %v320_v29, %v320_v29 }
 0x1eb   :  { %322 = vrot.lane.b32.xlu0 %v321_v30, %s1533_s3 }
 0x213   :  { %v298_v31 = vpop.permute.xlu2 %297 }
 0x214   :  { %v300_v33 = vmul.f32 %v298_v31, %v281_v11 }
 0x216   :  { %v1678_v34 = vpack.c.bf16 %v300_v33, %v300_v33 }
 0x218   :  { %v345_v36 = vunpack.c.l.b16 %v1678_v34 }
 0x21a   :  { %v346_v38 = vpack.c.b16 %v345_v36, %v345_v36 }
 0x21c   :  { %347 = vrot.lane.b32.xlu1 %v346_v38, %s1533_s3 }
 0x25d   :  { %v323_v40 = vpop.permute.xlu0 %322 }
 0x25e   :  { %1346 = vmatmul.msk.bf16.vlgmr.msrb.gmra.mxu2 %vm179_vm9, %v323_v40 }
 0x25f   :  { %609 = vmatpush.bf16.msrb.mxu2 %v1579_v2 }
 0x263   :  { %610 = vmatpush.bf16.msrb.mxu2 %v1591_v6 }
 0x28e   :  { %v348_v41 = vpop.permute.xlu1 %347 }
 0x28f   :  { %1347 = vmatmul.msk.bf16.vlgmr.msrb.gmra.mxu3 %vm179_vm9, %v348_v41 }
 0x290   :  { %634 = vmatpush.bf16.msrb.mxu3 %v1601_v9 }
 0x294   :  { %635 = vmatpush.bf16.msrb.mxu3 %v1610_v10 }
 0x2e1   :  { %v336_v44 = vpop.f32.mrf.mxu2 }
 0x2e2   :  { %v340_v45 = vadd.f32 %v336_v44, %v92_v43 }
 0x2e4   :  { %1419 = vtanh.f32 %v340_v45  ;;  %v1348_v50 = vmul.f32 -1.442695, %v340_v45 }
 0x2e9   :  { %v338_v46 = vpop.f32.mrf.mxu2 }
 0x2ea   :  { %v1420_v47 = vpop.eup %1419 }
 0x2eb   :  { %388 = vrot.lane.b32.xlu2 %v1420_v47, %s1532_s0 }
 0x312   :  { %v361_v48 = vpop.f32.mrf.mxu3 }
 0x313   :  { %v365_v49 = vadd.f32 %v361_v48, %v1661_v39 }
 0x315   :  { %1421 = vtanh.f32 %v365_v49  ;;  %v1349_v3 = vmul.f32 -1.442695, %v365_v49 }
 0x316   :  { %1423 = vpow2.f32 %v1348_v50 }
 0x31a   :  { %v363_v51 = vpop.f32.mrf.mxu3 }
 0x31b   :  { %v1422_v52 = vpop.eup %1421  ;;  %v94_v51 = vpop.f32.mrf.mxu0 }
 0x31c   :  { %425 = vrot.lane.b32.xlu0 %v1422_v52, %s1532_s0  ;;  %v1424_v53 = vpop.eup %1423  ;;  %v95_v52 = vadd.f32 %v94_v51, %v1647_v19 }
 0x31d   :  { %v369_v54 = vadd.f32 1.0, %v1424_v53 }
 0x31f   :  { %1425 = vrcp.f32 %v369_v54  ;;  %v381_v60 = vand.u32 2147483648, %v369_v54  ;;  %vm375_vm11 = vweird.f32 %v369_v54  ;;  %v379_v61 = vand.u32 2147483647, %v369_v54 }
 0x320   :  { %1427 = vpow2.f32 %v1349_v3 }
 0x321   :  { %v382_v62 = vor.u32 1.1754944e-38, %v381_v60  ;;  %vm380_vm13 = vcmp.eq.f32.partialorder %v379_v61, 8.507059e+37 }
 0x325   :  { %v1426_v55 = vpop.eup %1425 }
 0x326   :  { %v371_v56 = vmul.f32 %v1426_v55, %v369_v54  ;;  %vm376_vm10 = vweird.f32 %v1426_v55  ;;  %v1428_v4 = vpop.eup %1427 }
 0x327   :  { %vm377_vm12 = vmor %vm375_vm11, %vm376_vm10  ;;  %v406_v5 = vadd.f32 1.0, %v1428_v4 }
 0x328   :  { %v372_v57 = vsub.f32 1.0, %v371_v56 }
 0x329   :  { %1429 = vrcp.f32 %v406_v5  ;;  %v418_v14 = vand.u32 2147483648, %v406_v5  ;;  %vm412_vm15 = vweird.f32 %v406_v5  ;;  %v416_v15 = vand.u32 2147483647, %v406_v5 }
 0x32a   :  { %v373_v58 = vmul.f32 %v1426_v55, %v372_v57 }
 0x32b   :  { %v419_v20 = vor.u32 1.1754944e-38, %v418_v14  ;;  %vm417_vm1 = vcmp.eq.f32.partialorder %v416_v15, 8.507059e+37 }
 0x32c   :  { %v374_v59 = vadd.f32 %v1426_v55, %v373_v58 }
 0x32e   :  { %v378_v39 = vsel %vm377_vm12, %v1426_v55, %v374_v59 }
 0x32f   :  { %v383_v63 = vsel %vm380_vm13, %v382_v62, %v378_v39  ;;  %v1430_v7 = vpop.eup %1429 }
 0x330   :  { %v408_v8 = vmul.f32 %v1430_v7, %v406_v5  ;;  %vm413_vm14 = vweird.f32 %v1430_v7  ;;  %v386_v26 = vmul.f32 %v383_v63, %v1666_v16 }
 0x331   :  { %vm414_vm0 = vmor %vm412_vm15, %vm413_vm14 }
 0x332   :  { %v409_v11 = vsub.f32 1.0, %v408_v8 }
 0x334   :  { %v410_v12 = vmul.f32 %v1430_v7, %v409_v11 }
 0x336   :  { %v411_v13 = vadd.f32 %v1430_v7, %v410_v12 }
 0x338   :  { %v415_v17 = vsel %vm414_vm0, %v1430_v7, %v411_v13 }
 0x339   :  { %v420_v24 = vsel %vm417_vm1, %v419_v20, %v415_v17 }
 0x33a   :  { %v423_v33 = vmul.f32 %v420_v24, %v1670_v22 }
 0x345   :  { %v389_v0 = vpop.permute.xlu2 %388 }
 0x346   :  { %v391_v1 = vmul.f32 %v389_v0, %v383_v63 }
 0x348   :  { %393 = vrot.lane.b32.xlu1 %v391_v1, %s1532_s0 }
 0x38e   :  { %v426_v21 = vpop.permute.xlu0 %425 }
 0x38f   :  { %v428_v25 = vmul.f32 %v426_v21, %v420_v24 }
 0x391   :  { %430 = vrot.lane.b32.xlu2 %v428_v25, %s1532_s0 }
 0x3ba   :  { %v394_v29 = vpop.permute.xlu1 %393 }
 0x3bb   :  { %v1695_v30 = vadd.f32 %v394_v29, %v386_v26 }
 0x3bd   :  { %1431 = vtanh.f32 %v1695_v30 }
 0x3c3   :  { %v1432_v31 = vpop.eup %1431 }
 0x3c4   :  { %399 = vrot.lane.b32.xlu0 %v1432_v31, %s1532_s0 }
 0x3eb   :  { %v431_v36 = vpop.permute.xlu2 %430 }
 0x3ec   :  { %v1700_v38 = vadd.f32 %v431_v36, %v423_v33 }
 0x3ee   :  { %1433 = vtanh.f32 %v1700_v38 }
 0x3f4   :  { %v1434_v40 = vpop.eup %1433 }
 0x3f5   :  { %436 = vrot.lane.b32.xlu1 %v1434_v40, %s1532_s0 }
 0x436   :  { %v400_v41 = vpop.permute.xlu0 %399 }
 0x437   :  { %v402_v16 = vmul.f32 %v400_v41, %v383_v63 }
 0x439   :  { %v1704_v42 = vpack.c.bf16 %v402_v16, %v402_v16 }
 0x43b   :  { %v458_v43 = vunpack.c.l.b16 %v1704_v42 }
 0x43d   :  { %v459_v44 = vpack.c.b16 %v458_v43, %v458_v43 }
 0x43f   :  { %460 = vrot.lane.b32.xlu2 %v459_v44, %s1533_s3 }
 0x467   :  { %v437_v45 = vpop.permute.xlu1 %436 }
 0x468   :  { %v439_v46 = vmul.f32 %v437_v45, %v420_v24 }
 0x46a   :  { %v1708_v22 = vpack.c.bf16 %v439_v46, %v439_v46 }
 0x46c   :  { %v483_v47 = vunpack.c.l.b16 %v1708_v22 }
 0x46e   :  { %v484_v48 = vpack.c.b16 %v483_v47, %v483_v47 }
 0x470   :  { %485 = vrot.lane.b32.xlu0 %v484_v48, %s1533_s3 }
 0x499   :  { %v461_v49 = vpop.permute.xlu2 %460 }
 0x49a   :  { %1352 = vmatmul.msk.bf16.vlgmr.msra.gmra.mxu2 %vm179_vm9, %v461_v49 }
 0x49b   :  { %874 = vmatpush.bf16.msra.mxu2 %v1579_v2 }
 0x49f   :  { %875 = vmatpush.bf16.msra.mxu2 %v1591_v6 }
 0x4e2   :  { %v486_v50 = vpop.permute.xlu0 %485 }
 0x4e3   :  { %1353 = vmatmul.msk.bf16.vlgmr.msra.gmra.mxu3 %vm179_vm9, %v486_v50 }
 0x4e4   :  { %896 = vmatpush.bf16.msra.mxu3 %v1601_v9 }
 0x4e8   :  { %897 = vmatpush.bf16.msra.mxu3 %v1610_v10 }
 0x51d   :  { %v474_v53 = vpop.f32.mrf.mxu2 }
 0x51e   :  { %v478_v54 = vadd.f32 %v474_v53, %v95_v52 }
 0x520   :  { %1435 = vtanh.f32 %v478_v54  ;;  %v1354_v59 = vmul.f32 -1.442695, %v478_v54 }
 0x525   :  { %v476_v55 = vpop.f32.mrf.mxu2 }
 0x526   :  { %v1436_v56 = vpop.eup %1435 }
 0x527   :  { %526 = vrot.lane.b32.xlu1 %v1436_v56, %s1532_s0 }
 0x566   :  { %v499_v57 = vpop.f32.mrf.mxu3 }
 0x567   :  { %v503_v58 = vadd.f32 %v499_v57, %v1659_v37 }
 0x569   :  { %1437 = vtanh.f32 %v503_v58  ;;  %v1355_v14 = vmul.f32 -1.442695, %v503_v58 }
 0x56a   :  { %1439 = vpow2.f32 %v1354_v59 }
 0x56e   :  { %v501_v60 = vpop.f32.mrf.mxu3 }
 0x56f   :  { %v1438_v61 = vpop.eup %1437 }
 0x570   :  { %563 = vrot.lane.b32.xlu2 %v1438_v61, %s1532_s0  ;;  %v1440_v39 = vpop.eup %1439  ;;  %v96_v61 = vpop.f32.mrf.mxu0 }
 0x571   :  { %v507_v62 = vadd.f32 1.0, %v1440_v39  ;;  %v97_v39 = vadd.f32 %v96_v61, %v1647_v19 }
 0x573   :  { %1441 = vrcp.f32 %v507_v62  ;;  %v519_v5 = vand.u32 2147483648, %v507_v62  ;;  %vm513_vm3 = vweird.f32 %v507_v62  ;;  %v517_v7 = vand.u32 2147483647, %v507_v62 }
 0x574   :  { %1443 = vpow2.f32 %v1355_v14 }
 0x575   :  { %v520_v8 = vor.u32 1.1754944e-38, %v519_v5  ;;  %vm518_vm5 = vcmp.eq.f32.partialorder %v517_v7, 8.507059e+37 }
 0x579   :  { %v1442_v63 = vpop.eup %1441 }
 0x57a   :  { %v509_v0 = vmul.f32 %v1442_v63, %v507_v62  ;;  %vm514_vm2 = vweird.f32 %v1442_v63  ;;  %v1444_v15 = vpop.eup %1443 }
 0x57b   :  { %vm515_vm4 = vmor %vm513_vm3, %vm514_vm2  ;;  %v544_v17 = vadd.f32 1.0, %v1444_v15 }
 0x57c   :  { %v510_v1 = vsub.f32 1.0, %v509_v0 }
 0x57d   :  { %1445 = vrcp.f32 %v544_v17  ;;  %v556_v29 = vand.u32 2147483648, %v544_v17  ;;  %vm550_vm7 = vweird.f32 %v544_v17  ;;  %v554_v31 = vand.u32 2147483647, %v544_v17 }
 0x57e   :  { %v511_v3 = vmul.f32 %v1442_v63, %v510_v1 }
 0x57f   :  { %v557_v36 = vor.u32 1.1754944e-38, %v556_v29  ;;  %vm555_vm10 = vcmp.eq.f32.partialorder %v554_v31, 8.507059e+37 }
 0x580   :  { %v512_v4 = vadd.f32 %v1442_v63, %v511_v3 }
 0x582   :  { %v516_v37 = vsel %vm515_vm4, %v1442_v63, %v512_v4 }
 0x583   :  { %v521_v12 = vsel %vm518_vm5, %v520_v8, %v516_v37  ;;  %v1446_v20 = vpop.eup %1445 }
 0x584   :  { %v546_v21 = vmul.f32 %v1446_v20, %v544_v17  ;;  %vm551_vm6 = vweird.f32 %v1446_v20  ;;  %v524_v43 = vmul.f32 %v521_v12, %v1695_v30 }
 0x585   :  { %vm552_vm8 = vmor %vm550_vm7, %vm551_vm6 }
 0x586   :  { %v547_v24 = vsub.f32 1.0, %v546_v21 }
 0x588   :  { %v548_v25 = vmul.f32 %v1446_v20, %v547_v24 }
 0x58a   :  { %v549_v26 = vadd.f32 %v1446_v20, %v548_v25 }
 0x58c   :  { %v553_v33 = vsel %vm552_vm8, %v1446_v20, %v549_v26 }
 0x58d   :  { %v558_v40 = vsel %vm555_vm10, %v557_v36, %v553_v33 }
 0x58e   :  { %v561_v47 = vmul.f32 %v558_v40, %v1700_v38 }
 0x599   :  { %v527_v11 = vpop.permute.xlu1 %526 }
 0x59a   :  { %v529_v13 = vmul.f32 %v527_v11, %v521_v12 }
 0x59c   :  { %531 = vrot.lane.b32.xlu0 %v529_v13, %s1532_s0 }
 0x5ca   :  { %v564_v41 = vpop.permute.xlu2 %563 }
 0x5cb   :  { %v566_v16 = vmul.f32 %v564_v41, %v558_v40 }
 0x5cd   :  { %568 = vrot.lane.b32.xlu1 %v566_v16, %s1532_s0 }
 0x60e   :  { %v532_v44 = vpop.permute.xlu0 %531 }
 0x60f   :  { %v1725_v45 = vadd.f32 %v532_v44, %v524_v43 }
 0x611   :  { %1447 = vtanh.f32 %v1725_v45 }
 0x617   :  { %v1448_v46 = vpop.eup %1447 }
 0x618   :  { %537 = vrot.lane.b32.xlu2 %v1448_v46, %s1532_s0 }
 0x63f   :  { %v569_v48 = vpop.permute.xlu1 %568 }
 0x640   :  { %v1730_v49 = vadd.f32 %v569_v48, %v561_v47 }
 0x642   :  { %1449 = vtanh.f32 %v1730_v49 }
 0x648   :  { %v1450_v50 = vpop.eup %1449 }
 0x649   :  { %574 = vrot.lane.b32.xlu0 %v1450_v50, %s1532_s0 }
 0x672   :  { %v538_v51 = vpop.permute.xlu2 %537 }
 0x673   :  { %v540_v30 = vmul.f32 %v538_v51, %v521_v12 }
 0x675   :  { %v1734_v52 = vpack.c.bf16 %v540_v30, %v540_v30 }
 0x677   :  { %v596_v53 = vunpack.c.l.b16 %v1734_v52 }
 0x679   :  { %v597_v54 = vpack.c.b16 %v596_v53, %v596_v53 }
 0x67b   :  { %598 = vrot.lane.b32.xlu1 %v597_v54, %s1533_s3 }
 0x6bb   :  { %v575_v55 = vpop.permute.xlu0 %574 }
 0x6bc   :  { %v577_v56 = vmul.f32 %v575_v55, %v558_v40 }
 0x6be   :  { %v1738_v38 = vpack.c.bf16 %v577_v56, %v577_v56 }
 0x6c0   :  { %v621_v57 = vunpack.c.l.b16 %v1738_v38 }
 0x6c2   :  { %v622_v58 = vpack.c.b16 %v621_v57, %v621_v57 }
 0x6c4   :  { %623 = vrot.lane.b32.xlu2 %v622_v58, %s1533_s3 }
 0x6ed   :  { %v599_v59 = vpop.permute.xlu1 %598 }
 0x6ee   :  { %1358 = vmatmul.msk.bf16.vlgmr.msrb.gmra.mxu2 %vm179_vm9, %v599_v59 }
 0x6ef   :  { %1134 = vmatpush.bf16.msrb.mxu2 %v1579_v2 }
 0x6f3   :  { %1135 = vmatpush.bf16.msrb.mxu2 %v1591_v6 }
 0x71e   :  { %v624_v60 = vpop.permute.xlu2 %623 }
 0x71f   :  { %1359 = vmatmul.msk.bf16.vlgmr.msrb.gmra.mxu3 %vm179_vm9, %v624_v60 }
 0x720   :  { %1156 = vmatpush.bf16.msrb.mxu3 %v1601_v9 }
 0x724   :  { %1157 = vmatpush.bf16.msrb.mxu3 %v1610_v10 }
 0x771   :  { %v612_v62 = vpop.f32.mrf.mxu2 }
 0x772   :  { %v616_v63 = vadd.f32 %v612_v62, %v97_v39 }
 0x774   :  { %1451 = vtanh.f32 %v616_v63  ;;  %v1360_v9 = vmul.f32 -1.442695, %v616_v63 }
 0x779   :  { %v614_v0 = vpop.f32.mrf.mxu2 }
 0x77a   :  { %v1452_v1 = vpop.eup %1451 }
 0x77b   :  { %664 = vrot.lane.b32.xlu0 %v1452_v1, %s1532_s0 }
 0x7a2   :  { %v637_v2 = vpop.f32.mrf.mxu3 }
 0x7a3   :  { %v641_v6 = vadd.f32 %v637_v2, %v1657_v35 }
 0x7a5   :  { %1453 = vtanh.f32 %v641_v6  ;;  %v1361_v24 = vmul.f32 -1.442695, %v641_v6  ;;  %v99_v6 = vpop.f32.mrf.mxu0 }
 0x7a6   :  { %1455 = vpow2.f32 %v1360_v9 }
 0x7aa   :  { %v639_v3 = vpop.f32.mrf.mxu3 }
 0x7ab   :  { %v1454_v4 = vpop.eup %1453 }
 0x7ac   :  { %701 = vrot.lane.b32.xlu1 %v1454_v4, %s1532_s0  ;;  %v1456_v10 = vpop.eup %1455 }
 0x7ad   :  { %v645_v5 = vadd.f32 1.0, %v1456_v10  ;;  %v1774_v3 = vpop.f32.mrf.mxu0  ;;  %v100_v10 = vadd.f32 %v99_v6, %v1647_v19 }
 0x7af   :  { %1457 = vrcp.f32 %v645_v5  ;;  %v657_v13 = vand.u32 2147483648, %v645_v5  ;;  %vm651_vm12 = vweird.f32 %v645_v5  ;;  %v655_v14 = vand.u32 2147483647, %v645_v5 }
 0x7b0   :  { %1459 = vpow2.f32 %v1361_v24 }
 0x7b1   :  { %v658_v15 = vor.u32 1.1754944e-38, %v657_v13  ;;  %vm656_vm14 = vcmp.eq.f32.partialorder %v655_v14, 8.507059e+37 }
 0x7b5   :  { %v1458_v7 = vpop.eup %1457  ;;  %v1776_v4 = vpop.f32.mrf.mxu0 }
 0x7b6   :  { %v647_v37 = vmul.f32 %v1458_v7, %v645_v5  ;;  %vm652_vm11 = vweird.f32 %v1458_v7  ;;  %v1460_v25 = vpop.eup %1459 }
 0x7b7   :  { %vm653_vm13 = vmor %vm651_vm12, %vm652_vm11  ;;  %v682_v26 = vadd.f32 1.0, %v1460_v25 }
 0x7b8   :  { %v648_v8 = vsub.f32 1.0, %v647_v37 }
 0x7b9   :  { %1461 = vrcp.f32 %v682_v26  ;;  %v694_v41 = vand.u32 2147483648, %v682_v26  ;;  %vm688_vm0 = vweird.f32 %v682_v26  ;;  %v692_v16 = vand.u32 2147483647, %v682_v26 }
 0x7ba   :  { %v649_v11 = vmul.f32 %v1458_v7, %v648_v8 }
 0x7bb   :  { %v695_v44 = vor.u32 1.1754944e-38, %v694_v41  ;;  %vm693_vm2 = vcmp.eq.f32.partialorder %v692_v16, 8.507059e+37 }
 0x7bc   :  { %v650_v12 = vadd.f32 %v1458_v7, %v649_v11 }
 0x7bd   :  { %v1778_v9 = vpop.f32.mrf.mxu0 }
 0x7be   :  { %v654_v35 = vsel %vm653_vm13, %v1458_v7, %v650_v12 }
 0x7bf   :  { %v659_v20 = vsel %vm656_vm14, %v658_v15, %v654_v35  ;;  %v1462_v29 = vpop.eup %1461 }
 0x7c0   :  { %v684_v31 = vmul.f32 %v1462_v29, %v682_v26  ;;  %vm689_vm15 = vweird.f32 %v1462_v29  ;;  %v662_v50 = vmul.f32 %v659_v20, %v1725_v45 }
 0x7c1   :  { %vm690_vm1 = vmor %vm688_vm0, %vm689_vm15 }
 0x7c2   :  { %v685_v33 = vsub.f32 1.0, %v684_v31 }
 0x7c4   :  { %v686_v36 = vmul.f32 %v1462_v29, %v685_v33 }
 0x7c6   :  { %v687_v40 = vadd.f32 %v1462_v29, %v686_v36 }
 0x7c8   :  { %v691_v43 = vsel %vm690_vm1, %v1462_v29, %v687_v40 }
 0x7c9   :  { %v696_v47 = vsel %vm693_vm2, %v695_v44, %v691_v43 }
 0x7ca   :  { %v699_v54 = vmul.f32 %v696_v47, %v1730_v49 }
 0x7ed   :  { %v665_v17 = vpop.permute.xlu0 %664 }
 0x7ee   :  { %v667_v21 = vmul.f32 %v665_v17, %v659_v20 }
 0x7f0   :  { %669 = vrot.lane.b32.xlu2 %v667_v21, %s1532_s0 }
 0x81e   :  { %v702_v46 = vpop.permute.xlu1 %701 }
 0x81f   :  { %v704_v48 = vmul.f32 %v702_v46, %v696_v47 }
 0x821   :  { %706 = vrot.lane.b32.xlu0 %v704_v48, %s1532_s0 }
 0x84a   :  { %v670_v51 = vpop.permute.xlu2 %669 }
 0x84b   :  { %v1755_v30 = vadd.f32 %v670_v51, %v662_v50 }
 0x84d   :  { %1463 = vtanh.f32 %v1755_v30 }
 0x853   :  { %v1464_v53 = vpop.eup %1463 }
 0x854   :  { %675 = vrot.lane.b32.xlu1 %v1464_v53, %s1532_s0 }
 0x893   :  { %v707_v55 = vpop.permute.xlu0 %706 }
 0x894   :  { %v1760_v56 = vadd.f32 %v707_v55, %v699_v54 }
 0x896   :  { %1465 = vtanh.f32 %v1760_v56 }
 0x89c   :  { %v1466_v57 = vpop.eup %1465 }
 0x89d   :  { %712 = vrot.lane.b32.xlu2 %v1466_v57, %s1532_s0 }
 0x8c6   :  { %v676_v58 = vpop.permute.xlu1 %675 }
 0x8c7   :  { %v678_v45 = vmul.f32 %v676_v58, %v659_v20 }
 0x8c9   :  { %v1764_v59 = vpack.c.bf16 %v678_v45, %v678_v45 }
 0x8cb   :  { %v731_v60 = vunpack.c.l.b16 %v1764_v59 }
 0x8cd   :  { %v732_v61 = vpack.c.b16 %v731_v60, %v731_v60 }
 0x8cf   :  { %733 = vrot.lane.b32.xlu0 %v732_v61, %s1533_s3 }
 0x8f7   :  { %v713_v39 = vpop.permute.xlu2 %712 }
 0x8f8   :  { %v715_v62 = vmul.f32 %v713_v39, %v696_v47 }
 0x8fa   :  { %v1768_v49 = vpack.c.bf16 %v715_v62, %v715_v62 }
 0x8fc   :  { %v753_v63 = vunpack.c.l.b16 %v1768_v49 }
 0x8fe   :  { %v754_v0 = vpack.c.b16 %v753_v63, %v753_v63 }
 0x900   :  { %755 = vrot.lane.b32.xlu1 %v754_v0, %s1533_s3 }
 0x941   :  { %v734_v1 = vpop.permute.xlu0 %733 }
 0x942   :  { %1364 = vmatmul.msk.bf16.vlgmr.msrb.gmra.mxu0 %vm179_vm9, %v734_v1 }
 0x972   :  { %v756_v2 = vpop.permute.xlu1 %755 }
 0x973   :  { %1365 = vmatmul.msk.bf16.vlgmr.msrb.gmra.mxu1 %vm179_vm9, %v756_v2 }
 0x9bf   :  { %v747_v5 = vpop.f32.mrf.mxu0 }
 0x9c0   :  { %v751_v7 = vadd.f32 %v747_v5, %v100_v10 }
 0x9c2   :  { %1467 = vtanh.f32 %v751_v7  ;;  %v1366_v13 = vmul.f32 -1.442695, %v751_v7 }
 0x9c7   :  { %v749_v37 = vpop.f32.mrf.mxu0 }
 0x9c8   :  { %v1468_v8 = vpop.eup %1467 }
 0x9c9   :  { %796 = vrot.lane.b32.xlu2 %v1468_v8, %s1532_s0 }
 0x9f0   :  { %v769_v11 = vpop.f32.mrf.mxu1 }
 0x9f1   :  { %v773_v12 = vadd.f32 %v769_v11, %v1655_v32 }
 0x9f3   :  { %1469 = vtanh.f32 %v773_v12  ;;  %v1367_v16 = vmul.f32 -1.442695, %v773_v12 }
 0x9f4   :  { %1471 = vpow2.f32 %v1366_v13 }
 0x9f8   :  { %v771_v14 = vpop.f32.mrf.mxu1 }
 0x9f9   :  { %v1470_v35 = vpop.eup %1469 }
 0x9fa   :  { %833 = vrot.lane.b32.xlu0 %v1470_v35, %s1532_s0  ;;  %v1472_v15 = vpop.eup %1471 }
 0x9fb   :  { %v777_v17 = vadd.f32 1.0, %v1472_v15  ;;  %v102_v15 = vadd.f32 %v1774_v3, %v1647_v19 }
 0x9fd   :  { %1473 = vrcp.f32 %v777_v17  ;;  %v789_v29 = vand.u32 2147483648, %v777_v17  ;;  %vm783_vm4 = vweird.f32 %v777_v17  ;;  %v787_v31 = vand.u32 2147483647, %v777_v17 }
 0x9fe   :  { %1475 = vpow2.f32 %v1367_v16 }
 0x9ff   :  { %v790_v33 = vor.u32 1.1754944e-38, %v789_v29  ;;  %vm788_vm6 = vcmp.eq.f32.partialorder %v787_v31, 8.507059e+37 }
 0xa03   :  { %v1474_v20 = vpop.eup %1473 }
 0xa04   :  { %v779_v21 = vmul.f32 %v1474_v20, %v777_v17  ;;  %vm784_vm3 = vweird.f32 %v1474_v20  ;;  %v1476_v43 = vpop.eup %1475 }
 0xa05   :  { %vm785_vm5 = vmor %vm783_vm4, %vm784_vm3  ;;  %v814_v44 = vadd.f32 1.0, %v1476_v43 }
 0xa06   :  { %v780_v24 = vsub.f32 1.0, %v779_v21 }
 0xa07   :  { %1477 = vrcp.f32 %v814_v44  ;;  %v826_v53 = vand.u32 2147483648, %v814_v44  ;;  %vm820_vm8 = vweird.f32 %v814_v44  ;;  %v824_v54 = vand.u32 2147483647, %v814_v44 }
 0xa08   :  { %v781_v25 = vmul.f32 %v1474_v20, %v780_v24 }
 0xa09   :  { %v827_v57 = vor.u32 1.1754944e-38, %v826_v53  ;;  %vm825_vm11 = vcmp.eq.f32.partialorder %v824_v54, 8.507059e+37 }
 0xa0a   :  { %v782_v26 = vadd.f32 %v1474_v20, %v781_v25 }
 0xa0c   :  { %v786_v32 = vsel %vm785_vm5, %v1474_v20, %v782_v26 }
 0xa0d   :  { %v791_v36 = vsel %vm788_vm6, %v790_v33, %v786_v32  ;;  %v1478_v46 = vpop.eup %1477 }
 0xa0e   :  { %v816_v47 = vmul.f32 %v1478_v46, %v814_v44  ;;  %vm821_vm7 = vweird.f32 %v1478_v46  ;;  %v794_v61 = vmul.f32 %v791_v36, %v1755_v30 }
 0xa0f   :  { %vm822_vm10 = vmor %vm820_vm8, %vm821_vm7 }
 0xa10   :  { %v817_v48 = vsub.f32 1.0, %v816_v47 }
 0xa12   :  { %v818_v50 = vmul.f32 %v1478_v46, %v817_v48 }
 0xa14   :  { %v819_v51 = vadd.f32 %v1478_v46, %v818_v50 }
 0xa16   :  { %v823_v55 = vsel %vm822_vm10, %v1478_v46, %v819_v51 }
 0xa17   :  { %v828_v45 = vsel %vm825_vm11, %v827_v57, %v823_v55 }
 0xa18   :  { %v831_v0 = vmul.f32 %v828_v45, %v1760_v56 }
 0xa23   :  { %v797_v40 = vpop.permute.xlu2 %796 }
 0xa24   :  { %v799_v41 = vmul.f32 %v797_v40, %v791_v36 }
 0xa26   :  { %801 = vrot.lane.b32.xlu1 %v799_v41, %s1532_s0 }
 0xa6c   :  { %v834_v58 = vpop.permute.xlu0 %833 }
 0xa6d   :  { %v836_v60 = vmul.f32 %v834_v58, %v828_v45 }
 0xa6f   :  { %838 = vrot.lane.b32.xlu2 %v836_v60, %s1532_s0 }
 0xa98   :  { %v802_v39 = vpop.permute.xlu1 %801 }
 0xa99   :  { %v1787_v62 = vadd.f32 %v802_v39, %v794_v61 }
 0xa9b   :  { %1479 = vtanh.f32 %v1787_v62 }
 0xaa1   :  { %v1480_v63 = vpop.eup %1479 }
 0xaa2   :  { %807 = vrot.lane.b32.xlu0 %v1480_v63, %s1532_s0 }
 0xac9   :  { %v839_v1 = vpop.permute.xlu2 %838 }
 0xaca   :  { %v1792_v2 = vadd.f32 %v839_v1, %v831_v0 }
 0xacc   :  { %1481 = vtanh.f32 %v1792_v2 }
 0xad2   :  { %v1482_v6 = vpop.eup %1481 }
 0xad3   :  { %844 = vrot.lane.b32.xlu1 %v1482_v6, %s1532_s0 }
 0xb14   :  { %v808_v10 = vpop.permute.xlu0 %807 }
 0xb15   :  { %v810_v30 = vmul.f32 %v808_v10, %v791_v36 }
 0xb17   :  { %v1796_v5 = vpack.c.bf16 %v810_v30, %v810_v30 }
 0xb19   :  { %v861_v7 = vunpack.c.l.b16 %v1796_v5 }
 0xb1b   :  { %v862_v37 = vpack.c.b16 %v861_v7, %v861_v7 }
 0xb1d   :  { %863 = vrot.lane.b32.xlu2 %v862_v37, %s1533_s3 }
 0xb45   :  { %v845_v8 = vpop.permute.xlu1 %844 }
 0xb46   :  { %v847_v11 = vmul.f32 %v845_v8, %v828_v45 }
 0xb48   :  { %v1800_v56 = vpack.c.bf16 %v847_v11, %v847_v11 }
 0xb4a   :  { %v883_v12 = vunpack.c.l.b16 %v1800_v56 }
 0xb4c   :  { %v884_v13 = vpack.c.b16 %v883_v12, %v883_v12 }
 0xb4e   :  { %885 = vrot.lane.b32.xlu0 %v884_v13, %s1533_s3 }
 0xb77   :  { %v864_v14 = vpop.permute.xlu2 %863 }
 0xb78   :  { %1370 = vmatmul.msk.bf16.vlgmr.msra.gmra.mxu2 %vm179_vm9, %v864_v14 }
 0xbc0   :  { %v886_v35 = vpop.permute.xlu0 %885 }
 0xbc1   :  { %1371 = vmatmul.msk.bf16.vlgmr.msra.gmra.mxu3 %vm179_vm9, %v886_v35 }
 0xbfb   :  { %v877_v17 = vpop.f32.mrf.mxu2 }
 0xbfc   :  { %v881_v20 = vadd.f32 %v877_v17, %v102_v15 }
 0xbfe   :  { %1483 = vtanh.f32 %v881_v20  ;;  %v1372_v29 = vmul.f32 -1.442695, %v881_v20 }
 0xc03   :  { %v879_v21 = vpop.f32.mrf.mxu2 }
 0xc04   :  { %v1484_v24 = vpop.eup %1483 }
 0xc05   :  { %926 = vrot.lane.b32.xlu1 %v1484_v24, %s1532_s0 }
 0xc44   :  { %v899_v25 = vpop.f32.mrf.mxu3 }
 0xc45   :  { %v903_v26 = vadd.f32 %v899_v25, %v1652_v27 }
 0xc47   :  { %1485 = vtanh.f32 %v903_v26  ;;  %v1373_v53 = vmul.f32 -1.442695, %v903_v26 }
 0xc48   :  { %1487 = vpow2.f32 %v1372_v29 }
 0xc4c   :  { %v901_v31 = vpop.f32.mrf.mxu3 }
 0xc4d   :  { %v1486_v32 = vpop.eup %1485 }
 0xc4e   :  { %963 = vrot.lane.b32.xlu2 %v1486_v32, %s1532_s0  ;;  %v1488_v33 = vpop.eup %1487 }
 0xc4f   :  { %v907_v36 = vadd.f32 1.0, %v1488_v33  ;;  %v105_v33 = vadd.f32 %v1776_v4, %v1647_v19 }
 0xc51   :  { %1489 = vrcp.f32 %v907_v36  ;;  %v919_v44 = vand.u32 2147483648, %v907_v36  ;;  %vm913_vm13 = vweird.f32 %v907_v36  ;;  %v917_v46 = vand.u32 2147483647, %v907_v36 }
 0xc52   :  { %1491 = vpow2.f32 %v1373_v53 }
 0xc53   :  { %v920_v47 = vor.u32 1.1754944e-38, %v919_v44  ;;  %vm918_vm15 = vcmp.eq.f32.partialorder %v917_v46, 8.507059e+37 }
 0xc57   :  { %v1490_v3 = vpop.eup %1489 }
 0xc58   :  { %v909_v40 = vmul.f32 %v1490_v3, %v907_v36  ;;  %vm914_vm12 = vweird.f32 %v1490_v3  ;;  %v1492_v54 = vpop.eup %1491 }
 0xc59   :  { %vm915_vm14 = vmor %vm913_vm13, %vm914_vm12  ;;  %v944_v55 = vadd.f32 1.0, %v1492_v54 }
 0xc5a   :  { %v910_v41 = vsub.f32 1.0, %v909_v40 }
 0xc5b   :  { %1493 = vrcp.f32 %v944_v55  ;;  %v956_v39 = vand.u32 2147483648, %v944_v55  ;;  %vm950_vm1 = vweird.f32 %v944_v55  ;;  %v954_v63 = vand.u32 2147483647, %v944_v55 }
 0xc5c   :  { %v911_v16 = vmul.f32 %v1490_v3, %v910_v41 }
 0xc5d   :  { %v957_v1 = vor.u32 1.1754944e-38, %v956_v39  ;;  %vm955_vm3 = vcmp.eq.f32.partialorder %v954_v63, 8.507059e+37 }
 0xc5e   :  { %v912_v43 = vadd.f32 %v1490_v3, %v911_v16 }
 0xc60   :  { %v916_v27 = vsel %vm915_vm14, %v1490_v3, %v912_v43 }
 0xc61   :  { %v921_v50 = vsel %vm918_vm15, %v920_v47, %v916_v27  ;;  %v1494_v57 = vpop.eup %1493 }
 0xc62   :  { %v946_v58 = vmul.f32 %v1494_v57, %v944_v55  ;;  %vm951_vm0 = vweird.f32 %v1494_v57  ;;  %v924_v7 = vmul.f32 %v921_v50, %v1787_v62 }
 0xc63   :  { %vm952_vm2 = vmor %vm950_vm1, %vm951_vm0 }
 0xc64   :  { %v947_v45 = vsub.f32 1.0, %v946_v58 }
 0xc66   :  { %v948_v60 = vmul.f32 %v1494_v57, %v947_v45 }
 0xc68   :  { %v949_v61 = vadd.f32 %v1494_v57, %v948_v60 }
 0xc6a   :  { %v953_v0 = vsel %vm952_vm2, %v1494_v57, %v949_v61 }
 0xc6b   :  { %v958_v6 = vsel %vm955_vm3, %v957_v1, %v953_v0 }
 0xc6c   :  { %v961_v12 = vmul.f32 %v958_v6, %v1792_v2 }
 0xc77   :  { %v927_v48 = vpop.permute.xlu1 %926 }
 0xc78   :  { %v929_v51 = vmul.f32 %v927_v48, %v921_v50 }
 0xc7a   :  { %931 = vrot.lane.b32.xlu0 %v929_v51, %s1532_s0 }
 0xca8   :  { %v964_v10 = vpop.permute.xlu2 %963 }
 0xca9   :  { %v966_v30 = vmul.f32 %v964_v10, %v958_v6 }
 0xcab   :  { %968 = vrot.lane.b32.xlu1 %v966_v30, %s1532_s0 }
 0xcec   :  { %v932_v37 = vpop.permute.xlu0 %931 }
 0xced   :  { %v1814_v8 = vadd.f32 %v932_v37, %v924_v7 }
 0xcef   :  { %1495 = vtanh.f32 %v1814_v8 }
 0xcf5   :  { %v1496_v11 = vpop.eup %1495 }
 0xcf6   :  { %937 = vrot.lane.b32.xlu2 %v1496_v11, %s1532_s0 }
 0xd1d   :  { %v969_v13 = vpop.permute.xlu1 %968 }
 0xd1e   :  { %v1819_v14 = vadd.f32 %v969_v13, %v961_v12 }
 0xd20   :  { %1497 = vtanh.f32 %v1819_v14 }
 0xd26   :  { %v1498_v35 = vpop.eup %1497 }
 0xd27   :  { %974 = vrot.lane.b32.xlu0 %v1498_v35, %s1532_s0 }
 0xd50   :  { %v938_v15 = vpop.permute.xlu2 %937 }
 0xd51   :  { %v940_v62 = vmul.f32 %v938_v15, %v921_v50 }
 0xd53   :  { %v1823_v17 = vpack.c.bf16 %v940_v62, %v940_v62 }
 0xd55   :  { %v991_v20 = vunpack.c.l.b16 %v1823_v17 }
 0xd57   :  { %v992_v21 = vpack.c.b16 %v991_v20, %v991_v20 }
 0xd59   :  { %993 = vrot.lane.b32.xlu1 %v992_v21, %s1533_s3 }
 0xd99   :  { %v975_v24 = vpop.permute.xlu0 %974 }
 0xd9a   :  { %v977_v25 = vmul.f32 %v975_v24, %v958_v6 }
 0xd9c   :  { %v1827_v2 = vpack.c.bf16 %v977_v25, %v977_v25 }
 0xd9e   :  { %v1013_v26 = vunpack.c.l.b16 %v1827_v2 }
 0xda0   :  { %v1014_v29 = vpack.c.b16 %v1013_v26, %v1013_v26 }
 0xda2   :  { %1015 = vrot.lane.b32.xlu2 %v1014_v29, %s1533_s3 }
 0xdcb   :  { %v994_v31 = vpop.permute.xlu1 %993 }
 0xdcc   :  { %1376 = vmatmul.msk.bf16.vlgmr.msra.gmra.mxu0 %vm179_vm9, %v994_v31 }
 0xdfc   :  { %v1016_v32 = vpop.permute.xlu2 %1015 }
 0xdfd   :  { %1377 = vmatmul.msk.bf16.vlgmr.msra.gmra.mxu1 %vm179_vm9, %v1016_v32 }
 0xe49   :  { %v1007_v36 = vpop.f32.mrf.mxu0 }
 0xe4a   :  { %v1011_v3 = vadd.f32 %v1007_v36, %v105_v33 }
 0xe4c   :  { %1499 = vtanh.f32 %v1011_v3  ;;  %v1378_v27 = vmul.f32 -1.442695, %v1011_v3 }
 0xe51   :  { %v1009_v40 = vpop.f32.mrf.mxu0 }
 0xe52   :  { %v1500_v41 = vpop.eup %1499 }
 0xe53   :  { %1056 = vrot.lane.b32.xlu0 %v1500_v41, %s1532_s0 }
 0xe7a   :  { %v1029_v16 = vpop.f32.mrf.mxu1 }
 0xe7b   :  { %v1033_v43 = vadd.f32 %v1029_v16, %v1650_v23 }
 0xe7d   :  { %1501 = vtanh.f32 %v1033_v43  ;;  %v1379_v39 = vmul.f32 -1.442695, %v1033_v43 }
 0xe7e   :  { %1503 = vpow2.f32 %v1378_v27 }
 0xe82   :  { %v1031_v44 = vpop.f32.mrf.mxu1 }
 0xe83   :  { %v1502_v46 = vpop.eup %1501 }
 0xe84   :  { %1093 = vrot.lane.b32.xlu1 %v1502_v46, %s1532_s0  ;;  %v1504_v47 = vpop.eup %1503 }
 0xe85   :  { %v1037_v48 = vadd.f32 1.0, %v1504_v47  ;;  %v107_v47 = vadd.f32 %v1778_v9, %v1647_v19 }
 0xe87   :  { %1505 = vrcp.f32 %v1037_v48  ;;  %v1049_v55 = vand.u32 2147483648, %v1037_v48  ;;  %vm1043_vm5 = vweird.f32 %v1037_v48  ;;  %v1047_v57 = vand.u32 2147483647, %v1037_v48 }
 0xe88   :  { %1507 = vpow2.f32 %v1379_v39 }
 0xe89   :  { %v1050_v58 = vor.u32 1.1754944e-38, %v1049_v55  ;;  %vm1048_vm7 = vcmp.eq.f32.partialorder %v1047_v57, 8.507059e+37 }
 0xe8d   :  { %v1506_v4 = vpop.eup %1505 }
 0xe8e   :  { %v1039_v50 = vmul.f32 %v1506_v4, %v1037_v48  ;;  %vm1044_vm4 = vweird.f32 %v1506_v4  ;;  %v1508_v63 = vpop.eup %1507 }
 0xe8f   :  { %vm1045_vm6 = vmor %vm1043_vm5, %vm1044_vm4  ;;  %v1074_v0 = vadd.f32 1.0, %v1508_v63  ;;  %vm314_vm5 = vcmask 519424  }
 0xe90   :  { %v1040_v51 = vsub.f32 1.0, %v1039_v50 }
 0xe91   :  { %1509 = vrcp.f32 %v1074_v0  ;;  %v1086_v37 = vand.u32 2147483648, %v1074_v0  ;;  %vm1080_vm10 = vweird.f32 %v1074_v0  ;;  %v1084_v11 = vand.u32 2147483647, %v1074_v0 }
 0xe92   :  { %v1041_v53 = vmul.f32 %v1506_v4, %v1040_v51 }
 0xe93   :  { %v1087_v13 = vor.u32 1.1754944e-38, %v1086_v37  ;;  %vm1085_vm12 = vcmp.eq.f32.partialorder %v1084_v11, 8.507059e+37 }
 0xe94   :  { %v1042_v54 = vadd.f32 %v1506_v4, %v1041_v53 }
 0xe96   :  { %v1046_v23 = vsel %vm1045_vm6, %v1506_v4, %v1042_v54  ;;  %vm306_vm6 = vcmask 257024  }
 0xe97   :  { %v1051_v60 = vsel %vm1048_vm7, %v1050_v58, %v1046_v23  ;;  %v1510_v1 = vpop.eup %1509 }
 0xe98   :  { %v1076_v6 = vmul.f32 %v1510_v1, %v1074_v0  ;;  %vm1081_vm8 = vweird.f32 %v1510_v1  ;;  %v1054_v20 = vmul.f32 %v1051_v60, %v1814_v8 }
 0xe99   :  { %vm1082_vm11 = vmor %vm1080_vm10, %vm1081_vm8 }
 0xe9a   :  { %v1077_v10 = vsub.f32 1.0, %v1076_v6 }
 0xe9c   :  { %v1078_v30 = vmul.f32 %v1510_v1, %v1077_v10 }
 0xe9e   :  { %v1079_v7 = vadd.f32 %v1510_v1, %v1078_v30 }
 0xea0   :  { %v1083_v12 = vsel %vm1082_vm11, %v1510_v1, %v1079_v7 }
 0xea1   :  { %v1088_v15 = vsel %vm1085_vm12, %v1087_v13, %v1083_v12 }
 0xea2   :  { %v1091_v26 = vmul.f32 %v1088_v15, %v1819_v14 }
 0xec5   :  { %v1057_v45 = vpop.permute.xlu0 %1056 }
 0xec6   :  { %v1059_v61 = vmul.f32 %v1057_v45, %v1051_v60 }
 0xec8   :  { %1061 = vrot.lane.b32.xlu2 %v1059_v61, %s1532_s0 }
 0xef6   :  { %v1094_v35 = vpop.permute.xlu1 %1093 }
 0xef7   :  { %v1096_v62 = vmul.f32 %v1094_v35, %v1088_v15 }
 0xef9   :  { %1098 = vrot.lane.b32.xlu0 %v1096_v62, %s1532_s0 }
 0xf22   :  { %v1062_v21 = vpop.permute.xlu2 %1061 }
 0xf23   :  { %v1841_v24 = vadd.f32 %v1062_v21, %v1054_v20 }
 0xf25   :  { %1511 = vtanh.f32 %v1841_v24 }
 0xf2b   :  { %v1512_v25 = vpop.eup %1511 }
 0xf2c   :  { %1067 = vrot.lane.b32.xlu1 %v1512_v25, %s1532_s0 }
 0xf6b   :  { %v1099_v29 = vpop.permute.xlu0 %1098 }
 0xf6c   :  { %v1846_v31 = vadd.f32 %v1099_v29, %v1091_v26 }
 0xf6e   :  { %1513 = vtanh.f32 %v1846_v31 }
 0xf74   :  { %v1514_v32 = vpop.eup %1513 }
 0xf75   :  { %1104 = vrot.lane.b32.xlu2 %v1514_v32, %s1532_s0 }
 0xf9e   :  { %v1068_v33 = vpop.permute.xlu1 %1067 }
 0xf9f   :  { %v1070_v8 = vmul.f32 %v1068_v33, %v1051_v60 }
 0xfa1   :  { %v1850_v36 = vpack.c.bf16 %v1070_v8, %v1070_v8 }
 0xfa3   :  { %v1121_v3 = vunpack.c.l.b16 %v1850_v36 }
 0xfa5   :  { %v1122_v40 = vpack.c.b16 %v1121_v3, %v1121_v3 }
 0xfa7   :  { %1123 = vrot.lane.b32.xlu0 %v1122_v40, %s1533_s3 }
 0xfcf   :  { %v1105_v41 = vpop.permute.xlu2 %1104 }
 0xfd0   :  { %v1107_v16 = vmul.f32 %v1105_v41, %v1088_v15 }
 0xfd2   :  { %v1854_v14 = vpack.c.bf16 %v1107_v16, %v1107_v16 }
 0xfd4   :  { %v1143_v43 = vunpack.c.l.b16 %v1854_v14 }
 0xfd6   :  { %v1144_v44 = vpack.c.b16 %v1143_v43, %v1143_v43 }
 0xfd8   :  { %1145 = vrot.lane.b32.xlu1 %v1144_v44, %s1533_s3 }
0x1019   :  { %v1124_v46 = vpop.permute.xlu0 %1123 }
0x101a   :  { %1382 = vmatmul.msk.bf16.vlgmr.msrb.gmra.mxu2 %vm179_vm9, %v1124_v46 }
0x104a   :  { %v1146_v27 = vpop.permute.xlu1 %1145 }
0x104b   :  { %1383 = vmatmul.msk.bf16.vlgmr.msrb.gmra.mxu3 %vm179_vm9, %v1146_v27 }
0x109d   :  { %v1137_v48 = vpop.f32.mrf.mxu2 }
0x109e   :  { %v1141_v4 = vadd.f32 %v1137_v48, %v107_v47 }
0x10a0   :  { %1515 = vtanh.f32 %v1141_v4  ;;  %v1384_v55 = vmul.f32 -1.442695, %v1141_v4 }
0x10a5   :  { %v1139_v50 = vpop.f32.mrf.mxu2 }
0x10a6   :  { %v1516_v51 = vpop.eup %1515 }
0x10a7   :  { %1186 = vrot.lane.b32.xlu2 %v1516_v51, %s1532_s0 }
0x10ce   :  { %v1159_v53 = vpop.f32.mrf.mxu3 }
0x10cf   :  { %v1163_v54 = vadd.f32 %v1159_v53, %v1645_v18 }
0x10d1   :  { %1517 = vtanh.f32 %v1163_v54  ;;  %v1385_v30 = vmul.f32 -1.442695, %v1163_v54 }
0x10d2   :  { %1519 = vpow2.f32 %v1384_v55 }
0x10d6   :  { %v1161_v57 = vpop.f32.mrf.mxu3 }
0x10d7   :  { %v1518_v23 = vpop.eup %1517 }
0x10d8   :  { %1223 = vrot.lane.b32.xlu0 %v1518_v23, %s1532_s0  ;;  %v1520_v58 = vpop.eup %1519 }
0x10d9   :  { %v1167_v19 = vadd.f32 1.0, %v1520_v58 }
0x10db   :  { %1521 = vrcp.f32 %v1167_v19  ;;  %v1179_v18 = vand.u32 2147483648, %v1167_v19  ;;  %vm1173_vm14 = vweird.f32 %v1167_v19  ;;  %v1177_v63 = vand.u32 2147483647, %v1167_v19 }
0x10dc   :  { %1523 = vpow2.f32 %v1385_v30 }
0x10dd   :  { %v1180_v1 = vor.u32 1.1754944e-38, %v1179_v18  ;;  %vm1178_vm0 = vcmp.eq.f32.partialorder %v1177_v63, 8.507059e+37 }
0x10e0   :  { %310 = vrot.lane.b32.xlu0 %v1678_v34, %s1534_s21 }
0x10e1   :  { %v1522_v9 = vpop.eup %1521 }
0x10e2   :  { %v1169_v45 = vmul.f32 %v1522_v9, %v1167_v19  ;;  %vm1174_vm13 = vweird.f32 %v1522_v9  ;;  %v1524_v7 = vpop.eup %1523 }
0x10e3   :  { %vm1175_vm15 = vmor %vm1173_vm14, %vm1174_vm13  ;;  %v1204_v37 = vadd.f32 1.0, %v1524_v7 }
0x10e4   :  { %v1170_v60 = vsub.f32 1.0, %v1169_v45 }
0x10e5   :  { %1525 = vrcp.f32 %v1204_v37  ;;  %v1216_v62 = vand.u32 2147483648, %v1204_v37  ;;  %vm1210_vm2 = vweird.f32 %v1204_v37  ;;  %v1214_v20 = vand.u32 2147483647, %v1204_v37 }
0x10e6   :  { %v1171_v61 = vmul.f32 %v1522_v9, %v1170_v60 }
0x10e7   :  { %v1217_v25 = vor.u32 1.1754944e-38, %v1216_v62  ;;  %vm1215_vm4 = vcmp.eq.f32.partialorder %v1214_v20, 8.507059e+37 }
0x10e8   :  { %v1172_v39 = vadd.f32 %v1522_v9, %v1171_v61 }
0x10ea   :  { %v1176_v0 = vsel %vm1175_vm15, %v1522_v9, %v1172_v39 }
0x10eb   :  { %v1867_v6 = vsel %vm1178_vm0, %v1180_v1, %v1176_v0  ;;  %v1526_v11 = vpop.eup %1525 }
0x10ec   :  { %v1206_v12 = vmul.f32 %v1526_v11, %v1204_v37  ;;  %vm1211_vm1 = vweird.f32 %v1526_v11  ;;  %v1184_v8 = vmul.f32 %v1867_v6, %v1841_v24 }
0x10ed   :  { %vm1212_vm3 = vmor %vm1210_vm2, %vm1211_vm1 }
0x10ee   :  { %v1207_v13 = vsub.f32 1.0, %v1206_v12 }
0x10f0   :  { %v1208_v35 = vmul.f32 %v1526_v11, %v1207_v13 }
0x10f2   :  { %v1209_v15 = vadd.f32 %v1526_v11, %v1208_v35 }
0x10f4   :  { %v1213_v21 = vsel %vm1212_vm3, %v1526_v11, %v1209_v15 }
0x10f5   :  { %v1218_v29 = vsel %vm1215_vm4, %v1217_v25, %v1213_v21 }
0x1101   :  { %v1187_v10 = vpop.permute.xlu2 %1186 }
0x1102   :  { %v1189_v34 = vmul.f32 %v1187_v10, %v1867_v6 }
0x1104   :  { %1191 = vrot.lane.b32.xlu1 %v1189_v34, %s1532_s0 }
0x114a   :  { %v1224_v26 = vpop.permute.xlu0 %1223 }
0x114b   :  { %v1226_v32 = vmul.f32 %v1224_v26, %v1218_v29 }
0x114d   :  { %1228 = vrot.lane.b32.xlu2 %v1226_v32, %s1532_s0 }
0x1152   :  { %v311_v33 = vpop.permute.xlu0 %310 }
0x1153   :  { %1345 = vst.msk [vmem:[%s1994_s4 + $0x1c] sm:$0xf] %vm314_vm5, %v311_v33 }
0x1155   :  { %303 = vrot.lane.b32.xlu2 %v1674_v28, %s1533_s3  ;;  %v1221_v28 = vmul.f32 %v1218_v29, %v1846_v31 }
0x115d   :  { %449 = vrot.lane.b32.xlu2 %v1708_v22, %s1534_s21 }
0x1165   :  { %718 = vrot.lane.b32.xlu2 %v1764_v59, %s1533_s3 }
0x116d   :  { %856 = vrot.lane.b32.xlu2 %v1800_v56, %s1534_s21 }
0x1175   :  { %1110 = vrot.lane.b32.xlu2 %v1850_v36, %s1533_s3 }
0x1176   :  { %v1192_v3 = vpop.permute.xlu1 %1191 }
0x1177   :  { %v1194_v40 = vadd.f32 %v1192_v3, %v1184_v8 }
0x1179   :  { %1527 = vtanh.f32 %v1194_v40 }
0x117f   :  { %v1528_v41 = vpop.eup %1527 }
0x1180   :  { %1197 = vrot.lane.b32.xlu0 %v1528_v41, %s1532_s0 }
0x1188   :  { %580 = vrot.lane.b32.xlu0 %v1734_v52, %s1533_s3 }
0x1190   :  { %725 = vrot.lane.b32.xlu0 %v1768_v49, %s1534_s21 }
0x1198   :  { %980 = vrot.lane.b32.xlu0 %v1823_v17, %s1533_s3 }
0x11a0   :  { %1116 = vrot.lane.b32.xlu0 %v1854_v14, %s1534_s21 }
0x11a7   :  { %v1229_v22 = vpop.permute.xlu2 %1228 }
0x11a8   :  { %v1231_v59 = vadd.f32 %v1229_v22, %v1221_v28 }
0x11aa   :  { %1529 = vtanh.f32 %v1231_v59 }
0x11af   :  { %v304_v56 = vpop.permute.xlu2 %303 }
0x11b0   :  { %v1530_v24 = vpop.eup %1529  ;;  %307 = vst.msk [vmem:[%s1994_s4] sm:$0xf] %vm306_vm6, %v304_v56 }
0x11b1   :  { %1234 = vrot.lane.b32.xlu1 %v1530_v24, %s1532_s0 }
0x11b7   :  { %v450_v52 = vpop.permute.xlu2 %449 }
0x11b8   :  { %1351 = vst.msk [vmem:[%s1994_s4 + $0x18] sm:$0xf] %vm314_vm5, %v450_v52 }
0x11b9   :  { %442 = vrot.lane.b32.xlu1 %v1704_v42, %s1533_s3 }
0x11bf   :  { %v719_v49 = vpop.permute.xlu2 %718 }
0x11c0   :  { %1362 = vst.msk [vmem:[%s1994_s4 + $0xc] sm:$0xf] %vm306_vm6, %v719_v49 }
0x11c1   :  { %587 = vrot.lane.b32.xlu1 %v1738_v38, %s1534_s21 }
0x11c7   :  { %v857_v17 = vpop.permute.xlu2 %856 }
0x11c8   :  { %1369 = vst.msk [vmem:[%s1994_s4 + $0xc] sm:$0xf] %vm314_vm5, %v857_v17 }
0x11c9   :  { %850 = vrot.lane.b32.xlu1 %v1796_v5, %s1533_s3 }
0x11cf   :  { %v1111_v31 = vpop.permute.xlu2 %1110 }
0x11d0   :  { %1380 = vst.msk [vmem:[%s1994_s4 + $0x18] sm:$0xf] %vm306_vm6, %v1111_v31 }
0x11d1   :  { %986 = vrot.lane.b32.xlu1 %v1827_v2, %s1534_s21 }
0x11f2   :  { %v1198_v42 = vpop.permute.xlu0 %1197 }
0x11f3   :  { %v1200_v38 = vmul.f32 %v1198_v42, %v1867_v6 }
0x11f5   :  { %v1238_v36 = vpack.c.bf16 %v1200_v38, %v1200_v38  ;;  %1251 = vrot.lane.b32.xlu0 %v1200_v38, %s1533_s3 }
0x11f7   :  { %1240 = vrot.lane.b32.xlu1 %v1238_v36, %s1533_s3 }
0x11fa   :  { %v581_v16 = vpop.permute.xlu0 %580 }
0x11fb   :  { %1356 = vst.msk [vmem:[%s1994_s4 + $0x8] sm:$0xf] %vm306_vm6, %v581_v16 }
0x11fd   :  { %1267 = vrot.lane.b32.xlu0 %v1231_v59, %s1534_s21 }
0x1202   :  { %v726_v5 = vpop.permute.xlu0 %725 }
0x1203   :  { %1363 = vst.msk [vmem:[%s1994_s4 + $0x10] sm:$0xf] %vm314_vm5, %v726_v5 }
0x120a   :  { %v981_v2 = vpop.permute.xlu0 %980 }
0x1212   :  { %v1117_v27 = vpop.permute.xlu0 %1116 }
0x1223   :  { %v1235_v14 = vpop.permute.xlu1 %1234 }
0x1224   :  { %v1237_v43 = vmul.f32 %v1235_v14, %v1218_v29 }
0x1226   :  { %v1244_v44 = vpack.c.bf16 %v1237_v43, %v1237_v43  ;;  %1256 = vrot.lane.b32.xlu1 %v1237_v43, %s1533_s3 }
0x1228   :  { %1246 = vrot.lane.b32.xlu2 %v1244_v44, %s1534_s21 }
0x122b   :  { %v443_v46 = vpop.permute.xlu1 %442 }
0x122c   :  { %1350 = vst.msk [vmem:[%s1994_s4 + $0x4] sm:$0xf] %vm306_vm6, %v443_v46 }
0x122d   :  { %1381 = vst.msk [vmem:[%s1994_s4 + $0x4] sm:$0xf] %vm314_vm5, %v1117_v27 }
0x1230   :  { %1262 = vrot.lane.b32.xlu2 %v1194_v40, %s1534_s21 }
0x1233   :  { %v588_v47 = vpop.permute.xlu1 %587 }
0x1234   :  { %1357 = vst.msk [vmem:[%s1994_s4 + $0x14] sm:$0xf] %vm314_vm5, %v588_v47 }
0x1235   :  { %1374 = vst.msk [vmem:[%s1994_s4 + $0x14] sm:$0xf] %vm306_vm6, %v981_v2 }
0x123b   :  { %v851_v48 = vpop.permute.xlu1 %850 }
0x123c   :  { %1368 = vst.msk [vmem:[%s1994_s4 + $0x10] sm:$0xf] %vm306_vm6, %v851_v48 }
0x1243   :  { %v987_v4 = vpop.permute.xlu1 %986 }
0x1244   :  { %1375 = vst.msk [vmem:[%s1994_s4 + $0x8] sm:$0xf] %vm314_vm5, %v987_v4 }
0x1267   :  { %v1252_v50 = vpop.permute.xlu0 %1251 }
0x1268   :  { %1254 = vst.msk [vmem:[%s1995_s5] sm:$0xff] %vm179_vm9, %v1252_v50 }
0x1269   :  { %v1241_v51 = vpop.permute.xlu1 %1240 }
0x126a   :  { %1386 = vst.msk [vmem:[%s1994_s4 + $0x1c] sm:$0xf] %vm306_vm6, %v1241_v51 }
0x126f   :  { %v1268_v53 = vpop.permute.xlu0 %1267 }
0x1270   :  { %1388 = vst.msk [vmem:[%s1996_s6 + $0x8] sm:$0xff] %vm179_vm9, %v1268_v53 }
0x1282   :  { %v1247_v54 = vpop.permute.xlu2 %1246 }
0x1283   :  { %1249 = vst.msk [vmem:[%s1994_s4] sm:$0xf] %vm314_vm5, %v1247_v54 }
0x128a   :  { %v1263_v55 = vpop.permute.xlu2 %1262 }
0x128b   :  { %1265 = vst.msk [vmem:[%s1996_s6] sm:$0xff] %vm179_vm9, %v1263_v55 }
0x1298   :  { %v1257_v57 = vpop.permute.xlu1 %1256 }
0x1299   :  { %1387 = vst.msk [vmem:[%s1995_s5 + $0x8] sm:$0xff] %vm179_vm9, %v1257_v57 }

// kernel: encoder_forward.3
= control target key start
LH: loop header
LB: loop body
LE: loop exit
PB: predicated region body
PF: predicated region fallthrough
CT: control target
= control target key end

     0   :  { %s2077_s0 = inlined_call_operand.vmem [shape: bf16[64,64], index: 0, kind: input, shape index: {}]   ;;  %s2078_s1 = inlined_call_operand.vmem [shape: bf16[64,256], index: 1, kind: input, shape index: {}]   ;;  %s2079_s2 = inlined_call_operand.vmem [shape: bf16[2,32,128], index: 2, kind: input, shape index: {}]   ;;  %s2080_s3 = inlined_call_operand.vmem [shape: f32[1,256], index: 3, kind: input, shape index: {}]   ;;  %s2081_s4 = inlined_call_operand.hbm [shape: bf16[64,64], index: 4, kind: output, shape index: {0}]   ;;  %s2082_s5 = inlined_call_operand.vmem [shape: f32[2,8,32], index: 5, kind: output, shape index: {1}]   ;;  %s2083_s6 = inlined_call_operand.vmem [shape: f32[2,8,32], index: 6, kind: output, shape index: {2}]  }
   0x1   :  { %v1384_v0 = vld [vmem:[%s2078_s1 + $0x30] sm:$0xf]  ;;  %v1461_v1 = vld [vmem:[%s2078_s1 + $0x34] sm:$0xf0]  ;;  %v1460_v2 = vld [vmem:[%s2078_s1 + $0x34] sm:$0xf] }
   0x2   :  { %v1385_v3 = vor.u32 %v1461_v1, %v1384_v0  ;;  %v1386_v4 = vld [vmem:[%s2078_s1 + $0x38] sm:$0xf0]  ;;  %v1376_v5 = vld [vmem:[%s2078_s1 + $0x20] sm:$0xf]  ;;  %v1459_v6 = vld [vmem:[%s2078_s1 + $0x24] sm:$0xf0] }
   0x3   :  { %v1389_v7 = vor.u32 %v1460_v2, %v1386_v4  ;;  %v1458_v8 = vld [vmem:[%s2078_s1 + $0x24] sm:$0xf]  ;;  %v1378_v9 = vld [vmem:[%s2078_s1 + $0x28] sm:$0xf0]  ;;  %v1377_v11 = vor.u32 %v1459_v6, %v1376_v5  ;;  %v1368_v13 = vld [vmem:[%s2078_s1 + $0x10] sm:$0xf] }
   0x4   :  { %v1694_v10 = vld [vmem:[%s2079_s2 + $0x8] sm:$0xff]  ;;  %121 = vmatpush.bf16.msra.mxu0 %v1385_v3  ;;  %v1381_v12 = vor.u32 %v1458_v8, %v1378_v9  ;;  %v1457_v14 = vld [vmem:[%s2078_s1 + $0x14] sm:$0xf0]  ;;  %v1706_v15 = vld [vmem:[%s2079_s2] sm:$0xff] }
   0x5   :  { %150 = vmatpush.bf16.msra.mxu1 %v1389_v7  ;;  %226 = vmatpush.bf16.msra.mxu2 %v1694_v10  ;;  %v1456_v16 = vld [vmem:[%s2078_s1 + $0x14] sm:$0xf]  ;;  %v1370_v17 = vld [vmem:[%s2078_s1 + $0x18] sm:$0xf0]  ;;  %v1369_v18 = vor.u32 %v1457_v14, %v1368_v13 }
   0x8   :  { %122 = vmatpush.bf16.msra.mxu0 %v1377_v11 }
   0x9   :  { %12 = vsyncpa [#allocation4], 0  ;;  %151 = vmatpush.bf16.msra.mxu1 %v1381_v12  ;;  %v1373_v19 = vor.u32 %v1456_v16, %v1370_v17  ;;  %227 = vmatpush.bf16.msra.mxu2 %v1706_v15  ;;  %v1360_v20 = vld [vmem:[%s2078_s1] sm:$0xf]  ;;  %v1455_v21 = vld [vmem:[%s2078_s1 + $0x4] sm:$0xf0] }
   0xa   :  { %v1454_v22 = vld [vmem:[%s2078_s1 + $0x4] sm:$0xf]  ;;  %v1362_v23 = vld [vmem:[%s2078_s1 + $0x8] sm:$0xf0]  ;;  %v1626_v24 = vmov 0   ;;  %v1361_v25 = vor.u32 %v1455_v21, %v1360_v20  ;;  %vm104_vm0 = vcmask 523264  }
   0xb   :  { %v1365_v26 = vor.u32 %v1454_v22, %v1362_v23  ;;  %v1450_v27 = vld [vmem:[%s2077_s0] sm:$0xff]  ;;  %v1740_v28 = vld [vmem:[%s2079_s2 + $0x18] sm:$0xff]  ;;  %v1747_v29 = vld [vmem:[%s2079_s2 + $0x10] sm:$0xff]  ;;  %vm216_vm9 = vcmask 261120   ;;  %s1629_s21 = smov 96   ;;  %s1630_s26 = smov [#allocation3]  }
   0xc   :  { %123 = vmatpush.bf16.msra.mxu0 %v1369_v18  ;;  %228 = vmatmul.bf16.vlgmr.msra.gmra.mxu2 %v1626_v24  ;;  %v1451_v30 = vld [vmem:[%s2077_s0 + $0x8] sm:$0xff]  ;;  %v1452_v31 = vld [vmem:[%s2077_s0 + $0x10] sm:$0xff]  ;;  %v1453_v32 = vld [vmem:[%s2077_s0 + $0x18] sm:$0xff]  ;;  %s1627_s0 = smov 32   ;;  %s1313_s27 = sshll.u32 %s1630_s26, 4  ;;  %s1314_s27 = int_to_ptr.vmem [resolvable:$true] %s1313_s27 }
   0xd   :  { %370 = vmatpush.bf16.msrb.mxu2 %v1694_v10  ;;  %152 = vmatpush.bf16.msra.mxu1 %v1373_v19  ;;  %v38_v33 = vld [vmem:[%s2080_s3] sm:$0x3]  ;;  %s1628_s3 = smov 64   ;;  %s1315_s30 = sshll.u32 %s2081_s4, 4  ;;  %s1316_s30 = int_to_ptr.hbm [resolvable:$true] %s1315_s30 }
   0xe   :  { %256 = vmatpush.bf16.msra.mxu3 %v1740_v28  ;;  %v1778_v34 = vperm.slane %v38_v33, 0  ;;  %v41_v35 = vperm.slane %v38_v33, 1  ;;  %s1631_s7 = smov 4  }
  0x10   :  { %124 = vmatpush.bf16.msra.mxu0 %v1361_v25 }
  0x11   :  { %371 = vmatpush.bf16.msrb.mxu2 %v1706_v15  ;;  %153 = vmatpush.bf16.msra.mxu1 %v1365_v26 }
  0x12   :  { %257 = vmatpush.bf16.msra.mxu3 %v1747_v29 }
  0x13   :  { %1390 = vmatmul.msk.bf16.vlgmr.msra.gmra.mxu0 %vm104_vm0, %v1450_v27 }
  0x14   :  { %911 = vmatpush.bf16.msrb.mxu0 %v1694_v10  ;;  %1394 = vmatmul.msk.bf16.vlgmr.msra.gmra.mxu1 %vm104_vm0, %v1450_v27 }
  0x15   :  { %508 = vmatpush.bf16.msra.mxu2 %v1694_v10  ;;  %933 = vmatpush.bf16.msrb.mxu1 %v1740_v28 }
  0x16   :  { %395 = vmatpush.bf16.msrb.mxu3 %v1740_v28 }
  0x17   :  { %258 = vmatmul.bf16.vlgmr.msra.gmra.mxu3 %v1626_v24 }
  0x18   :  { %912 = vmatpush.bf16.msrb.mxu0 %v1706_v15 }
  0x19   :  { %509 = vmatpush.bf16.msra.mxu2 %v1706_v15  ;;  %934 = vmatpush.bf16.msrb.mxu1 %v1747_v29 }
  0x1a   :  { %396 = vmatpush.bf16.msrb.mxu3 %v1747_v29 }
  0x1c   :  { %1171 = vmatpush.bf16.msra.mxu0 %v1694_v10 }
  0x1d   :  { %1193 = vmatpush.bf16.msra.mxu1 %v1740_v28 }
  0x1e   :  { %533 = vmatpush.bf16.msra.mxu3 %v1740_v28 }
  0x20   :  { %1172 = vmatpush.bf16.msra.mxu0 %v1706_v15 }
  0x21   :  { %1194 = vmatpush.bf16.msra.mxu1 %v1747_v29 }
  0x22   :  { %534 = vmatpush.bf16.msra.mxu3 %v1747_v29 }
  0x23   :  { %1391 = vmatmul.msk.bf16.gmra.mxu0 %vm104_vm0, %v1451_v30 }
  0x24   :  { %1395 = vmatmul.msk.bf16.gmra.mxu1 %vm104_vm0, %v1451_v30 }
  0x33   :  { %1392 = vmatmul.msk.bf16.gmra.mxu0 %vm104_vm0, %v1452_v31 }
  0x34   :  { %1396 = vmatmul.msk.bf16.gmra.mxu1 %vm104_vm0, %v1452_v31 }
  0x43   :  { %1393 = vmatmul.msk.bf16.gmra.mxu0 %vm104_vm0, %v1453_v32 }
  0x44   :  { %1397 = vmatmul.msk.bf16.gmra.mxu1 %vm104_vm0, %v1453_v32 }
  0x8f   :  { %v229_v36 = vpop.f32.mrf.mxu2 }
  0x90   :  { %v126_v37 = vpop.f32.mrf.mxu0 }
  0x91   :  { %v127_v38 = vadd.f32 %v126_v37, %v1778_v34  ;;  %v155_v39 = vpop.f32.mrf.mxu1 }
  0x92   :  { %v1781_v40 = vadd.f32 %v155_v39, %v41_v35 }
  0x93   :  { %v233_v41 = vadd.f32 %v229_v36, %v127_v38 }
  0x95   :  { %1472 = vtanh.f32 %v233_v41  ;;  %v1418_v62 = vmul.f32 -1.442695, %v233_v41 }
  0x97   :  { %v231_v42 = vpop.f32.mrf.mxu2 }
  0x99   :  { %v157_v43 = vpop.f32.mrf.mxu1 }
  0x9a   :  { %v1783_v44 = vadd.f32 %v157_v43, %v41_v35  ;;  %v259_v48 = vpop.f32.mrf.mxu3 }
  0x9b   :  { %v1473_v45 = vpop.eup %1472 }
  0x9c   :  { %286 = vrot.lane.b32.xlu0 %v1473_v45, %s1627_s0 }
  0xa1   :  { %v160_v46 = vpop.f32.mrf.mxu1 }
  0xa2   :  { %v1786_v47 = vadd.f32 %v160_v46, %v41_v35  ;;  %v261_v51 = vpop.f32.mrf.mxu3 }
  0xa9   :  { %v162_v49 = vpop.f32.mrf.mxu1 }
  0xaa   :  { %v1788_v50 = vadd.f32 %v162_v49, %v41_v35 }
  0xb1   :  { %v165_v52 = vpop.f32.mrf.mxu1 }
  0xb2   :  { %v1790_v53 = vadd.f32 %v165_v52, %v41_v35 }
  0xb9   :  { %v167_v54 = vpop.f32.mrf.mxu1 }
  0xba   :  { %v1792_v55 = vadd.f32 %v167_v54, %v41_v35 }
  0xc1   :  { %v170_v56 = vpop.f32.mrf.mxu1 }
  0xc2   :  { %v1794_v57 = vadd.f32 %v170_v56, %v41_v35 }
  0xc9   :  { %v172_v58 = vpop.f32.mrf.mxu1 }
  0xca   :  { %v173_v59 = vadd.f32 %v172_v58, %v41_v35 }
  0xcc   :  { %v263_v60 = vadd.f32 %v259_v48, %v173_v59 }
  0xce   :  { %1474 = vtanh.f32 %v263_v60  ;;  %v1419_v14 = vmul.f32 -1.442695, %v263_v60  ;;  %v128_v60 = vpop.f32.mrf.mxu0 }
  0xcf   :  { %1476 = vpow2.f32 %v1418_v62 }
  0xd4   :  { %v1475_v61 = vpop.eup %1474 }
  0xd5   :  { %323 = vrot.lane.b32.xlu0 %v1475_v61, %s1627_s0  ;;  %v1477_v63 = vpop.eup %1476  ;;  %v129_v61 = vadd.f32 %v128_v60, %v1778_v34 }
  0xd6   :  { %v267_v0 = vadd.f32 1.0, %v1477_v63 }
  0xd8   :  { %1478 = vrcp.f32 %v267_v0  ;;  %vm273_vm1 = vweird.f32 %v267_v0  ;;  %v279_v5 = vand.u32 2147483648, %v267_v0  ;;  %v277_v7 = vand.u32 2147483647, %v267_v0 }
  0xd9   :  { %1480 = vpow2.f32 %v1419_v14 }
  0xda   :  { %v280_v8 = vor.u32 1.1754944e-38, %v279_v5  ;;  %vm278_vm4 = vcmp.eq.f32.partialorder %v277_v7, 8.507059e+37 }
  0xde   :  { %v1479_v1 = vpop.eup %1478 }
  0xdf   :  { %v269_v2 = vmul.f32 %v1479_v1, %v267_v0  ;;  %vm274_vm2 = vweird.f32 %v1479_v1  ;;  %v1481_v16 = vpop.eup %1480 }
  0xe0   :  { %vm275_vm3 = vmor %vm273_vm1, %vm274_vm2  ;;  %v304_v17 = vadd.f32 1.0, %v1481_v16 }
  0xe1   :  { %v270_v3 = vsub.f32 1.0, %v269_v2 }
  0xe2   :  { %1482 = vrcp.f32 %v304_v17  ;;  %v316_v23 = vand.u32 2147483648, %v304_v17  ;;  %vm310_vm6 = vweird.f32 %v304_v17  ;;  %v314_v24 = vand.u32 2147483647, %v304_v17 }
  0xe3   :  { %v271_v4 = vmul.f32 %v1479_v1, %v270_v3 }
  0xe4   :  { %v317_v26 = vor.u32 1.1754944e-38, %v316_v23  ;;  %vm315_vm8 = vcmp.eq.f32.partialorder %v314_v24, 8.507059e+37 }
  0xe5   :  { %v272_v6 = vadd.f32 %v1479_v1, %v271_v4 }
  0xe7   :  { %v276_v9 = vsel %vm275_vm3, %v1479_v1, %v272_v6 }
  0xe8   :  { %v281_v12 = vsel %vm278_vm4, %v280_v8, %v276_v9  ;;  %v1483_v18 = vpop.eup %1482 }
  0xe9   :  { %v306_v19 = vmul.f32 %v1483_v18, %v304_v17  ;;  %vm311_vm5 = vweird.f32 %v1483_v18  ;;  %v284_v32 = vmul.f32 0.0, %v281_v12 }
  0xea   :  { %vm312_vm7 = vmor %vm310_vm6, %vm311_vm5 }
  0xeb   :  { %v307_v20 = vsub.f32 1.0, %v306_v19 }
  0xed   :  { %v308_v21 = vmul.f32 %v1483_v18, %v307_v20 }
  0xef   :  { %v309_v22 = vadd.f32 %v1483_v18, %v308_v21 }
  0xf1   :  { %v313_v25 = vsel %vm312_vm7, %v1483_v18, %v309_v22 }
  0xf2   :  { %v318_v27 = vsel %vm315_vm8, %v317_v26, %v313_v25 }
  0xf3   :  { %v321_v37 = vmul.f32 0.0, %v318_v27 }
 0x10e   :  { %v287_v11 = vpop.permute.xlu0 %286 }
 0x10f   :  { %v289_v13 = vmul.f32 %v287_v11, %v281_v12 }
 0x111   :  { %291 = vrot.lane.b32.xlu1 %v289_v13, %s1627_s0 }
 0x147   :  { %v324_v30 = vpop.permute.xlu0 %323 }
 0x148   :  { %v326_v31 = vmul.f32 %v324_v30, %v318_v27 }
 0x14a   :  { %328 = vrot.lane.b32.xlu1 %v326_v31, %s1627_s0 }
 0x183   :  { %v292_v33 = vpop.permute.xlu1 %291 }
 0x184   :  { %v1799_v35 = vadd.f32 %v292_v33, %v284_v32 }
 0x186   :  { %1484 = vtanh.f32 %v1799_v35 }
 0x18c   :  { %v1485_v36 = vpop.eup %1484 }
 0x18d   :  { %297 = vrot.lane.b32.xlu2 %v1485_v36, %s1627_s0 }
 0x1bc   :  { %v329_v38 = vpop.permute.xlu1 %328 }
 0x1bd   :  { %v1803_v39 = vadd.f32 %v329_v38, %v321_v37 }
 0x1bf   :  { %1486 = vtanh.f32 %v1803_v39 }
 0x1c5   :  { %v1487_v41 = vpop.eup %1486 }
 0x1c6   :  { %334 = vrot.lane.b32.xlu2 %v1487_v41, %s1627_s0 }
 0x1e7   :  { %v298_v42 = vpop.permute.xlu2 %297 }
 0x1e8   :  { %v300_v43 = vmul.f32 %v298_v42, %v281_v12 }
 0x1ea   :  { %v1807_v45 = vpack.c.bf16 %v300_v43, %v300_v43 }
 0x1ec   :  { %v357_v46 = vunpack.c.l.b16 %v1807_v45 }
 0x1ee   :  { %v358_v48 = vpack.c.b16 %v357_v46, %v357_v46 }
 0x1f0   :  { %359 = vrot.lane.b32.xlu0 %v358_v48, %s1628_s3 }
 0x220   :  { %v335_v49 = vpop.permute.xlu2 %334 }
 0x221   :  { %v337_v51 = vmul.f32 %v335_v49, %v318_v27 }
 0x223   :  { %v1811_v52 = vpack.c.bf16 %v337_v51, %v337_v51 }
 0x225   :  { %v382_v54 = vunpack.c.l.b16 %v1811_v52 }
 0x227   :  { %v383_v56 = vpack.c.b16 %v382_v54, %v382_v54 }
 0x229   :  { %384 = vrot.lane.b32.xlu1 %v383_v56, %s1628_s3 }
 0x262   :  { %v360_v58 = vpop.permute.xlu0 %359 }
 0x263   :  { %1420 = vmatmul.msk.bf16.vlgmr.msrb.gmra.mxu2 %vm216_vm9, %v360_v58 }
 0x264   :  { %646 = vmatpush.bf16.msrb.mxu2 %v1694_v10 }
 0x268   :  { %647 = vmatpush.bf16.msrb.mxu2 %v1706_v15 }
 0x29b   :  { %v385_v59 = vpop.permute.xlu1 %384 }
 0x29c   :  { %1421 = vmatmul.msk.bf16.vlgmr.msrb.gmra.mxu3 %vm216_vm9, %v385_v59 }
 0x29d   :  { %671 = vmatpush.bf16.msrb.mxu3 %v1740_v28 }
 0x2a1   :  { %672 = vmatpush.bf16.msrb.mxu3 %v1747_v29 }
 0x2e6   :  { %v373_v62 = vpop.f32.mrf.mxu2 }
 0x2e7   :  { %v377_v63 = vadd.f32 %v373_v62, %v129_v61 }
 0x2e9   :  { %1488 = vtanh.f32 %v377_v63  ;;  %v1422_v2 = vmul.f32 -1.442695, %v377_v63 }
 0x2eb   :  { %1490 = vpow2.f32 %v1422_v2 }
 0x2ee   :  { %v375_v0 = vpop.f32.mrf.mxu2 }
 0x2ef   :  { %v1489_v1 = vpop.eup %1488 }
 0x2f0   :  { %425 = vrot.lane.b32.xlu2 %v1489_v1, %s1627_s0 }
 0x2f1   :  { %v1491_v5 = vpop.eup %1490 }
 0x2f2   :  { %v406_v8 = vadd.f32 1.0, %v1491_v5  ;;  %v131_v5 = vpop.f32.mrf.mxu0 }
 0x2f4   :  { %v418_v16 = vand.u32 2147483648, %v406_v8  ;;  %vm412_vm11 = vweird.f32 %v406_v8  ;;  %v416_v17 = vand.u32 2147483647, %v406_v8 }
 0x2f6   :  { %v419_v18 = vor.u32 1.1754944e-38, %v418_v16  ;;  %vm417_vm13 = vcmp.eq.f32.partialorder %v416_v17, 8.507059e+37 }
 0x31f   :  { %v398_v3 = vpop.f32.mrf.mxu3 }
 0x320   :  { %v402_v4 = vadd.f32 %v398_v3, %v1794_v57 }
 0x322   :  { %1492 = vtanh.f32 %v402_v4  ;;  %v1423_v22 = vmul.f32 -1.442695, %v402_v4 }
 0x323   :  { %1494 = vrcp.f32 %v406_v8 }
 0x324   :  { %1496 = vpow2.f32 %v1423_v22 }
 0x327   :  { %v400_v6 = vpop.f32.mrf.mxu3 }
 0x328   :  { %v1493_v7 = vpop.eup %1492  ;;  %v132_v6 = vadd.f32 %v131_v5, %v1778_v34 }
 0x329   :  { %462 = vrot.lane.b32.xlu0 %v1493_v7, %s1627_s0  ;;  %v1495_v9 = vpop.eup %1494 }
 0x32a   :  { %v408_v11 = vmul.f32 %v1495_v9, %v406_v8  ;;  %vm413_vm10 = vweird.f32 %v1495_v9  ;;  %v1497_v23 = vpop.eup %1496 }
 0x32b   :  { %vm414_vm12 = vmor %vm412_vm11, %vm413_vm10  ;;  %v443_v24 = vadd.f32 1.0, %v1497_v23 }
 0x32c   :  { %v409_v12 = vsub.f32 1.0, %v408_v11 }
 0x32d   :  { %1498 = vrcp.f32 %v443_v24  ;;  %v455_v32 = vand.u32 2147483648, %v443_v24  ;;  %vm449_vm15 = vweird.f32 %v443_v24  ;;  %v453_v33 = vand.u32 2147483647, %v443_v24 }
 0x32e   :  { %v410_v13 = vmul.f32 %v1495_v9, %v409_v12 }
 0x32f   :  { %v456_v37 = vor.u32 1.1754944e-38, %v455_v32  ;;  %vm454_vm1 = vcmp.eq.f32.partialorder %v453_v33, 8.507059e+37 }
 0x330   :  { %v411_v14 = vadd.f32 %v1495_v9, %v410_v13 }
 0x332   :  { %v415_v57 = vsel %vm414_vm12, %v1495_v9, %v411_v14 }
 0x333   :  { %v420_v19 = vsel %vm417_vm13, %v419_v18, %v415_v57  ;;  %v1499_v25 = vpop.eup %1498 }
 0x334   :  { %v445_v26 = vmul.f32 %v1499_v25, %v443_v24  ;;  %vm450_vm14 = vweird.f32 %v1499_v25  ;;  %v423_v43 = vmul.f32 %v420_v19, %v1799_v35 }
 0x335   :  { %vm451_vm0 = vmor %vm449_vm15, %vm450_vm14 }
 0x336   :  { %v446_v27 = vsub.f32 1.0, %v445_v26 }
 0x338   :  { %v447_v30 = vmul.f32 %v1499_v25, %v446_v27 }
 0x33a   :  { %v448_v31 = vadd.f32 %v1499_v25, %v447_v30 }
 0x33c   :  { %v452_v36 = vsel %vm451_vm0, %v1499_v25, %v448_v31 }
 0x33d   :  { %v457_v41 = vsel %vm454_vm1, %v456_v37, %v452_v36 }
 0x33e   :  { %v460_v51 = vmul.f32 %v457_v41, %v1803_v39 }
 0x34a   :  { %v426_v20 = vpop.permute.xlu2 %425 }
 0x34b   :  { %v428_v21 = vmul.f32 %v426_v20, %v420_v19 }
 0x34d   :  { %430 = vrot.lane.b32.xlu1 %v428_v21, %s1627_s0 }
 0x39b   :  { %v463_v38 = vpop.permute.xlu0 %462 }
 0x39c   :  { %v465_v42 = vmul.f32 %v463_v38, %v457_v41 }
 0x39e   :  { %467 = vrot.lane.b32.xlu2 %v465_v42, %s1627_s0 }
 0x3bf   :  { %v431_v46 = vpop.permute.xlu1 %430 }
 0x3c0   :  { %v1828_v48 = vadd.f32 %v431_v46, %v423_v43 }
 0x3c2   :  { %1500 = vtanh.f32 %v1828_v48 }
 0x3c8   :  { %v1501_v49 = vpop.eup %1500 }
 0x3c9   :  { %436 = vrot.lane.b32.xlu0 %v1501_v49, %s1627_s0 }
 0x3f8   :  { %v468_v54 = vpop.permute.xlu2 %467 }
 0x3f9   :  { %v1833_v56 = vadd.f32 %v468_v54, %v460_v51 }
 0x3fb   :  { %1502 = vtanh.f32 %v1833_v56 }
 0x401   :  { %v1503_v58 = vpop.eup %1502 }
 0x402   :  { %473 = vrot.lane.b32.xlu1 %v1503_v58, %s1627_s0 }
 0x43b   :  { %v437_v59 = vpop.permute.xlu0 %436 }
 0x43c   :  { %v439_v35 = vmul.f32 %v437_v59, %v420_v19 }
 0x43e   :  { %v1837_v60 = vpack.c.bf16 %v439_v35, %v439_v35 }
 0x440   :  { %v495_v61 = vunpack.c.l.b16 %v1837_v60 }
 0x442   :  { %v496_v62 = vpack.c.b16 %v495_v61, %v495_v61 }
 0x444   :  { %497 = vrot.lane.b32.xlu2 %v496_v62, %s1628_s3 }
 0x474   :  { %v474_v63 = vpop.permute.xlu1 %473 }
 0x475   :  { %v476_v0 = vmul.f32 %v474_v63, %v457_v41 }
 0x477   :  { %v1841_v39 = vpack.c.bf16 %v476_v0, %v476_v0 }
 0x479   :  { %v520_v1 = vunpack.c.l.b16 %v1841_v39 }
 0x47b   :  { %v521_v2 = vpack.c.b16 %v520_v1, %v520_v1 }
 0x47d   :  { %522 = vrot.lane.b32.xlu0 %v521_v2, %s1628_s3 }
 0x49e   :  { %v498_v3 = vpop.permute.xlu2 %497 }
 0x49f   :  { %1424 = vmatmul.msk.bf16.vlgmr.msra.gmra.mxu2 %vm216_vm9, %v498_v3 }
 0x4a0   :  { %781 = vmatpush.bf16.msra.mxu2 %v1694_v10 }
 0x4a4   :  { %782 = vmatpush.bf16.msra.mxu2 %v1706_v15 }
 0x4ef   :  { %v523_v4 = vpop.permute.xlu0 %522 }
 0x4f0   :  { %1425 = vmatmul.msk.bf16.vlgmr.msra.gmra.mxu3 %vm216_vm9, %v523_v4 }
 0x4f1   :  { %803 = vmatpush.bf16.msra.mxu3 %v1740_v28 }
 0x4f5   :  { %804 = vmatpush.bf16.msra.mxu3 %v1747_v29 }
 0x522   :  { %v511_v7 = vpop.f32.mrf.mxu2 }
 0x523   :  { %v515_v8 = vadd.f32 %v511_v7, %v132_v6 }
 0x525   :  { %1504 = vtanh.f32 %v515_v8  ;;  %v1426_v12 = vmul.f32 -1.442695, %v515_v8 }
 0x527   :  { %1506 = vpow2.f32 %v1426_v12 }
 0x52a   :  { %v513_v9 = vpop.f32.mrf.mxu2 }
 0x52b   :  { %v1505_v11 = vpop.eup %1504 }
 0x52c   :  { %563 = vrot.lane.b32.xlu1 %v1505_v11, %s1627_s0 }
 0x52d   :  { %v1507_v16 = vpop.eup %1506 }
 0x52e   :  { %v544_v18 = vadd.f32 1.0, %v1507_v16 }
 0x530   :  { %v556_v24 = vand.u32 2147483648, %v544_v18  ;;  %vm550_vm3 = vweird.f32 %v544_v18  ;;  %v554_v25 = vand.u32 2147483647, %v544_v18 }
 0x532   :  { %v557_v26 = vor.u32 1.1754944e-38, %v556_v24  ;;  %vm555_vm5 = vcmp.eq.f32.partialorder %v554_v25, 8.507059e+37 }
 0x573   :  { %v536_v13 = vpop.f32.mrf.mxu3 }
 0x574   :  { %v540_v14 = vadd.f32 %v536_v13, %v1792_v55 }
 0x576   :  { %1508 = vtanh.f32 %v540_v14  ;;  %v1427_v32 = vmul.f32 -1.442695, %v540_v14 }
 0x577   :  { %1510 = vrcp.f32 %v544_v18 }
 0x578   :  { %1512 = vpow2.f32 %v1427_v32 }
 0x57b   :  { %v538_v17 = vpop.f32.mrf.mxu3 }
 0x57c   :  { %v1509_v57 = vpop.eup %1508  ;;  %v133_v17 = vpop.f32.mrf.mxu0 }
 0x57d   :  { %600 = vrot.lane.b32.xlu2 %v1509_v57, %s1627_s0  ;;  %v1511_v19 = vpop.eup %1510  ;;  %v134_v57 = vadd.f32 %v133_v17, %v1778_v34 }
 0x57e   :  { %v546_v20 = vmul.f32 %v1511_v19, %v544_v18  ;;  %vm551_vm2 = vweird.f32 %v1511_v19  ;;  %v1513_v33 = vpop.eup %1512 }
 0x57f   :  { %vm552_vm4 = vmor %vm550_vm3, %vm551_vm2  ;;  %v581_v36 = vadd.f32 1.0, %v1513_v33 }
 0x580   :  { %v547_v21 = vsub.f32 1.0, %v546_v20 }
 0x581   :  { %1514 = vrcp.f32 %v581_v36  ;;  %v593_v46 = vand.u32 2147483648, %v581_v36  ;;  %vm587_vm7 = vweird.f32 %v581_v36  ;;  %v591_v49 = vand.u32 2147483647, %v581_v36 }
 0x582   :  { %v548_v22 = vmul.f32 %v1511_v19, %v547_v21 }
 0x583   :  { %v594_v54 = vor.u32 1.1754944e-38, %v593_v46  ;;  %vm592_vm10 = vcmp.eq.f32.partialorder %v591_v49, 8.507059e+37 }
 0x584   :  { %v549_v23 = vadd.f32 %v1511_v19, %v548_v22 }
 0x586   :  { %v553_v55 = vsel %vm552_vm4, %v1511_v19, %v549_v23 }
 0x587   :  { %v558_v30 = vsel %vm555_vm5, %v557_v26, %v553_v55  ;;  %v1515_v37 = vpop.eup %1514 }
 0x588   :  { %v583_v38 = vmul.f32 %v1515_v37, %v581_v36  ;;  %vm588_vm6 = vweird.f32 %v1515_v37  ;;  %v561_v61 = vmul.f32 %v558_v30, %v1828_v48 }
 0x589   :  { %vm589_vm8 = vmor %vm587_vm7, %vm588_vm6 }
 0x58a   :  { %v584_v41 = vsub.f32 1.0, %v583_v38 }
 0x58c   :  { %v585_v42 = vmul.f32 %v1515_v37, %v584_v41 }
 0x58e   :  { %v586_v43 = vadd.f32 %v1515_v37, %v585_v42 }
 0x590   :  { %v590_v51 = vsel %vm589_vm8, %v1515_v37, %v586_v43 }
 0x591   :  { %v595_v58 = vsel %vm592_vm10, %v594_v54, %v590_v51 }
 0x592   :  { %v598_v1 = vmul.f32 %v595_v58, %v1833_v56 }
 0x59e   :  { %v564_v27 = vpop.permute.xlu1 %563 }
 0x59f   :  { %v566_v31 = vmul.f32 %v564_v27, %v558_v30 }
 0x5a1   :  { %568 = vrot.lane.b32.xlu0 %v566_v31, %s1627_s0 }
 0x5d7   :  { %v601_v59 = vpop.permute.xlu2 %600 }
 0x5d8   :  { %v603_v35 = vmul.f32 %v601_v59, %v595_v58 }
 0x5da   :  { %605 = vrot.lane.b32.xlu1 %v603_v35, %s1627_s0 }
 0x613   :  { %v569_v62 = vpop.permute.xlu0 %568 }
 0x614   :  { %v1858_v63 = vadd.f32 %v569_v62, %v561_v61 }
 0x616   :  { %1516 = vtanh.f32 %v1858_v63 }
 0x61c   :  { %v1517_v0 = vpop.eup %1516 }
 0x61d   :  { %574 = vrot.lane.b32.xlu2 %v1517_v0, %s1627_s0 }
 0x64c   :  { %v606_v2 = vpop.permute.xlu1 %605 }
 0x64d   :  { %v1863_v3 = vadd.f32 %v606_v2, %v598_v1 }
 0x64f   :  { %1518 = vtanh.f32 %v1863_v3 }
 0x655   :  { %v1519_v4 = vpop.eup %1518 }
 0x656   :  { %611 = vrot.lane.b32.xlu0 %v1519_v4, %s1627_s0 }
 0x677   :  { %v575_v5 = vpop.permute.xlu2 %574 }
 0x678   :  { %v577_v48 = vmul.f32 %v575_v5, %v558_v30 }
 0x67a   :  { %v1867_v6 = vpack.c.bf16 %v577_v48, %v577_v48 }
 0x67c   :  { %v633_v7 = vunpack.c.l.b16 %v1867_v6 }
 0x67e   :  { %v634_v8 = vpack.c.b16 %v633_v7, %v633_v7 }
 0x680   :  { %635 = vrot.lane.b32.xlu1 %v634_v8, %s1628_s3 }
 0x6c8   :  { %v612_v9 = vpop.permute.xlu0 %611 }
 0x6c9   :  { %v614_v11 = vmul.f32 %v612_v9, %v595_v58 }
 0x6cb   :  { %v1871_v56 = vpack.c.bf16 %v614_v11, %v614_v11 }
 0x6cd   :  { %v658_v12 = vunpack.c.l.b16 %v1871_v56 }
 0x6cf   :  { %v659_v13 = vpack.c.b16 %v658_v12, %v658_v12 }
 0x6d1   :  { %660 = vrot.lane.b32.xlu2 %v659_v13, %s1628_s3 }
 0x6f2   :  { %v636_v14 = vpop.permute.xlu1 %635 }
 0x6f3   :  { %1428 = vmatmul.msk.bf16.vlgmr.msrb.gmra.mxu2 %vm216_vm9, %v636_v14 }
 0x6f4   :  { %1041 = vmatpush.bf16.msrb.mxu2 %v1694_v10 }
 0x6f8   :  { %1042 = vmatpush.bf16.msrb.mxu2 %v1706_v15 }
 0x72b   :  { %v661_v16 = vpop.permute.xlu2 %660 }
 0x72c   :  { %1429 = vmatmul.msk.bf16.vlgmr.msrb.gmra.mxu3 %vm216_vm9, %v661_v16 }
 0x72d   :  { %1063 = vmatpush.bf16.msrb.mxu3 %v1740_v28 }
 0x731   :  { %1064 = vmatpush.bf16.msrb.mxu3 %v1747_v29 }
 0x776   :  { %v649_v18 = vpop.f32.mrf.mxu2 }
 0x777   :  { %v653_v19 = vadd.f32 %v649_v18, %v134_v57 }
 0x779   :  { %1520 = vtanh.f32 %v653_v19  ;;  %v1430_v28 = vmul.f32 -1.442695, %v653_v19 }
 0x77e   :  { %v651_v20 = vpop.f32.mrf.mxu2 }
 0x77f   :  { %v1521_v21 = vpop.eup %1520 }
 0x780   :  { %701 = vrot.lane.b32.xlu0 %v1521_v21, %s1627_s0 }
 0x7af   :  { %v674_v10 = vpop.f32.mrf.mxu3 }
 0x7b0   :  { %v678_v15 = vadd.f32 %v674_v10, %v1790_v53 }
 0x7b2   :  { %1522 = vtanh.f32 %v678_v15  ;;  %v1431_v41 = vmul.f32 -1.442695, %v678_v15  ;;  %v136_v15 = vpop.f32.mrf.mxu0 }
 0x7b3   :  { %1524 = vpow2.f32 %v1430_v28 }
 0x7b7   :  { %v676_v22 = vpop.f32.mrf.mxu3 }
 0x7b8   :  { %v1523_v23 = vpop.eup %1522  ;;  %v137_v22 = vadd.f32 %v136_v15, %v1778_v34 }
 0x7b9   :  { %738 = vrot.lane.b32.xlu1 %v1523_v23, %s1627_s0  ;;  %v1525_v29 = vpop.eup %1524 }
 0x7ba   :  { %v682_v24 = vadd.f32 1.0, %v1525_v29 }
 0x7bc   :  { %1526 = vrcp.f32 %v682_v24  ;;  %v694_v31 = vand.u32 2147483648, %v682_v24  ;;  %vm688_vm12 = vweird.f32 %v682_v24  ;;  %v692_v32 = vand.u32 2147483647, %v682_v24 }
 0x7bd   :  { %1528 = vpow2.f32 %v1431_v41 }
 0x7be   :  { %v695_v33 = vor.u32 1.1754944e-38, %v694_v31  ;;  %vm693_vm14 = vcmp.eq.f32.partialorder %v692_v32, 8.507059e+37 }
 0x7c2   :  { %v1527_v25 = vpop.eup %1526 }
 0x7c3   :  { %v684_v55 = vmul.f32 %v1527_v25, %v682_v24  ;;  %vm689_vm11 = vweird.f32 %v1527_v25  ;;  %v1529_v42 = vpop.eup %1528 }
 0x7c4   :  { %vm690_vm13 = vmor %vm688_vm12, %vm689_vm11  ;;  %v719_v43 = vadd.f32 1.0, %v1529_v42 }
 0x7c5   :  { %v685_v26 = vsub.f32 1.0, %v684_v55 }
 0x7c6   :  { %1530 = vrcp.f32 %v719_v43  ;;  %v731_v59 = vand.u32 2147483648, %v719_v43  ;;  %vm725_vm0 = vweird.f32 %v719_v43  ;;  %v729_v35 = vand.u32 2147483647, %v719_v43 }
 0x7c7   :  { %v686_v27 = vmul.f32 %v1527_v25, %v685_v26 }
 0x7c8   :  { %v732_v62 = vor.u32 1.1754944e-38, %v731_v59  ;;  %vm730_vm2 = vcmp.eq.f32.partialorder %v729_v35, 8.507059e+37 }
 0x7c9   :  { %v687_v30 = vadd.f32 %v1527_v25, %v686_v27 }
 0x7cb   :  { %v691_v53 = vsel %vm690_vm13, %v1527_v25, %v687_v30 }
 0x7cc   :  { %v696_v37 = vsel %vm693_vm14, %v695_v33, %v691_v53  ;;  %v1531_v46 = vpop.eup %1530 }
 0x7cd   :  { %v721_v49 = vmul.f32 %v1531_v46, %v719_v43  ;;  %vm726_vm15 = vweird.f32 %v1531_v46  ;;  %v699_v4 = vmul.f32 %v696_v37, %v1858_v63 }
 0x7ce   :  { %vm727_vm1 = vmor %vm725_vm0, %vm726_vm15 }
 0x7cf   :  { %v722_v51 = vsub.f32 1.0, %v721_v49 }
 0x7d1   :  { %v723_v54 = vmul.f32 %v1531_v46, %v722_v51 }
 0x7d3   :  { %v724_v58 = vadd.f32 %v1531_v46, %v723_v54 }
 0x7d5   :  { %v728_v61 = vsel %vm727_vm1, %v1531_v46, %v724_v58 }
 0x7d6   :  { %v733_v1 = vsel %vm730_vm2, %v732_v62, %v728_v61 }
 0x7d7   :  { %v736_v8 = vmul.f32 %v733_v1, %v1863_v3 }
 0x7f2   :  { %v702_v36 = vpop.permute.xlu0 %701 }
 0x7f3   :  { %v704_v38 = vmul.f32 %v702_v36, %v696_v37 }
 0x7f5   :  { %706 = vrot.lane.b32.xlu2 %v704_v38, %s1627_s0 }
 0x82b   :  { %v739_v0 = vpop.permute.xlu1 %738 }
 0x82c   :  { %v741_v2 = vmul.f32 %v739_v0, %v733_v1 }
 0x82e   :  { %743 = vrot.lane.b32.xlu0 %v741_v2, %s1627_s0 }
 0x84f   :  { %v707_v5 = vpop.permute.xlu2 %706 }
 0x850   :  { %v1888_v48 = vadd.f32 %v707_v5, %v699_v4 }
 0x852   :  { %1532 = vtanh.f32 %v1888_v48 }
 0x858   :  { %v1533_v7 = vpop.eup %1532 }
 0x859   :  { %712 = vrot.lane.b32.xlu1 %v1533_v7, %s1627_s0 }
 0x8a0   :  { %v744_v9 = vpop.permute.xlu0 %743 }
 0x8a1   :  { %v1893_v11 = vadd.f32 %v744_v9, %v736_v8 }
 0x8a3   :  { %1534 = vtanh.f32 %v1893_v11 }
 0x8a9   :  { %v1535_v12 = vpop.eup %1534 }
 0x8aa   :  { %749 = vrot.lane.b32.xlu2 %v1535_v12, %s1627_s0 }
 0x8cb   :  { %v713_v13 = vpop.permute.xlu1 %712 }
 0x8cc   :  { %v715_v63 = vmul.f32 %v713_v13, %v696_v37 }
 0x8ce   :  { %v1897_v14 = vpack.c.bf16 %v715_v63, %v715_v63 }
 0x8d0   :  { %v768_v16 = vunpack.c.l.b16 %v1897_v14 }
 0x8d2   :  { %v769_v17 = vpack.c.b16 %v768_v16, %v768_v16 }
 0x8d4   :  { %770 = vrot.lane.b32.xlu0 %v769_v17, %s1628_s3 }
 0x904   :  { %v750_v57 = vpop.permute.xlu2 %749 }
 0x905   :  { %v752_v18 = vmul.f32 %v750_v57, %v733_v1 }
 0x907   :  { %v1901_v3 = vpack.c.bf16 %v752_v18, %v752_v18 }
 0x909   :  { %v790_v19 = vunpack.c.l.b16 %v1901_v3 }
 0x90b   :  { %v791_v20 = vpack.c.b16 %v790_v19, %v790_v19 }
 0x90d   :  { %792 = vrot.lane.b32.xlu1 %v791_v20, %s1628_s3 }
 0x946   :  { %v771_v21 = vpop.permute.xlu0 %770 }
 0x947   :  { %1432 = vmatmul.msk.bf16.vlgmr.msra.gmra.mxu2 %vm216_vm9, %v771_v21 }
 0x97f   :  { %v793_v10 = vpop.permute.xlu1 %792 }
 0x980   :  { %1433 = vmatmul.msk.bf16.vlgmr.msra.gmra.mxu3 %vm216_vm9, %v793_v10 }
 0x9ca   :  { %v784_v23 = vpop.f32.mrf.mxu2 }
 0x9cb   :  { %v788_v28 = vadd.f32 %v784_v23, %v137_v22 }
 0x9cd   :  { %1536 = vtanh.f32 %v788_v28  ;;  %v1434_v25 = vmul.f32 -1.442695, %v788_v28 }
 0x9cf   :  { %1538 = vpow2.f32 %v1434_v25 }
 0x9d2   :  { %v786_v29 = vpop.f32.mrf.mxu2 }
 0x9d3   :  { %v1537_v24 = vpop.eup %1536 }
 0x9d4   :  { %833 = vrot.lane.b32.xlu2 %v1537_v24, %s1627_s0 }
 0x9d5   :  { %v1539_v27 = vpop.eup %1538 }
 0x9d6   :  { %v814_v32 = vadd.f32 1.0, %v1539_v27 }
 0x9d8   :  { %v826_v41 = vand.u32 2147483648, %v814_v32  ;;  %vm820_vm4 = vweird.f32 %v814_v32  ;;  %v824_v42 = vand.u32 2147483647, %v814_v32 }
 0x9da   :  { %v827_v43 = vor.u32 1.1754944e-38, %v826_v41  ;;  %vm825_vm6 = vcmp.eq.f32.partialorder %v824_v42, 8.507059e+37 }
 0xa03   :  { %v806_v55 = vpop.f32.mrf.mxu3 }
 0xa04   :  { %v810_v26 = vadd.f32 %v806_v55, %v1788_v50 }
 0xa06   :  { %1540 = vtanh.f32 %v810_v26  ;;  %v1435_v54 = vmul.f32 -1.442695, %v810_v26  ;;  %v138_v26 = vpop.f32.mrf.mxu0 }
 0xa07   :  { %1542 = vrcp.f32 %v814_v32 }
 0xa08   :  { %1544 = vpow2.f32 %v1435_v54 }
 0xa0b   :  { %v808_v30 = vpop.f32.mrf.mxu3 }
 0xa0c   :  { %v1541_v31 = vpop.eup %1540 }
 0xa0d   :  { %870 = vrot.lane.b32.xlu0 %v1541_v31, %s1627_s0  ;;  %v1543_v53 = vpop.eup %1542  ;;  %v139_v31 = vadd.f32 %v138_v26, %v1778_v34 }
 0xa0e   :  { %v816_v33 = vmul.f32 %v1543_v53, %v814_v32  ;;  %vm821_vm3 = vweird.f32 %v1543_v53  ;;  %v1545_v58 = vpop.eup %1544  ;;  %v1933_v27 = vpop.f32.mrf.mxu0 }
 0xa0f   :  { %vm822_vm5 = vmor %vm820_vm4, %vm821_vm3  ;;  %v851_v59 = vadd.f32 1.0, %v1545_v58 }
 0xa10   :  { %v817_v36 = vsub.f32 1.0, %v816_v33 }
 0xa11   :  { %1546 = vrcp.f32 %v851_v59  ;;  %v863_v2 = vand.u32 2147483648, %v851_v59  ;;  %vm857_vm8 = vweird.f32 %v851_v59  ;;  %v861_v4 = vand.u32 2147483647, %v851_v59 }
 0xa12   :  { %v818_v37 = vmul.f32 %v1543_v53, %v817_v36 }
 0xa13   :  { %v864_v7 = vor.u32 1.1754944e-38, %v863_v2  ;;  %vm862_vm11 = vcmp.eq.f32.partialorder %v861_v4, 8.507059e+37 }
 0xa14   :  { %v819_v38 = vadd.f32 %v1543_v53, %v818_v37 }
 0xa16   :  { %v823_v50 = vsel %vm822_vm5, %v1543_v53, %v819_v38  ;;  %v1935_v30 = vpop.f32.mrf.mxu0 }
 0xa17   :  { %v828_v46 = vsel %vm825_vm6, %v827_v43, %v823_v50  ;;  %v1547_v35 = vpop.eup %1546 }
 0xa18   :  { %v853_v61 = vmul.f32 %v1547_v35, %v851_v59  ;;  %vm858_vm7 = vweird.f32 %v1547_v35  ;;  %v831_v13 = vmul.f32 %v828_v46, %v1888_v48 }
 0xa19   :  { %vm859_vm10 = vmor %vm857_vm8, %vm858_vm7 }
 0xa1a   :  { %v854_v62 = vsub.f32 1.0, %v853_v61 }
 0xa1c   :  { %v855_v0 = vmul.f32 %v1547_v35, %v854_v62 }
 0xa1e   :  { %v856_v1 = vadd.f32 %v1547_v35, %v855_v0 }
 0xa20   :  { %v860_v5 = vsel %vm859_vm10, %v1547_v35, %v856_v1 }
 0xa21   :  { %v865_v9 = vsel %vm862_vm11, %v864_v7, %v860_v5 }
 0xa22   :  { %v868_v57 = vmul.f32 %v865_v9, %v1893_v11 }
 0xa2e   :  { %v834_v49 = vpop.permute.xlu2 %833 }
 0xa2f   :  { %v836_v51 = vmul.f32 %v834_v49, %v828_v46 }
 0xa31   :  { %838 = vrot.lane.b32.xlu1 %v836_v51, %s1627_s0 }
 0xa7f   :  { %v871_v8 = vpop.permute.xlu0 %870 }
 0xa80   :  { %v873_v12 = vmul.f32 %v871_v8, %v865_v9 }
 0xa82   :  { %875 = vrot.lane.b32.xlu2 %v873_v12, %s1627_s0 }
 0xaa3   :  { %v839_v63 = vpop.permute.xlu1 %838 }
 0xaa4   :  { %v1914_v16 = vadd.f32 %v839_v63, %v831_v13 }
 0xaa6   :  { %1548 = vtanh.f32 %v1914_v16 }
 0xaac   :  { %v1549_v17 = vpop.eup %1548 }
 0xaad   :  { %844 = vrot.lane.b32.xlu0 %v1549_v17, %s1627_s0 }
 0xadc   :  { %v876_v18 = vpop.permute.xlu2 %875 }
 0xadd   :  { %v1919_v19 = vadd.f32 %v876_v18, %v868_v57 }
 0xadf   :  { %1550 = vtanh.f32 %v1919_v19 }
 0xae5   :  { %v1551_v20 = vpop.eup %1550 }
 0xae6   :  { %881 = vrot.lane.b32.xlu1 %v1551_v20, %s1627_s0 }
 0xb1f   :  { %v845_v21 = vpop.permute.xlu0 %844 }
 0xb20   :  { %v847_v48 = vmul.f32 %v845_v21, %v828_v46 }
 0xb22   :  { %v1923_v10 = vpack.c.bf16 %v847_v48, %v847_v48 }
 0xb24   :  { %v898_v15 = vunpack.c.l.b16 %v1923_v10 }
 0xb26   :  { %v899_v22 = vpack.c.b16 %v898_v15, %v898_v15 }
 0xb28   :  { %900 = vrot.lane.b32.xlu2 %v899_v22, %s1628_s3 }
 0xb58   :  { %v882_v23 = vpop.permute.xlu1 %881 }
 0xb59   :  { %v884_v28 = vmul.f32 %v882_v23, %v865_v9 }
 0xb5b   :  { %v1927_v11 = vpack.c.bf16 %v884_v28, %v884_v28 }
 0xb5d   :  { %v920_v29 = vunpack.c.l.b16 %v1927_v11 }
 0xb5f   :  { %v921_v24 = vpack.c.b16 %v920_v29, %v920_v29 }
 0xb61   :  { %922 = vrot.lane.b32.xlu0 %v921_v24, %s1628_s3 }
 0xb82   :  { %v901_v25 = vpop.permute.xlu2 %900 }
 0xb83   :  { %1436 = vmatmul.msk.bf16.vlgmr.msrb.gmra.mxu0 %vm216_vm9, %v901_v25 }
 0xbd3   :  { %v923_v55 = vpop.permute.xlu0 %922 }
 0xbd4   :  { %1437 = vmatmul.msk.bf16.vlgmr.msrb.gmra.mxu1 %vm216_vm9, %v923_v55 }
 0xc00   :  { %v914_v32 = vpop.f32.mrf.mxu0 }
 0xc01   :  { %v918_v53 = vadd.f32 %v914_v32, %v139_v31 }
 0xc03   :  { %1552 = vtanh.f32 %v918_v53  ;;  %v1438_v37 = vmul.f32 -1.442695, %v918_v53 }
 0xc05   :  { %1554 = vpow2.f32 %v1438_v37 }
 0xc08   :  { %v916_v33 = vpop.f32.mrf.mxu0 }
 0xc09   :  { %v1553_v36 = vpop.eup %1552 }
 0xc0a   :  { %963 = vrot.lane.b32.xlu1 %v1553_v36, %s1627_s0 }
 0xc0b   :  { %v1555_v42 = vpop.eup %1554 }
 0xc0c   :  { %v944_v46 = vadd.f32 1.0, %v1555_v42 }
 0xc0e   :  { %v956_v35 = vand.u32 2147483648, %v944_v46  ;;  %vm950_vm13 = vweird.f32 %v944_v46  ;;  %v954_v61 = vand.u32 2147483647, %v944_v46 }
 0xc10   :  { %v957_v62 = vor.u32 1.1754944e-38, %v956_v35  ;;  %vm955_vm15 = vcmp.eq.f32.partialorder %v954_v61, 8.507059e+37 }
 0xc51   :  { %v936_v38 = vpop.f32.mrf.mxu1 }
 0xc52   :  { %v940_v41 = vadd.f32 %v936_v38, %v1786_v47 }
 0xc54   :  { %1556 = vtanh.f32 %v940_v41  ;;  %v1439_v4 = vmul.f32 -1.442695, %v940_v41 }
 0xc55   :  { %1558 = vrcp.f32 %v944_v46 }
 0xc56   :  { %1560 = vpow2.f32 %v1439_v4 }
 0xc59   :  { %v938_v50 = vpop.f32.mrf.mxu1 }
 0xc5a   :  { %v1557_v43 = vpop.eup %1556 }
 0xc5b   :  { %1000 = vrot.lane.b32.xlu2 %v1557_v43, %s1627_s0  ;;  %v1559_v49 = vpop.eup %1558  ;;  %v142_v43 = vadd.f32 %v1933_v27, %v1778_v34 }
 0xc5c   :  { %v946_v51 = vmul.f32 %v1559_v49, %v944_v46  ;;  %vm951_vm12 = vweird.f32 %v1559_v49  ;;  %v1561_v5 = vpop.eup %1560 }
 0xc5d   :  { %vm952_vm14 = vmor %vm950_vm13, %vm951_vm12  ;;  %v981_v7 = vadd.f32 1.0, %v1561_v5 }
 0xc5e   :  { %v947_v54 = vsub.f32 1.0, %v946_v51 }
 0xc5f   :  { %1562 = vrcp.f32 %v981_v7  ;;  %v993_v17 = vand.u32 2147483648, %v981_v7  ;;  %vm987_vm1 = vweird.f32 %v981_v7  ;;  %v991_v57 = vand.u32 2147483647, %v981_v7 }
 0xc60   :  { %v948_v58 = vmul.f32 %v1559_v49, %v947_v54 }
 0xc61   :  { %v994_v20 = vor.u32 1.1754944e-38, %v993_v17  ;;  %vm992_vm3 = vcmp.eq.f32.partialorder %v991_v57, 8.507059e+37 }
 0xc62   :  { %v949_v59 = vadd.f32 %v1559_v49, %v948_v58 }
 0xc64   :  { %v953_v47 = vsel %vm952_vm14, %v1559_v49, %v949_v59 }
 0xc65   :  { %v958_v1 = vsel %vm955_vm15, %v957_v62, %v953_v47  ;;  %v1563_v8 = vpop.eup %1562 }
 0xc66   :  { %v983_v9 = vmul.f32 %v1563_v8, %v981_v7  ;;  %vm988_vm0 = vweird.f32 %v1563_v8  ;;  %v961_v22 = vmul.f32 %v958_v1, %v1914_v16 }
 0xc67   :  { %vm989_vm2 = vmor %vm987_vm1, %vm988_vm0 }
 0xc68   :  { %v984_v12 = vsub.f32 1.0, %v983_v9 }
 0xc6a   :  { %v985_v13 = vmul.f32 %v1563_v8, %v984_v12 }
 0xc6c   :  { %v986_v63 = vadd.f32 %v1563_v8, %v985_v13 }
 0xc6e   :  { %v990_v18 = vsel %vm989_vm2, %v1563_v8, %v986_v63 }
 0xc6f   :  { %v995_v21 = vsel %vm992_vm3, %v994_v20, %v990_v18 }
 0xc70   :  { %v998_v24 = vmul.f32 %v995_v21, %v1919_v19 }
 0xc7c   :  { %v964_v0 = vpop.permute.xlu1 %963 }
 0xc7d   :  { %v966_v2 = vmul.f32 %v964_v0, %v958_v1 }
 0xc7f   :  { %968 = vrot.lane.b32.xlu0 %v966_v2, %s1627_s0 }
 0xcb5   :  { %v1001_v48 = vpop.permute.xlu2 %1000 }
 0xcb6   :  { %v1003_v15 = vmul.f32 %v1001_v48, %v995_v21 }
 0xcb8   :  { %1005 = vrot.lane.b32.xlu1 %v1003_v15, %s1627_s0 }
 0xcf1   :  { %v969_v23 = vpop.permute.xlu0 %968 }
 0xcf2   :  { %v1944_v28 = vadd.f32 %v969_v23, %v961_v22 }
 0xcf4   :  { %1564 = vtanh.f32 %v1944_v28 }
 0xcfa   :  { %v1565_v29 = vpop.eup %1564 }
 0xcfb   :  { %974 = vrot.lane.b32.xlu2 %v1565_v29, %s1627_s0 }
 0xd2a   :  { %v1006_v25 = vpop.permute.xlu1 %1005 }
 0xd2b   :  { %v1949_v55 = vadd.f32 %v1006_v25, %v998_v24 }
 0xd2d   :  { %1566 = vtanh.f32 %v1949_v55 }
 0xd33   :  { %v1567_v26 = vpop.eup %1566 }
 0xd34   :  { %1011 = vrot.lane.b32.xlu0 %v1567_v26, %s1627_s0 }
 0xd55   :  { %v975_v31 = vpop.permute.xlu2 %974 }
 0xd56   :  { %v977_v16 = vmul.f32 %v975_v31, %v958_v1 }
 0xd58   :  { %v1953_v32 = vpack.c.bf16 %v977_v16, %v977_v16 }
 0xd5a   :  { %v1028_v53 = vunpack.c.l.b16 %v1953_v32 }
 0xd5c   :  { %v1029_v33 = vpack.c.b16 %v1028_v53, %v1028_v53 }
 0xd5e   :  { %1030 = vrot.lane.b32.xlu1 %v1029_v33, %s1628_s3 }
 0xda6   :  { %v1012_v36 = vpop.permute.xlu0 %1011 }
 0xda7   :  { %v1014_v37 = vmul.f32 %v1012_v36, %v995_v21 }
 0xda9   :  { %v1957_v19 = vpack.c.bf16 %v1014_v37, %v1014_v37 }
 0xdab   :  { %v1050_v38 = vunpack.c.l.b16 %v1957_v19 }
 0xdad   :  { %v1051_v41 = vpack.c.b16 %v1050_v38, %v1050_v38 }
 0xdaf   :  { %1052 = vrot.lane.b32.xlu2 %v1051_v41, %s1628_s3 }
 0xdd0   :  { %v1031_v42 = vpop.permute.xlu1 %1030 }
 0xdd1   :  { %1440 = vmatmul.msk.bf16.vlgmr.msrb.gmra.mxu2 %vm216_vm9, %v1031_v42 }
 0xe09   :  { %v1053_v50 = vpop.permute.xlu2 %1052 }
 0xe0a   :  { %1441 = vmatmul.msk.bf16.vlgmr.msrb.gmra.mxu3 %vm216_vm9, %v1053_v50 }
 0xe54   :  { %v1044_v46 = vpop.f32.mrf.mxu2 }
 0xe55   :  { %v1048_v49 = vadd.f32 %v1044_v46, %v142_v43 }
 0xe57   :  { %1568 = vtanh.f32 %v1048_v49  ;;  %v1442_v47 = vmul.f32 -1.442695, %v1048_v49 }
 0xe5c   :  { %v1046_v51 = vpop.f32.mrf.mxu2 }
 0xe5d   :  { %v1569_v54 = vpop.eup %1568 }
 0xe5e   :  { %1093 = vrot.lane.b32.xlu0 %v1569_v54, %s1627_s0 }
 0xe8d   :  { %v1066_v58 = vpop.f32.mrf.mxu3 }
 0xe8e   :  { %v1070_v59 = vadd.f32 %v1066_v58, %v1783_v44 }
 0xe90   :  { %1570 = vtanh.f32 %v1070_v59  ;;  %v1443_v17 = vmul.f32 -1.442695, %v1070_v59 }
 0xe91   :  { %1572 = vpow2.f32 %v1442_v47 }
 0xe95   :  { %v1068_v35 = vpop.f32.mrf.mxu3 }
 0xe96   :  { %v1571_v61 = vpop.eup %1570 }
 0xe97   :  { %1130 = vrot.lane.b32.xlu1 %v1571_v61, %s1627_s0  ;;  %v1573_v62 = vpop.eup %1572 }
 0xe98   :  { %v1074_v0 = vadd.f32 1.0, %v1573_v62  ;;  %v144_v62 = vadd.f32 %v1935_v30, %v1778_v34 }
 0xe9a   :  { %1574 = vrcp.f32 %v1074_v0  ;;  %v1086_v7 = vand.u32 2147483648, %v1074_v0  ;;  %vm1080_vm5 = vweird.f32 %v1074_v0  ;;  %v1084_v8 = vand.u32 2147483647, %v1074_v0 }
 0xe9b   :  { %1576 = vpow2.f32 %v1443_v17 }
 0xe9c   :  { %v1087_v9 = vor.u32 1.1754944e-38, %v1086_v7  ;;  %vm1085_vm7 = vcmp.eq.f32.partialorder %v1084_v8, 8.507059e+37 }
 0xea0   :  { %v1575_v27 = vpop.eup %1574 }
 0xea1   :  { %v1076_v1 = vmul.f32 %v1575_v27, %v1074_v0  ;;  %vm1081_vm4 = vweird.f32 %v1575_v27  ;;  %v1577_v57 = vpop.eup %1576 }
 0xea2   :  { %vm1082_vm6 = vmor %vm1080_vm5, %vm1081_vm4  ;;  %v1111_v18 = vadd.f32 1.0, %v1577_v57  ;;  %vm351_vm5 = vcmask 519424  }
 0xea3   :  { %v1077_v2 = vsub.f32 1.0, %v1076_v1 }
 0xea4   :  { %1578 = vrcp.f32 %v1111_v18  ;;  %v1123_v23 = vand.u32 2147483648, %v1111_v18  ;;  %vm1117_vm10 = vweird.f32 %v1111_v18  ;;  %v1121_v29 = vand.u32 2147483647, %v1111_v18 }
 0xea5   :  { %v1078_v4 = vmul.f32 %v1575_v27, %v1077_v2 }
 0xea6   :  { %v1124_v25 = vor.u32 1.1754944e-38, %v1123_v23  ;;  %vm1122_vm12 = vcmp.eq.f32.partialorder %v1121_v29, 8.507059e+37 }
 0xea7   :  { %v1079_v5 = vadd.f32 %v1575_v27, %v1078_v4 }
 0xea9   :  { %v1083_v44 = vsel %vm1082_vm6, %v1575_v27, %v1079_v5  ;;  %vm343_vm6 = vcmask 257024  }
 0xeaa   :  { %v1088_v13 = vsel %vm1085_vm7, %v1087_v9, %v1083_v44  ;;  %v1579_v20 = vpop.eup %1578 }
 0xeab   :  { %v1113_v21 = vmul.f32 %v1579_v20, %v1111_v18  ;;  %vm1118_vm8 = vweird.f32 %v1579_v20  ;;  %v1091_v53 = vmul.f32 %v1088_v13, %v1944_v28 }
 0xeac   :  { %vm1119_vm11 = vmor %vm1117_vm10, %vm1118_vm8 }
 0xead   :  { %v1114_v48 = vsub.f32 1.0, %v1113_v21 }
 0xeaf   :  { %v1115_v15 = vmul.f32 %v1579_v20, %v1114_v48 }
 0xeb1   :  { %v1116_v22 = vadd.f32 %v1579_v20, %v1115_v15 }
 0xeb3   :  { %v1120_v24 = vsel %vm1119_vm11, %v1579_v20, %v1116_v22 }
 0xeb4   :  { %v1125_v31 = vsel %vm1122_vm12, %v1124_v25, %v1120_v24 }
 0xeb5   :  { %v1128_v38 = vmul.f32 %v1125_v31, %v1949_v55 }
 0xed0   :  { %v1094_v12 = vpop.permute.xlu0 %1093 }
 0xed1   :  { %v1096_v63 = vmul.f32 %v1094_v12, %v1088_v13 }
 0xed3   :  { %1098 = vrot.lane.b32.xlu2 %v1096_v63, %s1627_s0 }
 0xf09   :  { %v1131_v26 = vpop.permute.xlu1 %1130 }
 0xf0a   :  { %v1133_v16 = vmul.f32 %v1131_v26, %v1125_v31 }
 0xf0c   :  { %1135 = vrot.lane.b32.xlu0 %v1133_v16, %s1627_s0 }
 0xf2d   :  { %v1099_v33 = vpop.permute.xlu2 %1098 }
 0xf2e   :  { %v1971_v36 = vadd.f32 %v1099_v33, %v1091_v53 }
 0xf30   :  { %1580 = vtanh.f32 %v1971_v36 }
 0xf36   :  { %v1581_v37 = vpop.eup %1580 }
 0xf37   :  { %1104 = vrot.lane.b32.xlu1 %v1581_v37, %s1627_s0 }
 0xf7e   :  { %v1136_v41 = vpop.permute.xlu0 %1135 }
 0xf7f   :  { %v1976_v42 = vadd.f32 %v1136_v41, %v1128_v38 }
 0xf81   :  { %1582 = vtanh.f32 %v1976_v42 }
 0xf87   :  { %v1583_v50 = vpop.eup %1582 }
 0xf88   :  { %1141 = vrot.lane.b32.xlu2 %v1583_v50, %s1627_s0 }
 0xfa9   :  { %v1105_v43 = vpop.permute.xlu1 %1104 }
 0xfaa   :  { %v1107_v28 = vmul.f32 %v1105_v43, %v1088_v13 }
 0xfac   :  { %v1980_v46 = vpack.c.bf16 %v1107_v28, %v1107_v28 }
 0xfae   :  { %v1158_v49 = vunpack.c.l.b16 %v1980_v46 }
 0xfb0   :  { %v1159_v51 = vpack.c.b16 %v1158_v49, %v1158_v49 }
 0xfb2   :  { %1160 = vrot.lane.b32.xlu0 %v1159_v51, %s1628_s3 }
 0xfe2   :  { %v1142_v54 = vpop.permute.xlu2 %1141 }
 0xfe3   :  { %v1144_v58 = vmul.f32 %v1142_v54, %v1125_v31 }
 0xfe5   :  { %v1984_v55 = vpack.c.bf16 %v1144_v58, %v1144_v58 }
 0xfe7   :  { %v1180_v59 = vunpack.c.l.b16 %v1984_v55 }
 0xfe9   :  { %v1181_v35 = vpack.c.b16 %v1180_v59, %v1180_v59 }
 0xfeb   :  { %1182 = vrot.lane.b32.xlu1 %v1181_v35, %s1628_s3 }
0x1024   :  { %v1161_v61 = vpop.permute.xlu0 %1160 }
0x1025   :  { %1444 = vmatmul.msk.bf16.vlgmr.msra.gmra.mxu0 %vm216_vm9, %v1161_v61 }
0x105d   :  { %v1183_v47 = vpop.permute.xlu1 %1182 }
0x105e   :  { %1445 = vmatmul.msk.bf16.vlgmr.msra.gmra.mxu1 %vm216_vm9, %v1183_v47 }
0x10a2   :  { %v1174_v0 = vpop.f32.mrf.mxu0 }
0x10a3   :  { %v1178_v27 = vadd.f32 %v1174_v0, %v144_v62 }
0x10a5   :  { %1584 = vtanh.f32 %v1178_v27  ;;  %v1446_v4 = vmul.f32 -1.442695, %v1178_v27 }
0x10a7   :  { %1586 = vpow2.f32 %v1446_v4 }
0x10aa   :  { %v1176_v1 = vpop.f32.mrf.mxu0 }
0x10ab   :  { %v1585_v2 = vpop.eup %1584 }
0x10ac   :  { %1223 = vrot.lane.b32.xlu2 %v1585_v2, %s1627_s0 }
0x10ad   :  { %v1587_v8 = vpop.eup %1586 }
0x10ae   :  { %v1204_v12 = vadd.f32 1.0, %v1587_v8 }
0x10b0   :  { %vm1210_vm14 = vweird.f32 %v1204_v12  ;;  %v1214_v57 = vand.u32 2147483647, %v1204_v12 }
0x10b2   :  { %vm1215_vm0 = vcmp.eq.f32.partialorder %v1214_v57, 8.507059e+37 }
0x10db   :  { %v1196_v5 = vpop.f32.mrf.mxu1 }
0x10dc   :  { %v1200_v7 = vadd.f32 %v1196_v5, %v1781_v40  ;;  %v1216_v40 = vand.u32 2147483648, %v1204_v12 }
0x10de   :  { %1588 = vtanh.f32 %v1200_v7  ;;  %v1217_v20 = vor.u32 1.1754944e-38, %v1216_v40 }
0x10df   :  { %1590 = vrcp.f32 %v1204_v12 }
0x10e3   :  { %v1198_v44 = vpop.f32.mrf.mxu1 }
0x10e4   :  { %v1589_v9 = vpop.eup %1588 }
0x10e5   :  { %1260 = vrot.lane.b32.xlu0 %v1589_v9, %s1627_s0  ;;  %v1591_v34 = vpop.eup %1590 }
0x10e6   :  { %v1206_v30 = vmul.f32 %v1591_v34, %v1204_v12  ;;  %vm1211_vm13 = vweird.f32 %v1591_v34 }
0x10e7   :  { %vm1212_vm15 = vmor %vm1210_vm14, %vm1211_vm13 }
0x10e8   :  { %v1207_v13 = vsub.f32 1.0, %v1206_v30 }
0x10ea   :  { %v1208_v63 = vmul.f32 %v1591_v34, %v1207_v13 }
0x10ec   :  { %v1209_v17 = vadd.f32 %v1591_v34, %v1208_v63 }
0x10ed   :  { %347 = vrot.lane.b32.xlu0 %v1811_v52, %s1629_s21  ;;  %v1447_v52 = vmul.f32 -1.442695, %v1200_v7 }
0x10ee   :  { %v1213_v18 = vsel %vm1212_vm15, %v1591_v34, %v1209_v17 }
0x10ef   :  { %v1997_v21 = vsel %vm1215_vm0, %v1217_v20, %v1213_v18  ;;  %1592 = vpow2.f32 %v1447_v52 }
0x10f0   :  { %v1221_v28 = vmul.f32 %v1997_v21, %v1971_v36 }
0x10f5   :  { %v1593_v22 = vpop.eup %1592 }
0x10f6   :  { %v1241_v23 = vadd.f32 1.0, %v1593_v22 }
0x10f8   :  { %1594 = vrcp.f32 %v1241_v23  ;;  %v1253_v16 = vand.u32 2147483648, %v1241_v23  ;;  %vm1247_vm2 = vweird.f32 %v1241_v23  ;;  %v1251_v53 = vand.u32 2147483647, %v1241_v23 }
0x10fa   :  { %v1254_v37 = vor.u32 1.1754944e-38, %v1253_v16  ;;  %vm1252_vm4 = vcmp.eq.f32.partialorder %v1251_v53, 8.507059e+37 }
0x10fe   :  { %v1595_v29 = vpop.eup %1594 }
0x10ff   :  { %v1243_v24 = vmul.f32 %v1595_v29, %v1241_v23  ;;  %vm1248_vm1 = vweird.f32 %v1595_v29 }
0x1100   :  { %vm1249_vm3 = vmor %vm1247_vm2, %vm1248_vm1 }
0x1101   :  { %v1244_v25 = vsub.f32 1.0, %v1243_v24 }
0x1103   :  { %v1245_v26 = vmul.f32 %v1595_v29, %v1244_v25 }
0x1105   :  { %v1246_v31 = vadd.f32 %v1595_v29, %v1245_v26 }
0x1106   :  { %v1224_v48 = vpop.permute.xlu2 %1223 }
0x1107   :  { %v1226_v15 = vmul.f32 %v1224_v48, %v1997_v21  ;;  %v1250_v33 = vsel %vm1249_vm3, %v1595_v29, %v1246_v31 }
0x1108   :  { %v1255_v41 = vsel %vm1252_vm4, %v1254_v37, %v1250_v33 }
0x1109   :  { %1228 = vrot.lane.b32.xlu1 %v1226_v15, %s1627_s0 }
0x1157   :  { %v1261_v38 = vpop.permute.xlu0 %1260 }
0x1158   :  { %v1263_v50 = vmul.f32 %v1261_v38, %v1255_v41 }
0x115a   :  { %1265 = vrot.lane.b32.xlu2 %v1263_v50, %s1627_s0 }
0x115f   :  { %v348_v43 = vpop.permute.xlu0 %347 }
0x1160   :  { %352 = vst.msk [vmem:[#allocation3 + $0x1c] sm:$0xf] %vm351_vm5, %v348_v43 }
0x1162   :  { %340 = vrot.lane.b32.xlu2 %v1807_v45, %s1628_s3  ;;  %v1258_v45 = vmul.f32 %v1255_v41, %v1976_v42 }
0x116a   :  { %486 = vrot.lane.b32.xlu2 %v1841_v39, %s1629_s21 }
0x1172   :  { %755 = vrot.lane.b32.xlu2 %v1897_v14, %s1628_s3 }
0x117a   :  { %893 = vrot.lane.b32.xlu2 %v1927_v11, %s1629_s21 }
0x117b   :  { %v1229_v49 = vpop.permute.xlu1 %1228 }
0x117c   :  { %v1231_v51 = vadd.f32 %v1229_v49, %v1221_v28 }
0x117e   :  { %1596 = vtanh.f32 %v1231_v51 }
0x1182   :  { %1147 = vrot.lane.b32.xlu2 %v1980_v46, %s1628_s3 }
0x1184   :  { %v1597_v54 = vpop.eup %1596 }
0x1185   :  { %1234 = vrot.lane.b32.xlu0 %v1597_v54, %s1627_s0 }
0x118d   :  { %617 = vrot.lane.b32.xlu0 %v1867_v6, %s1628_s3 }
0x1195   :  { %762 = vrot.lane.b32.xlu0 %v1901_v3, %s1629_s21 }
0x119d   :  { %1017 = vrot.lane.b32.xlu0 %v1953_v32, %s1628_s3 }
0x11a5   :  { %1153 = vrot.lane.b32.xlu0 %v1984_v55, %s1629_s21 }
0x11b4   :  { %v1266_v39 = vpop.permute.xlu2 %1265 }
0x11b5   :  { %v1268_v14 = vadd.f32 %v1266_v39, %v1258_v45 }
0x11b7   :  { %1598 = vtanh.f32 %v1268_v14 }
0x11bc   :  { %v341_v11 = vpop.permute.xlu2 %340 }
0x11bd   :  { %v1599_v36 = vpop.eup %1598  ;;  %344 = vst.msk [vmem:[#allocation3] sm:$0xf] %vm343_vm6, %v341_v11 }
0x11be   :  { %1271 = vrot.lane.b32.xlu1 %v1599_v36, %s1627_s0 }
0x11c4   :  { %v487_v6 = vpop.permute.xlu2 %486 }
0x11c5   :  { %490 = vst.msk [vmem:[#allocation3 + $0x18] sm:$0xf] %vm351_vm5, %v487_v6 }
0x11c6   :  { %479 = vrot.lane.b32.xlu1 %v1837_v60, %s1628_s3 }
0x11cc   :  { %v756_v3 = vpop.permute.xlu2 %755 }
0x11cd   :  { %759 = vst.msk [vmem:[#allocation3 + $0xc] sm:$0xf] %vm343_vm6, %v756_v3 }
0x11ce   :  { %624 = vrot.lane.b32.xlu1 %v1871_v56, %s1629_s21 }
0x11d4   :  { %v894_v32 = vpop.permute.xlu2 %893 }
0x11d5   :  { %896 = vst.msk [vmem:[#allocation3 + $0xc] sm:$0xf] %vm351_vm5, %v894_v32 }
0x11d6   :  { %887 = vrot.lane.b32.xlu1 %v1923_v10, %s1628_s3 }
0x11dc   :  { %v1148_v42 = vpop.permute.xlu2 %1147 }
0x11dd   :  { %1150 = vst.msk [vmem:[#allocation3 + $0x18] sm:$0xf] %vm343_vm6, %v1148_v42 }
0x11de   :  { %1023 = vrot.lane.b32.xlu1 %v1957_v19, %s1629_s21 }
0x11f7   :  { %v1235_v46 = vpop.permute.xlu0 %1234 }
0x11f8   :  { %v1237_v60 = vmul.f32 %v1235_v46, %v1997_v21 }
0x11fa   :  { %v1275_v58 = vpack.c.bf16 %v1237_v60, %v1237_v60  ;;  %1288 = vrot.lane.b32.xlu0 %v1237_v60, %s1628_s3 }
0x11fc   :  { %1277 = vrot.lane.b32.xlu1 %v1275_v58, %s1628_s3 }
0x11ff   :  { %v618_v56 = vpop.permute.xlu0 %617 }
0x1200   :  { %621 = vst.msk [vmem:[#allocation3 + $0x8] sm:$0xf] %vm343_vm6, %v618_v56 }
0x1202   :  { %1304 = vrot.lane.b32.xlu0 %v1268_v14, %s1629_s21 }
0x1207   :  { %v763_v10 = vpop.permute.xlu0 %762 }
0x1208   :  { %766 = vst.msk [vmem:[#allocation3 + $0x10] sm:$0xf] %vm351_vm5, %v763_v10 }
0x120f   :  { %v1018_v55 = vpop.permute.xlu0 %1017 }
0x1217   :  { %v1154_v47 = vpop.permute.xlu0 %1153 }
0x1230   :  { %v1272_v59 = vpop.permute.xlu1 %1271 }
0x1231   :  { %v1274_v35 = vmul.f32 %v1272_v59, %v1255_v41 }
0x1233   :  { %v1281_v19 = vpack.c.bf16 %v1274_v35, %v1274_v35  ;;  %1293 = vrot.lane.b32.xlu1 %v1274_v35, %s1628_s3 }
0x1235   :  { %1283 = vrot.lane.b32.xlu2 %v1281_v19, %s1629_s21 }
0x1238   :  { %v480_v61 = vpop.permute.xlu1 %479 }
0x1239   :  { %483 = vst.msk [vmem:[#allocation3 + $0x4] sm:$0xf] %vm343_vm6, %v480_v61 }
0x123a   :  { %1156 = vst.msk [vmem:[#allocation3 + $0x4] sm:$0xf] %vm351_vm5, %v1154_v47 }
0x123d   :  { %1299 = vrot.lane.b32.xlu2 %v1231_v51, %s1629_s21 }
0x1240   :  { %v625_v62 = vpop.permute.xlu1 %624 }
0x1241   :  { %628 = vst.msk [vmem:[#allocation3 + $0x14] sm:$0xf] %vm351_vm5, %v625_v62 }
0x1242   :  { %1020 = vst.msk [vmem:[#allocation3 + $0x14] sm:$0xf] %vm343_vm6, %v1018_v55 }
0x1248   :  { %v888_v0 = vpop.permute.xlu1 %887 }
0x1249   :  { %890 = vst.msk [vmem:[#allocation3 + $0x10] sm:$0xf] %vm343_vm6, %v888_v0 }
0x1250   :  { %v1024_v27 = vpop.permute.xlu1 %1023 }
0x1251   :  { %1026 = vst.msk [vmem:[#allocation3 + $0x8] sm:$0xf] %vm351_vm5, %v1024_v27 }
0x126c   :  { %v1289_v1 = vpop.permute.xlu0 %1288 }
0x126d   :  { %1291 = vst.msk [vmem:[%s2082_s5] sm:$0xff] %vm216_vm9, %v1289_v1 }
0x126e   :  { %v1278_v2 = vpop.permute.xlu1 %1277 }
0x126f   :  { %1280 = vst.msk [vmem:[#allocation3 + $0x1c] sm:$0xf] %vm343_vm6, %v1278_v2 }
0x1274   :  { %v1305_v4 = vpop.permute.xlu0 %1304 }
0x1275   :  { %1449 = vst.msk [vmem:[%s2083_s6 + $0x8] sm:$0xff] %vm216_vm9, %v1305_v4 }
0x128f   :  { %v1284_v5 = vpop.permute.xlu2 %1283 }
0x1290   :  { %1286 = vst.msk [vmem:[#allocation3] sm:$0xf] %vm351_vm5, %v1284_v5 }
0x1291   :  { %1321 = dma.vmem_to_hbm [thread:$0]  %s1314_s27, 512, %s1316_s30, [#allocation4], %s1628_s3, %s1628_s3, %s1631_s7  }
0x1297   :  { %v1300_v7 = vpop.permute.xlu2 %1299 }
0x1298   :  { %1302 = vst.msk [vmem:[%s2083_s6] sm:$0xff] %vm216_vm9, %v1300_v7 }
0x12a5   :  { %v1294_v8 = vpop.permute.xlu1 %1293 }
0x12a6   :  { %1448 = vst.msk [vmem:[%s2082_s5 + $0x8] sm:$0xff] %vm216_vm9, %v1294_v8 }
0x12a7   :  { %1624 = dma.done.wait [#allocation4], 512  }
0x12a8   :  { %1625 = vsyncadd [#allocation4], 4294966784 }
0x12a9   :  { %1334 = vsyncpa [#allocation4], 1 }

</bundles_post_ra>
